<compile_context>
chip_gen: v5e
topology: v5e:2x2
jax: 0.10.0
libtpu: 0.0.40
codegen_flags: <defaults>
</compile_context>

<pallas_src>
import numpy as np
import jax
import jax.numpy as jnp
from jax import lax
from jax.experimental import pallas as pl
from jax.experimental.pallas import tpu as pltpu

BN_EPS = 1e-5
BN_SCALE = float(1.0 / np.sqrt(1.0 + BN_EPS))   # eval-mode BN at PyTorch init
INV_SQRT2 = float(1.0 / np.sqrt(2.0))


def _gelu_exact(x):
    # matches torch.nn.GELU() default (erf-based, not tanh approximation)
    return 0.5 * x * (1.0 + lax.erf(x * INV_SQRT2))


def _round_up(a, m):
    return ((a + m - 1) // m) * m


# ---------------------------------------------------------------------------
# Parameter packing: fold BN, fuse skip-linears, group weights into per-in-width
# slabs, and pack every bias / head vector into a single (N, 1) column.
# ---------------------------------------------------------------------------
class _Packer:
    def __init__(self):
        self._slabs = {}       # in_width -> list of (out, in_width) arrays
        self._offs = {}        # in_width -> current row offset
        self._order = []       # in_widths in order of first appearance
        self._col = []         # column segments
        self._col_off = 0

    def add_weight(self, w):
        w = jnp.asarray(w, jnp.float32)
        out_f, in_f = w.shape
        assert out_f % 8 == 0, "weight out-width must be a multiple of 8 (sublane alignment)"
        if in_f not in self._slabs:
            self._slabs[in_f] = []
            self._offs[in_f] = 0
            self._order.append(in_f)
        r0 = self._offs[in_f]
        self._slabs[in_f].append(w)
        self._offs[in_f] += out_f
        return self._order.index(in_f), r0, out_f

    def add_col(self, v):
        v = jnp.asarray(v, jnp.float32).reshape(-1, 1)
        off, n = self._col_off, v.shape[0]
        pad = (-n) % 8                      # keep every segment start 8-aligned
        if pad:
            v = jnp.concatenate([v, jnp.zeros((pad, 1), jnp.float32)], axis=0)
        self._col.append(v)
        self._col_off += n + pad
        return off

    def finalize(self):
        slabs = [jnp.concatenate(self._slabs[k], axis=0) for k in self._order]
        col = jnp.concatenate(self._col, axis=0)
        return slabs, col


def pack_params(params_pt, input_size, hidden_sizes):
    """One-time constant folding / packing of PyTorch-form params for the kernel."""
    num_blocks = len(hidden_sizes) - 2
    for h in hidden_sizes:
        assert h % 8 == 0, "hidden sizes must be multiples of 8 (sublane-aligned slices)"

    it = iter(params_pt)
    P = _Packer()
    plan = {}

    def folded(w, b):  # Linear followed by eval-mode BN: fold the BN scale in
        return jnp.asarray(w, jnp.float32) * BN_SCALE, jnp.asarray(b, jnp.float32) * BN_SCALE

    def add_linear(w, b):
        slab, r0, out_f = P.add_weight(w)
        b0 = P.add_col(b)
        return (slab, r0, out_f, b0)

    # input layer (followed by BN)
    w, b = next(it)
    plan["input"] = add_linear(*folded(w, b))

    blocks = []
    for i in range(num_blocks):
        fi, fo = hidden_sizes[i], hidden_sizes[i + 1]
        (w1, b1), (w2, b2) = next(it), next(it)
        if fi != fo:
            ws, bs = next(it)                      # skip Linear (no BN after it)
            w1f, b1f = folded(w1, b1)
            wcat = jnp.concatenate([w1f, jnp.asarray(ws, jnp.float32)], axis=0)
            bcat = jnp.concatenate([b1f.reshape(-1), jnp.asarray(bs, jnp.float32).reshape(-1)])
            blocks.append(dict(kind="cat", m1=add_linear(wcat, bcat), split=fo,
                               m2=add_linear(*folded(w2, b2))))
        else:
            blocks.append(dict(kind="id", m1=add_linear(*folded(w1, b1)),
                               m2=add_linear(*folded(w2, b2))))
    plan["blocks"] = blocks

    # final hidden layer (followed by BN)
    w, b = next(it)
    plan["final"] = add_linear(*folded(w, b))

    # output head (no BN): weight (1, hidden) stored as a column for the VPU reduce
    w, b = next(it)
    w_off = P.add_col(jnp.asarray(w, jnp.float32).reshape(-1))
    b_off = P.add_col(jnp.asarray(b, jnp.float32).reshape(-1))
    plan["head"] = (w_off, hidden_sizes[-1], b_off)

    weight_slabs, col = P.finalize()
    return weight_slabs, col, plan


# ---------------------------------------------------------------------------
# Kernel: whole network per batch tile.  Activations are (features, batch_tile)
# with the batch axis on lanes; x arrives untransposed and is contracted via
# the MXU trans_b path.
# ---------------------------------------------------------------------------
def _make_kernel(plan, num_w_slabs):
    def kernel(*refs):
        x_ref = refs[0]                       # (batch_tile, input_size)
        w_refs = refs[1:1 + num_w_slabs]      # per-in-width weight slabs (rows, in)
        c_ref = refs[1 + num_w_slabs]         # packed bias / head column (N, 1)
        o_ref = refs[-1]                      # (1, batch_tile) lane-dense output

        def wb(meta):
            slab, r0, out_f, b0 = meta
            return w_refs[slab][r0:r0 + out_f, :], c_ref[b0:b0 + out_f, :]

        def linear(h, meta):                  # (out,in) @ (in,T) + (out,1)
            w, b = wb(meta)
            return jnp.dot(w, h, preferred_element_type=jnp.float32) + b

        # input layer: contract the shared feature axis of W (out,in) and x (T,in)
        # -> (out, T); no wrapper-side transpose of x.
        w_in, b_in = wb(plan["input"])
        z = lax.dot_general(w_in, x_ref[...], (((1,), (1,)), ((), ())),
                            preferred_element_type=jnp.float32) + b_in
        h = _gelu_exact(z)                    # Linear -> BN(folded) -> GELU -> Drop(identity)

        # residual blocks
        for blk in plan["blocks"]:
            if blk["kind"] == "cat":
                # fused matmul: rows [0:split] = lin1 (BN-folded), rows [split:] = skip
                z = linear(h, blk["m1"])
                s = blk["split"]              # multiple of 8 (asserted at pack time)
                t = _gelu_exact(z[:s])
                skip = z[s:]
            else:
                t = _gelu_exact(linear(h, blk["m1"]))
                skip = h
            t = _gelu_exact(linear(t, blk["m2"]))
            h = t + skip

        # final hidden layer
        h = _gelu_exact(linear(h, plan["final"]))

        # output head (width 1): VPU multiply + sublane reduce instead of N=1 MXU matmul.
        w_off, n, b_off = plan["head"]
        w_col = c_ref[w_off:w_off + n, :]                       # (hidden, 1)
        logits = jnp.sum(h * w_col, axis=0, keepdims=True) + c_ref[b_off:b_off + 1, :]
        o_ref[...] = jax.nn.sigmoid(logits)

    return kernel


def binary_melody_net_forward(x, params_pt, hidden_sizes, *, batch_tile=1024):
    B, input_size = x.shape
    weight_slabs, col, plan = pack_params(params_pt, input_size, hidden_sizes)

    # Batch tiling: keep the tile a multiple of 128 (lane-dense stores / MXU N alignment),
    # keep the grid >= 2 steps when the batch allows it (both v7x TensorCores busy), and
    # zero-pad the batch to a tile multiple instead of shrinking the tile.
    batch_tile = _round_up(max(128, batch_tile), 128)
    tile = min(batch_tile, max(128, _round_up(pl.cdiv(B, 2), 128)))
    Bp = _round_up(B, tile)
    if Bp != B:
        x = jnp.concatenate([x, jnp.zeros((Bp - B, input_size), x.dtype)], axis=0)
    grid = (Bp // tile,)

    kernel = _make_kernel(plan, len(weight_slabs))

    in_specs = [pl.BlockSpec((tile, input_size), lambda i: (i, 0))]
    for s in weight_slabs:                                       # grid-invariant, VMEM-resident
        in_specs.append(pl.BlockSpec(s.shape, lambda i: (0, 0)))
    in_specs.append(pl.BlockSpec(col.shape, lambda i: (0, 0)))   # packed bias/head column
    out_spec = pl.BlockSpec((1, tile), lambda i: (0, i))         # lane-dense output row

    out_row = pl.pallas_call(
        kernel,
        out_shape=jax.ShapeDtypeStruct((1, Bp), jnp.float32),
        grid=grid,
        in_specs=in_specs,
        out_specs=out_spec,
        compiler_params=pltpu.CompilerParams(dimension_semantics=("parallel",)),
    )(x, *weight_slabs, col)

    # (1, Bp) -> (Bp, 1) is a pure reshape (no data movement), then drop batch padding.
    return out_row.reshape(Bp, 1)[:B]


# ---------------------------------------------------------------------------
# Deterministic init mirroring _init_weights, and a pure-JAX eval-mode reference.
# ---------------------------------------------------------------------------
def init_params(key, input_size, hidden_sizes):
    """kaiming_normal_(fan_out, relu) weights, zero biases; PyTorch (out, in) orientation."""
    dims = [(input_size, hidden_sizes[0])]
    num_blocks = len(hidden_sizes) - 2
    for i in range(num_blocks):
        fi, fo = hidden_sizes[i], hidden_sizes[i + 1]
        dims.append((fi, fo))
        dims.append((fo, fo))
        if fi != fo:
            dims.append((fi, fo))
    dims.append((hidden_sizes[-2], hidden_sizes[-1]))
    dims.append((hidden_sizes[-1], 1))

    params = []
    keys = jax.random.split(key, len(dims))
    for k, (fi, fo) in zip(keys, dims):
        std = np.sqrt(2.0 / fo)  # kaiming_normal_(mode='fan_out', nonlinearity='relu')
        w = (std * jax.random.normal(k, (fo, fi))).astype(jnp.float32)
        b = jnp.zeros((fo,), jnp.float32)
        params.append((w, b))
    return params


def reference_forward(x, params_pt, hidden_sizes):
    """Pure-JAX reference with identical (eval-mode) semantics, standard (batch, feat) layout."""
    num_blocks = len(hidden_sizes) - 2
    it = iter(params_pt)

    def lin(h, wb):
        w, b = wb
        return jnp.dot(h, w.T) + b

    def lbg(h, wb):
        return _gelu_exact(lin(h, wb) * BN_SCALE)

    h = lbg(x, next(it))
    for i in range(num_blocks):
        wb1, wb2 = next(it), next(it)
        t = lbg(lbg(h, wb1), wb2)
        if hidden_sizes[i] != hidden_sizes[i + 1]:
            skip = lin(h, next(it))
        else:
            skip = h
        h = t + skip
    h = lbg(h, next(it))
    return jax.nn.sigmoid(lin(h, next(it)))


if __name__ == "__main__":
    key = jax.random.PRNGKey(0)
    k_x, k_p, k_b = jax.random.split(key, 3)

    input_size = 16
    hidden_sizes = [32, 32, 64, 32]       # 2 residual blocks: 32->32 Identity skip, 32->64 Linear skip
    dropout_rates = [0.1, 0.1, 0.1, 0.1]  # inert in eval-mode forward
    batch = 512                           # -> tile 256, grid of 2 parallel steps

    x = jax.random.normal(k_x, (batch, input_size), jnp.float32)
    params = init_params(k_p, input_size, hidden_sizes)
    # _init_weights zero-inits biases; perturb them slightly so the bias / BN-fold / concat
    # paths are actually exercised by the numerical check (forward semantics are unchanged).
    params = [
        (w, b + 0.05 * jax.random.normal(jax.random.fold_in(k_b, i), b.shape, jnp.float32))
        for i, (w, b) in enumerate(params)
    ]

    out = binary_melody_net_forward(x, params, hidden_sizes, batch_tile=1024)
    out = jax.block_until_ready(out)

    ref = reference_forward(x, params, hidden_sizes)
    assert out.shape == (batch, 1)
    assert np.allclose(np.asarray(out), np.asarray(ref), rtol=1e-4, atol=1e-5), (
        "Pallas output mismatches reference")

    print("KERNEL_OK")
</pallas_src>

<mosaic_0001>
module attributes {stable_mosaic.version = 11 : i64} {
  func.func @kernel(%arg0: i32, %arg1: memref<256x16xf32, #tpu.memory_space<vmem>>, %arg2: memref<32x16xf32, #tpu.memory_space<vmem>>, %arg3: memref<192x32xf32, #tpu.memory_space<vmem>>, %arg4: memref<96x64xf32, #tpu.memory_space<vmem>>, %arg5: memref<360x1xf32, #tpu.memory_space<vmem>>, %arg6: memref<1x256xf32, #tpu.memory_space<vmem>>) attributes {dimension_semantics = [#tpu.dimension_semantics<parallel>], iteration_bounds = array<i64: 2>, scalar_prefetch = 0 : i64, scratch_operands = 0 : i64, tpu.core_type = #tpu.core_type<tc>, window_params = [{transform_indices = @transform_0, window_bounds = array<i64: 256, 16>}, {pipeline_mode = #tpu.pipeline_mode<synchronous>, transform_indices = @transform_1, window_bounds = array<i64: 32, 16>}, {pipeline_mode = #tpu.pipeline_mode<synchronous>, transform_indices = @transform_2, window_bounds = array<i64: 192, 32>}, {pipeline_mode = #tpu.pipeline_mode<synchronous>, transform_indices = @transform_3, window_bounds = array<i64: 96, 64>}, {pipeline_mode = #tpu.pipeline_mode<synchronous>, transform_indices = @transform_4, window_bounds = array<i64: 360, 1>}, {transform_indices = @transform_5, window_bounds = array<i64: 1, 256>}]} {
    %c0 = arith.constant 0 : index
    %c0_0 = arith.constant 0 : index
    %0 = vector.load %arg2[%c0, %c0_0] : memref<32x16xf32, #tpu.memory_space<vmem>>, vector<32x16xf32>
    %c0_1 = arith.constant 0 : index
    %c0_2 = arith.constant 0 : index
    %1 = vector.load %arg5[%c0_1, %c0_2] : memref<360x1xf32, #tpu.memory_space<vmem>>, vector<32x1xf32>
    %c0_3 = arith.constant 0 : index
    %c0_4 = arith.constant 0 : index
    %2 = vector.load %arg1[%c0_3, %c0_4] : memref<256x16xf32, #tpu.memory_space<vmem>>, vector<256x16xf32>
    %cst = arith.constant dense<0.000000e+00> : vector<32x256xf32>
    %3 = tpu.matmul %0, %2, %cst {dimension_numbers = #tpu.dot_dimension_numbers<[1], [1], [0], [0], [0, 0, 1, 0], [], []>} : vector<32x16xf32>, vector<256x16xf32>, vector<32x256xf32> -> vector<32x256xf32>
    %4 = vector.broadcast %1 : vector<32x1xf32> to vector<32x256xf32>
    %5 = arith.addf %3, %4 : vector<32x256xf32>
    %cst_5 = arith.constant 5.000000e-01 : f32
    %6 = vector.broadcast %cst_5 : f32 to vector<32x256xf32>
    %7 = arith.mulf %6, %5 : vector<32x256xf32>
    %cst_6 = arith.constant 0.707106769 : f32
    %8 = vector.broadcast %cst_6 : f32 to vector<32x256xf32>
    %9 = arith.mulf %5, %8 : vector<32x256xf32>
    %10 = math.erf %9 : vector<32x256xf32>
    %cst_7 = arith.constant 1.000000e+00 : f32
    %11 = vector.broadcast %cst_7 : f32 to vector<32x256xf32>
    %12 = arith.addf %11, %10 : vector<32x256xf32>
    %13 = arith.mulf %7, %12 : vector<32x256xf32>
    %c0_8 = arith.constant 0 : index
    %c0_9 = arith.constant 0 : index
    %14 = vector.load %arg3[%c0_8, %c0_9] : memref<192x32xf32, #tpu.memory_space<vmem>>, vector<32x32xf32>
    %c32 = arith.constant 32 : index
    %c0_10 = arith.constant 0 : index
    %15 = vector.load %arg5[%c32, %c0_10] : memref<360x1xf32, #tpu.memory_space<vmem>>, vector<32x1xf32>
    %cst_11 = arith.constant dense<0.000000e+00> : vector<32x256xf32>
    %16 = tpu.matmul %14, %13, %cst_11 {dimension_numbers = #tpu.dot_dimension_numbers<[1], [0], [0], [1], [0, 0, 1, 1], [], []>} : vector<32x32xf32>, vector<32x256xf32>, vector<32x256xf32> -> vector<32x256xf32>
    %17 = vector.broadcast %15 : vector<32x1xf32> to vector<32x256xf32>
    %18 = arith.addf %16, %17 : vector<32x256xf32>
    %cst_12 = arith.constant 5.000000e-01 : f32
    %19 = vector.broadcast %cst_12 : f32 to vector<32x256xf32>
    %20 = arith.mulf %19, %18 : vector<32x256xf32>
    %cst_13 = arith.constant 0.707106769 : f32
    %21 = vector.broadcast %cst_13 : f32 to vector<32x256xf32>
    %22 = arith.mulf %18, %21 : vector<32x256xf32>
    %23 = math.erf %22 : vector<32x256xf32>
    %cst_14 = arith.constant 1.000000e+00 : f32
    %24 = vector.broadcast %cst_14 : f32 to vector<32x256xf32>
    %25 = arith.addf %24, %23 : vector<32x256xf32>
    %26 = arith.mulf %20, %25 : vector<32x256xf32>
    %c32_15 = arith.constant 32 : index
    %c0_16 = arith.constant 0 : index
    %27 = vector.load %arg3[%c32_15, %c0_16] : memref<192x32xf32, #tpu.memory_space<vmem>>, vector<32x32xf32>
    %c64 = arith.constant 64 : index
    %c0_17 = arith.constant 0 : index
    %28 = vector.load %arg5[%c64, %c0_17] : memref<360x1xf32, #tpu.memory_space<vmem>>, vector<32x1xf32>
    %cst_18 = arith.constant dense<0.000000e+00> : vector<32x256xf32>
    %29 = tpu.matmul %27, %26, %cst_18 {dimension_numbers = #tpu.dot_dimension_numbers<[1], [0], [0], [1], [0, 0, 1, 1], [], []>} : vector<32x32xf32>, vector<32x256xf32>, vector<32x256xf32> -> vector<32x256xf32>
    %30 = vector.broadcast %28 : vector<32x1xf32> to vector<32x256xf32>
    %31 = arith.addf %29, %30 : vector<32x256xf32>
    %cst_19 = arith.constant 5.000000e-01 : f32
    %32 = vector.broadcast %cst_19 : f32 to vector<32x256xf32>
    %33 = arith.mulf %32, %31 : vector<32x256xf32>
    %cst_20 = arith.constant 0.707106769 : f32
    %34 = vector.broadcast %cst_20 : f32 to vector<32x256xf32>
    %35 = arith.mulf %31, %34 : vector<32x256xf32>
    %36 = math.erf %35 : vector<32x256xf32>
    %cst_21 = arith.constant 1.000000e+00 : f32
    %37 = vector.broadcast %cst_21 : f32 to vector<32x256xf32>
    %38 = arith.addf %37, %36 : vector<32x256xf32>
    %39 = arith.mulf %33, %38 : vector<32x256xf32>
    %40 = arith.addf %39, %13 : vector<32x256xf32>
    %c64_22 = arith.constant 64 : index
    %c0_23 = arith.constant 0 : index
    %41 = vector.load %arg3[%c64_22, %c0_23] : memref<192x32xf32, #tpu.memory_space<vmem>>, vector<128x32xf32>
    %c96 = arith.constant 96 : index
    %c0_24 = arith.constant 0 : index
    %42 = vector.load %arg5[%c96, %c0_24] : memref<360x1xf32, #tpu.memory_space<vmem>>, vector<128x1xf32>
    %cst_25 = arith.constant dense<0.000000e+00> : vector<128x256xf32>
    %43 = tpu.matmul %41, %40, %cst_25 {dimension_numbers = #tpu.dot_dimension_numbers<[1], [0], [0], [1], [0, 0, 1, 1], [], []>} : vector<128x32xf32>, vector<32x256xf32>, vector<128x256xf32> -> vector<128x256xf32>
    %44 = vector.broadcast %42 : vector<128x1xf32> to vector<128x256xf32>
    %45 = arith.addf %43, %44 : vector<128x256xf32>
    %46 = vector.extract_strided_slice %45 {offsets = [0, 0], sizes = [64, 256], strides = [1, 1]} : vector<128x256xf32> to vector<64x256xf32>
    %cst_26 = arith.constant 5.000000e-01 : f32
    %47 = vector.broadcast %cst_26 : f32 to vector<64x256xf32>
    %48 = arith.mulf %47, %46 : vector<64x256xf32>
    %cst_27 = arith.constant 0.707106769 : f32
    %49 = vector.broadcast %cst_27 : f32 to vector<64x256xf32>
    %50 = arith.mulf %46, %49 : vector<64x256xf32>
    %51 = math.erf %50 : vector<64x256xf32>
    %cst_28 = arith.constant 1.000000e+00 : f32
    %52 = vector.broadcast %cst_28 : f32 to vector<64x256xf32>
    %53 = arith.addf %52, %51 : vector<64x256xf32>
    %54 = arith.mulf %48, %53 : vector<64x256xf32>
    %55 = vector.extract_strided_slice %45 {offsets = [64, 0], sizes = [64, 256], strides = [1, 1]} : vector<128x256xf32> to vector<64x256xf32>
    %c0_29 = arith.constant 0 : index
    %c0_30 = arith.constant 0 : index
    %56 = vector.load %arg4[%c0_29, %c0_30] : memref<96x64xf32, #tpu.memory_space<vmem>>, vector<64x64xf32>
    %c224 = arith.constant 224 : index
    %c0_31 = arith.constant 0 : index
    %57 = vector.load %arg5[%c224, %c0_31] : memref<360x1xf32, #tpu.memory_space<vmem>>, vector<64x1xf32>
    %cst_32 = arith.constant dense<0.000000e+00> : vector<64x256xf32>
    %58 = tpu.matmul %56, %54, %cst_32 {dimension_numbers = #tpu.dot_dimension_numbers<[1], [0], [0], [1], [0, 0, 1, 1], [], []>} : vector<64x64xf32>, vector<64x256xf32>, vector<64x256xf32> -> vector<64x256xf32>
    %59 = vector.broadcast %57 : vector<64x1xf32> to vector<64x256xf32>
    %60 = arith.addf %58, %59 : vector<64x256xf32>
    %cst_33 = arith.constant 5.000000e-01 : f32
    %61 = vector.broadcast %cst_33 : f32 to vector<64x256xf32>
    %62 = arith.mulf %61, %60 : vector<64x256xf32>
    %cst_34 = arith.constant 0.707106769 : f32
    %63 = vector.broadcast %cst_34 : f32 to vector<64x256xf32>
    %64 = arith.mulf %60, %63 : vector<64x256xf32>
    %65 = math.erf %64 : vector<64x256xf32>
    %cst_35 = arith.constant 1.000000e+00 : f32
    %66 = vector.broadcast %cst_35 : f32 to vector<64x256xf32>
    %67 = arith.addf %66, %65 : vector<64x256xf32>
    %68 = arith.mulf %62, %67 : vector<64x256xf32>
    %69 = arith.addf %68, %55 : vector<64x256xf32>
    %c64_36 = arith.constant 64 : index
    %c0_37 = arith.constant 0 : index
    %70 = vector.load %arg4[%c64_36, %c0_37] : memref<96x64xf32, #tpu.memory_space<vmem>>, vector<32x64xf32>
    %c288 = arith.constant 288 : index
    %c0_38 = arith.constant 0 : index
    %71 = vector.load %arg5[%c288, %c0_38] : memref<360x1xf32, #tpu.memory_space<vmem>>, vector<32x1xf32>
    %cst_39 = arith.constant dense<0.000000e+00> : vector<32x256xf32>
    %72 = tpu.matmul %70, %69, %cst_39 {dimension_numbers = #tpu.dot_dimension_numbers<[1], [0], [0], [1], [0, 0, 1, 1], [], []>} : vector<32x64xf32>, vector<64x256xf32>, vector<32x256xf32> -> vector<32x256xf32>
    %73 = vector.broadcast %71 : vector<32x1xf32> to vector<32x256xf32>
    %74 = arith.addf %72, %73 : vector<32x256xf32>
    %cst_40 = arith.constant 5.000000e-01 : f32
    %75 = vector.broadcast %cst_40 : f32 to vector<32x256xf32>
    %76 = arith.mulf %75, %74 : vector<32x256xf32>
    %cst_41 = arith.constant 0.707106769 : f32
    %77 = vector.broadcast %cst_41 : f32 to vector<32x256xf32>
    %78 = arith.mulf %74, %77 : vector<32x256xf32>
    %79 = math.erf %78 : vector<32x256xf32>
    %cst_42 = arith.constant 1.000000e+00 : f32
    %80 = vector.broadcast %cst_42 : f32 to vector<32x256xf32>
    %81 = arith.addf %80, %79 : vector<32x256xf32>
    %82 = arith.mulf %76, %81 : vector<32x256xf32>
    %c320 = arith.constant 320 : index
    %c0_43 = arith.constant 0 : index
    %83 = vector.load %arg5[%c320, %c0_43] : memref<360x1xf32, #tpu.memory_space<vmem>>, vector<32x1xf32>
    %84 = vector.broadcast %83 : vector<32x1xf32> to vector<32x256xf32>
    %85 = arith.mulf %82, %84 : vector<32x256xf32>
    %cst_44 = arith.constant dense<0.000000e+00> : vector<256xf32>
    %86 = vector.multi_reduction <add>, %85, %cst_44 [0] : vector<32x256xf32> to vector<256xf32>
    %87 = vector.shape_cast %86 : vector<256xf32> to vector<1x256xf32>
    %c352 = arith.constant 352 : index
    %c0_45 = arith.constant 0 : index
    %88 = vector.load %arg5[%c352, %c0_45] : memref<360x1xf32, #tpu.memory_space<vmem>>, vector<1x1xf32>
    %89 = vector.broadcast %88 : vector<1x1xf32> to vector<1x256xf32>
    %90 = arith.addf %87, %89 : vector<1x256xf32>
    %91 = arith.negf %90 : vector<1x256xf32>
    %92 = math.exp %91 : vector<1x256xf32>
    %cst_46 = arith.constant 1.000000e+00 : f32
    %93 = vector.broadcast %cst_46 : f32 to vector<1x256xf32>
    %94 = arith.addf %93, %92 : vector<1x256xf32>
    %95 = arith.divf %93, %94 : vector<1x256xf32>
    %c0_47 = arith.constant 0 : index
    %c0_48 = arith.constant 0 : index
    %96 = vector.load %arg6[%c0_47, %c0_48] : memref<1x256xf32, #tpu.memory_space<vmem>>, vector<1x256xf32>
    tpu.vector_store %arg6[%c0_47, %c0_48], %95 {strides = array<i32>} : memref<1x256xf32, #tpu.memory_space<vmem>>, vector<1x256xf32>,
    return
  }
  func.func @transform_0(%arg0: i32) -> (i32, i32) {
    %c0_i32 = arith.constant 0 : i32
    %c0_i32_0 = arith.constant 0 : i32
    return %arg0, %c0_i32 : i32, i32
  }
  func.func @transform_1(%arg0: i32) -> (i32, i32) {
    %c0_i32 = arith.constant 0 : i32
    %c0_i32_0 = arith.constant 0 : i32
    %c0_i32_1 = arith.constant 0 : i32
    return %c0_i32, %c0_i32_0 : i32, i32
  }
  func.func @transform_2(%arg0: i32) -> (i32, i32) {
    %c0_i32 = arith.constant 0 : i32
    %c0_i32_0 = arith.constant 0 : i32
    %c0_i32_1 = arith.constant 0 : i32
    return %c0_i32, %c0_i32_0 : i32, i32
  }
  func.func @transform_3(%arg0: i32) -> (i32, i32) {
    %c0_i32 = arith.constant 0 : i32
    %c0_i32_0 = arith.constant 0 : i32
    %c0_i32_1 = arith.constant 0 : i32
    return %c0_i32, %c0_i32_0 : i32, i32
  }
  func.func @transform_4(%arg0: i32) -> (i32, i32) {
    %c0_i32 = arith.constant 0 : i32
    %c0_i32_0 = arith.constant 0 : i32
    %c0_i32_1 = arith.constant 0 : i32
    return %c0_i32, %c0_i32_0 : i32, i32
  }
  func.func @transform_5(%arg0: i32) -> (i32, i32) {
    %c0_i32 = arith.constant 0 : i32
    %c0_i32_0 = arith.constant 0 : i32
    return %c0_i32, %arg0 : i32, i32
  }
}

</mosaic_0001>

<bundles_post_ra>
// kernel: tpu_custom_call.1
= control target key start
LH: loop header
LB: loop body
LE: loop exit
PB: predicated region body
PF: predicated region fallthrough
CT: control target
= control target key end

     0   :  { %10 = vsyncpa [#allocation3], 0  ;;  %s8008_s0 = inlined_call_operand.vmem [shape: f32[512,16], index: 0, kind: input, shape index: {}]   ;;  %s8009_s1 = inlined_call_operand.vmem [shape: f32[32,16], index: 1, kind: input, shape index: {}]   ;;  %s8010_s2 = inlined_call_operand.vmem [shape: f32[192,32], index: 2, kind: input, shape index: {}]   ;;  %s8011_s3 = inlined_call_operand.vmem [shape: f32[96,64], index: 3, kind: input, shape index: {}]   ;;  %s8012_s4 = inlined_call_operand.vmem [shape: f32[360,1], index: 4, kind: input, shape index: {}]   ;;  %s8013_s5 = inlined_call_operand.hbm [shape: f32[1,512], index: 5, kind: output, shape index: {}]  }
   0x1   :  { %12 = vsyncpa [#allocation3 + $0x1], 0  ;;  %s4686_s18 = smov 0   ;;  %s4688_s19 = smov 0  }
   0x2   :  { %s4690_s20 = smov 0   ;;  %s4692_s21 = smov 0  }
   0x3 LB: > { %s4707_s22 = sadd.s32 4294967295, %s4653_s21   ;;  %s4223_s23 = sadd.s32 4294967294, %s4653_s21   ;;  %s4653_s21 = sphi %s4692_s21, %s8280_s21   ;;  %s4649_s20 = sphi %s4690_s20, %s8279_s20   ;;  %s4645_s19 = sphi %s4688_s19, %s8278_s19   ;;  %s4641_s18 = sphi %s4686_s18, %s8277_s18  }
   0x4   : > { %s4711_s24 = sadd.s32 1, %s4653_s21   ;;  %s135_s25 = sadd.s32 1, %s4649_s20 }
   0x5   : > { %s132_s26 = ssub.s32 %s4653_s21, %s4711_s24  ;;  %p145_p0 = scmp.ne.s32.totalorder %s4649_s20, %s4645_s19 }
   0x6   : > { %p133_p1 = scmp.eq.s32.totalorder %s132_s26, 0  ;;  %p146_p2 = scmp.eq.s32.totalorder %s4707_s22, 1 }
   0x7   : > { %p151_p3 = scmp.ne.s32.totalorder %s4645_s19, %s4641_s18  ;;  %p152_p4 = scmp.eq.s32.totalorder %s4223_s23, 1 }
   0x8   : > { %s4722_s27 = scalar_select %p133_p1, %s4649_s20, %s135_s25  }
   0x9   : > { %p4724_p5 = por %p146_p2, %p145_p0  ;;  %p4728_p6 = por %p152_p4, %p151_p3 }
   0xa   : > { %p4226_p7 = scmp.ge.s32.totalorder %s4653_s21, 1  ;;  %p191_p8 = scmp.lt.s32.totalorder %s4653_s21, 3 }
   0xc   : > { %p192_p9 = pnand %p4226_p7, %p191_p8 }
   0xe   : > { %195 = sbr.rel (%p192_p9) target bundleno = 1747 (0x6d3), region = 40 }
  0x13   : > { %v233_v0 = vld [vmem:[%s8012_s4 + $0x18] sm:$0xff]  ;;  %v231_v1 = vld [vmem:[%s8012_s4 + $0x8] sm:$0xff]  ;;  %s4228_s9 = sshll.u32 %s4707_s22, 5  ;;  %v4655_v2 = vmov 0   ;;  %vm286_vm0 = vcmask 130048   ;;  %v232_v3 = vld [vmem:[%s8012_s4 + $0x10] sm:$0xff] }
  0x14   : > { %4453 = vset.pattern.permute.xlu1 %v4655_v2  ;;  %4452 = vset.pattern.permute.xlu0 %v4655_v2  ;;  %p220_p10 = scmp.lt.s32.totalorder %s4228_s9, 63  ;;  %v230_v6 = vld [vmem:[%s8012_s4] sm:$0xff]  ;;  %v810_v11 = vld [vmem:[%s8012_s4 + $0x28] sm:$0xff]  ;;  %v1262_v17 = vld [vmem:[%s8012_s4 + $0x50] sm:$0xff]  ;;  %s216_s30 = sand.u32 1, %s4645_s19  }
  0x15   : > { %283 = vperm.xlu0 %4452, %v233_v0   ;;  %273 = vperm.xlu1 %4453, %v231_v1   ;;  %v809_v12 = vld [vmem:[%s8012_s4 + $0x20] sm:$0xff]  ;;  %v1261_v18 = vld [vmem:[%s8012_s4 + $0x48] sm:$0xff]  ;;  %v1737_v23 = vld [vmem:[%s8012_s4 + $0x98] sm:$0xff]  ;;  %s7966_s6 = sshll.u32 %s216_s30, 1  ;;  %s4409_s7 = sshll.u32 %s4707_s22, 1 }
  0x16   : > { %s8282_s9 = smov (!%p220_p10, %s4228_s9), 63  ;;  %4454 = vset.pattern.permute.xlu2 %v4655_v2  ;;  %v1736_v24 = vld [vmem:[%s8012_s4 + $0x90] sm:$0xff]  ;;  %v1734_v29 = vld [vmem:[%s8012_s4 + $0x80] sm:$0xff]  ;;  %v1733_v30 = vld [vmem:[%s8012_s4 + $0x78] sm:$0xff]  ;;  %s218_s22 = scalar_lea.vmem [#allocation2], %s7966_s6 }
  0x17   : > { %s4229_s10 = sshll.u32 %s8282_s9, 3  ;;  %v1731_v35 = vld [vmem:[%s8012_s4 + $0x68] sm:$0xff]  ;;  %v1730_v36 = vld [vmem:[%s8012_s4 + $0x60] sm:$0xff]  ;;  %v2722_v41 = vld [vmem:[%s8012_s4 + $0x110] sm:$0xff]  ;;  %s4161_s11 = sshll.u32 %s218_s22, 4  ;;  %s4162_s11 = int_to_ptr.vmem [resolvable:$true] %s4161_s11 }
  0x18   : > { %s4744_s13 = scalar_lea.vmem %s8008_s0, %s4229_s10  ;;  %v2721_v42 = vld [vmem:[%s8012_s4 + $0x108] sm:$0xff]  ;;  %v2719_v47 = vld [vmem:[%s8012_s4 + $0xf8] sm:$0xff]  ;;  %v2718_v48 = vld [vmem:[%s8012_s4 + $0xf0] sm:$0xff]  ;;  %s4159_s10 = scalar_lea.hbm %s8013_s5, %s4409_s7 }
  0x19   : > { %v249_v4 = vld [vmem:[%s4744_s13 + $0x78] sm:$0xff]  ;;  %v248_v7 = vld [vmem:[%s4744_s13 + $0x70] sm:$0xff]  ;;  %v247_v9 = vld [vmem:[%s4744_s13 + $0x68] sm:$0xff]  ;;  %s4163_s12 = sshll.u32 %s4159_s10, 4  ;;  %s4149_s14 = scalar_lea.sflag [#allocation3], %s216_s30  ;;  %s4164_s12 = int_to_ptr.hbm [resolvable:$true] %s4163_s12 }
  0x1a   : > { %v265_v5 = vld [vmem:[%s4744_s13 + $0xf8] sm:$0xff]  ;;  %4230 = vmatpush.xpose.msk.msra.mxu0 %vm286_vm0, %v249_v4  ;;  %v264_v8 = vld [vmem:[%s4744_s13 + $0xf0] sm:$0xff]  ;;  %v263_v10 = vld [vmem:[%s4744_s13 + $0xe8] sm:$0xff]  ;;  %s4605_s15 = sshra.s32 %s4164_s12, 4  ;;  %s4611_s25 = scalar_lea.hbm %s8013_s5, 4  ;;  %s4606_s15 = int_to_ptr.hbm [resolvable:$true] %s4605_s15 }
  0x1b   : > { %4250 = vmatpush.xpose.msk.msra.mxu1 %vm286_vm0, %v265_v5  ;;  %v246_v13 = vld [vmem:[%s4744_s13 + $0x60] sm:$0xff]  ;;  %v245_v15 = vld [vmem:[%s4744_s13 + $0x58] sm:$0xff]  ;;  %v244_v19 = vld [vmem:[%s4744_s13 + $0x50] sm:$0xff]  ;;  %s4607_s16 = scalar_lea.hbm %s4606_s15, 2  ;;  %p4612_p0 = scmp.lt.s32.totalorder %s4606_s15, %s8013_s5 }
  0x1c   : > { %v262_v14 = vld [vmem:[%s4744_s13 + $0xe0] sm:$0xff]  ;;  %v261_v16 = vld [vmem:[%s4744_s13 + $0xd8] sm:$0xff]  ;;  %v260_v20 = vld [vmem:[%s4744_s13 + $0xd0] sm:$0xff]  ;;  %p4608_p11 = scmp.ne.s32.totalorder %s4606_s15, %s4607_s16  ;;  %p4613_p1 = scmp.lt.s32.totalorder %s4611_s25, %s4607_s16 }
  0x1d   : > { %278 = vperm.xlu0 %4452, %v232_v3   ;;  %268 = vperm.xlu1 %4453, %v230_v6   ;;  %v243_v21 = vld [vmem:[%s4744_s13 + $0x48] sm:$0xff]  ;;  %v242_v25 = vld [vmem:[%s4744_s13 + $0x40] sm:$0xff]  ;;  %v241_v27 = vld [vmem:[%s4744_s13 + $0x38] sm:$0xff] }
  0x1e   : > { %4231 = vmatpush.xpose.msk.msra.mxu0 %vm286_vm0, %v248_v7  ;;  %v259_v22 = vld [vmem:[%s4744_s13 + $0xc8] sm:$0xff]  ;;  %v258_v26 = vld [vmem:[%s4744_s13 + $0xc0] sm:$0xff]  ;;  %v257_v28 = vld [vmem:[%s4744_s13 + $0xb8] sm:$0xff]  ;;  %p4609_p12 = pnand %p4608_p11, %p4724_p5  ;;  %p4614_p2 = por %p4613_p1, %p4612_p0 }
  0x1f   : > { %4251 = vmatpush.xpose.msk.msra.mxu1 %vm286_vm0, %v264_v8  ;;  %v240_v31 = vld [vmem:[%s4744_s13 + $0x30] sm:$0xff]  ;;  %v239_v33 = vld [vmem:[%s4744_s13 + $0x28] sm:$0xff]  ;;  %v238_v37 = vld [vmem:[%s4744_s13 + $0x20] sm:$0xff] }
  0x20   : > { %v256_v32 = vld [vmem:[%s4744_s13 + $0xb0] sm:$0xff]  ;;  %v255_v34 = vld [vmem:[%s4744_s13 + $0xa8] sm:$0xff]  ;;  %v254_v38 = vld [vmem:[%s4744_s13 + $0xa0] sm:$0xff]  ;;  %p4610_p13 = pneg %p4609_p12 }
  0x21   : > { %v237_v39 = vld [vmem:[%s4744_s13 + $0x18] sm:$0xff]  ;;  %v236_v43 = vld [vmem:[%s4744_s13 + $0x10] sm:$0xff]  ;;  %v235_v45 = vld [vmem:[%s4744_s13 + $0x8] sm:$0xff] }
  0x22   : > { %4232 = vmatpush.xpose.msk.msra.mxu0 %vm286_vm0, %v247_v9  ;;  %v253_v40 = vld [vmem:[%s4744_s13 + $0x98] sm:$0xff]  ;;  %v252_v44 = vld [vmem:[%s4744_s13 + $0x90] sm:$0xff]  ;;  %v251_v46 = vld [vmem:[%s4744_s13 + $0x88] sm:$0xff]  ;;  %p4615_p3 = pnand %p4614_p2, %p4610_p13 }
  0x23   : > { %4252 = vmatpush.xpose.msk.msra.mxu1 %vm286_vm0, %v263_v10  ;;  %v234_v49 = vld [vmem:[%s4744_s13] sm:$0xff]  ;;  %v1745_v53 = vld [vmem:[%s8012_s4 + $0xd8] sm:$0xff]  ;;  %v227_v54 = vld [vmem:[%s8009_s1 + $0x8] sm:$0xff] }
  0x24   : > { %v250_v50 = vld [vmem:[%s4744_s13 + $0x80] sm:$0xff]  ;;  %v1743_v55 = vld [vmem:[%s8012_s4 + $0xc8] sm:$0xff]  ;;  %v228_v57 = vld [vmem:[%s8009_s1 + $0x10] sm:$0xff] }
  0x25   : > { %820 = vperm.xlu0 %4452, %v810_v11   ;;  %815 = vperm.xlu1 %4453, %v809_v12   ;;  %v226_v51 = vld [vmem:[%s8009_s1] sm:$0xff]  ;;  %v1740_v58 = vld [vmem:[%s8012_s4 + $0xb0] sm:$0xff]  ;;  %v1739_v59 = vld [vmem:[%s8012_s4 + $0xa8] sm:$0xff] }
  0x26   : > { %4233 = vmatpush.xpose.msk.msra.mxu0 %vm286_vm0, %v246_v13  ;;  %v2716_v52 = vld [vmem:[%s8012_s4 + $0xe0] sm:$0xff]  ;;  %v229_v60 = vld [vmem:[%s8009_s1 + $0x18] sm:$0xff]  ;;  %v3596_v62 = vld [vmem:[%s8012_s4 + $0x128] sm:$0xff] }
  0x27   : > { %4253 = vmatpush.xpose.msk.msra.mxu1 %vm286_vm0, %v262_v14  ;;  %v1742_v56 = vld [vmem:[%s8012_s4 + $0xc0] sm:$0xff]  ;;  %v3598_v63 = vld [vmem:[%s8012_s4 + $0x138] sm:$0xff]  ;;  %v4043_v1 = vld [vmem:[%s8012_s4 + $0x150] sm:$0xff] }
  0x28   : > { %v3595_v61 = vld [vmem:[%s8012_s4 + $0x120] sm:$0xff]  ;;  %v4044_v2 = vld [vmem:[%s8012_s4 + $0x158] sm:$0xff] }
  0x29   : > { %v4041_v0 = vld [vmem:[%s8012_s4 + $0x140] sm:$0xff]  ;;  %v812_v6 = vld [vmem:[%s8012_s4 + $0x38] sm:$0xff] }
  0x2a   : > { %4234 = vmatpush.xpose.msk.msra.mxu0 %vm286_vm0, %v245_v15  ;;  %830 = vperm.xlu2 %4454, %v812_v6  }
  0x2b   : > { %4254 = vmatpush.xpose.msk.msra.mxu1 %vm286_vm0, %v261_v16 }
  0x2d   : > { %1276 = vperm.xlu0 %4452, %v1262_v17   ;;  %1271 = vperm.xlu1 %4453, %v1261_v18  }
  0x2e   : > { %4235 = vmatpush.xpose.msk.msra.mxu0 %vm286_vm0, %v244_v19  ;;  %v811_v19 = vld [vmem:[%s8012_s4 + $0x30] sm:$0xff] }
  0x2f   : > { %4255 = vmatpush.xpose.msk.msra.mxu1 %vm286_vm0, %v260_v20 }
  0x32   : > { %4236 = vmatpush.xpose.msk.msra.mxu0 %vm286_vm0, %v243_v21  ;;  %825 = vperm.xlu2 %4454, %v811_v19  }
  0x33   : > { %4256 = vmatpush.xpose.msk.msra.mxu1 %vm286_vm0, %v259_v22 }
  0x35   : > { %1783 = vperm.xlu0 %4452, %v1737_v23   ;;  %1778 = vperm.xlu1 %4453, %v1736_v24  }
  0x36   : > { %4237 = vmatpush.xpose.msk.msra.mxu0 %vm286_vm0, %v242_v25 }
  0x37   : > { %4257 = vmatpush.xpose.msk.msra.mxu1 %vm286_vm0, %v258_v26 }
  0x3a   : > { %4238 = vmatpush.xpose.msk.msra.mxu0 %vm286_vm0, %v241_v27 }
  0x3b   : > { %4258 = vmatpush.xpose.msk.msra.mxu1 %vm286_vm0, %v257_v28 }
  0x3d   : > { %1768 = vperm.xlu0 %4452, %v1734_v29   ;;  %1763 = vperm.xlu1 %4453, %v1733_v30  }
  0x3e   : > { %4239 = vmatpush.xpose.msk.msra.mxu0 %vm286_vm0, %v240_v31 }
  0x3f   : > { %4259 = vmatpush.xpose.msk.msra.mxu1 %vm286_vm0, %v256_v32 }
  0x42   : > { %4240 = vmatpush.xpose.msk.msra.mxu0 %vm286_vm0, %v239_v33 }
  0x43   : > { %4260 = vmatpush.xpose.msk.msra.mxu1 %vm286_vm0, %v255_v34 }
  0x45   : > { %1753 = vperm.xlu0 %4452, %v1731_v35   ;;  %1748 = vperm.xlu1 %4453, %v1730_v36  }
  0x46   : > { %4241 = vmatpush.xpose.msk.msra.mxu0 %vm286_vm0, %v238_v37  ;;  %v1263_v37 = vld [vmem:[%s8012_s4 + $0x58] sm:$0xff] }
  0x47   : > { %4261 = vmatpush.xpose.msk.msra.mxu1 %vm286_vm0, %v254_v38  ;;  %1281 = vperm.xlu2 %4454, %v1263_v37  }
  0x4a   : > { %4242 = vmatpush.xpose.msk.msra.mxu0 %vm286_vm0, %v237_v39 }
  0x4b   : > { %4262 = vmatpush.xpose.msk.msra.mxu1 %vm286_vm0, %v253_v40 }
  0x4d   : > { %2756 = vperm.xlu0 %4452, %v2722_v41   ;;  %2751 = vperm.xlu1 %4453, %v2721_v42  }
  0x4e   : > { %4243 = vmatpush.xpose.msk.msra.mxu0 %vm286_vm0, %v236_v43 }
  0x4f   : > { %4263 = vmatpush.xpose.msk.msra.mxu1 %vm286_vm0, %v252_v44 }
  0x52   : > { %4244 = vmatpush.xpose.msk.msra.mxu0 %vm286_vm0, %v235_v45 }
  0x53   : > { %4264 = vmatpush.xpose.msk.msra.mxu1 %vm286_vm0, %v251_v46 }
  0x55   : > { %2741 = vperm.xlu0 %4452, %v2719_v47   ;;  %2736 = vperm.xlu1 %4453, %v2718_v48  }
  0x56   : > { %4245 = vmatpush.xpose.msk.msra.mxu0 %vm286_vm0, %v234_v49 }
  0x57   : > { %4265 = vmatpush.xpose.msk.msra.mxu1 %vm286_vm0, %v250_v50 }
  0x59   : > { %4246 = vmatmul.msk.f32.vlgmr.msra.gmra.mxu0 %vm286_vm0, %v226_v51 }
  0x5a   : > { %4266 = vmatmul.msk.f32.vlgmr.msra.gmra.mxu1 %vm286_vm0, %v226_v51 }
  0x5d   : > { %2726 = vperm.xlu0 %4452, %v2716_v52   ;;  %1823 = vperm.xlu1 %4453, %v1745_v53  }
  0x61   : > { %4247 = vmatmul.msk.f32.gmra.mxu0 %vm286_vm0, %v227_v54 }
  0x62   : > { %4267 = vmatmul.msk.f32.gmra.mxu1 %vm286_vm0, %v227_v54  ;;  %v1260_v54 = vld [vmem:[%s8012_s4 + $0x40] sm:$0xff] }
  0x63   : > { %1266 = vperm.xlu2 %4454, %v1260_v54  }
  0x65   : > { %1813 = vperm.xlu0 %4452, %v1743_v55   ;;  %1808 = vperm.xlu1 %4453, %v1742_v56  }
  0x69   : > { %4248 = vmatmul.msk.f32.gmra.mxu0 %vm286_vm0, %v228_v57 }
  0x6a   : > { %4268 = vmatmul.msk.f32.gmra.mxu1 %vm286_vm0, %v228_v57 }
  0x6d   : > { %1798 = vperm.xlu0 %4452, %v1740_v58   ;;  %1793 = vperm.xlu1 %4453, %v1739_v59  }
  0x71   : > { %4249 = vmatmul.msk.f32.gmra.mxu0 %vm286_vm0, %v229_v60 }
  0x72   : > { %4269 = vmatmul.msk.f32.gmra.mxu1 %vm286_vm0, %v229_v60 }
  0x75   : > { %3601 = vperm.xlu0 %4452, %v3595_v61   ;;  %3606 = vperm.xlu1 %4453, %v3596_v62  }
  0x7d   : > { %3616 = vperm.xlu0 %4452, %v3598_v63   ;;  %4047 = vperm.xlu1 %4453, %v4041_v0  }
  0x85   : > { %4057 = vperm.xlu0 %4452, %v4043_v1   ;;  %4062 = vperm.xlu1 %4453, %v4044_v2  }
  0x87   : > { %v274_v3 = vpop.permute.xlu1 %273  ;;  %v284_v7 = vpop.permute.xlu0 %283 }
  0x8f   : > { %v269_v8 = vpop.permute.xlu1 %268  ;;  %v279_v24 = vpop.permute.xlu0 %278 }
  0xd6   : > { %v412_v4 = vpop.f32.mrf.mxu0 }
  0xd7   : > { %v441_v5 = vpop.f32.mrf.mxu1  ;;  %v4917_v9 = vadd.f32 %v412_v4, %v269_v8 }
  0xd8   : > { %v4919_v10 = vadd.f32 %v441_v5, %v269_v8 }
  0xd9   : > { %v4926_v15 = vmul.f32 0.70710677, %v4917_v9 }
  0xda   : > { %v4929_v16 = vmul.f32 0.70710677, %v4919_v10 }
  0xdb   : > { %v469_v20 = vmul.f32 %v4926_v15, %v4926_v15 }
  0xdc   : > { %v509_v21 = vmul.f32 %v4929_v16, %v4929_v16 }
  0xdd   : > { %v4952_v31 = vmin.f32 %v469_v20, 16.0 }
  0xde   : > { %v415_v11 = vpop.f32.mrf.mxu0  ;;  %v4954_v32 = vmin.f32 %v509_v21, 16.0 }
  0xdf   : > { %v444_v12 = vpop.f32.mrf.mxu1  ;;  %v4921_v13 = vadd.f32 %v415_v11, %v274_v3  ;;  %v471_v38 = vmul.f32 2.1237322e-06, %v4952_v31 }
  0xe0   : > { %v4923_v14 = vadd.f32 %v444_v12, %v274_v3  ;;  %v511_v39 = vmul.f32 2.1237322e-06, %v4954_v32 }
  0xe1   : > { %v4932_v17 = vmul.f32 0.70710677, %v4921_v13  ;;  %v472_v48 = vadd.f32 0.00028619796, %v471_v38 }
  0xe2   : > { %v4935_v18 = vmul.f32 0.70710677, %v4923_v14  ;;  %v512_v49 = vadd.f32 0.00028619796, %v511_v39 }
  0xe3   : > { %v549_v22 = vmul.f32 %v4932_v17, %v4932_v17  ;;  %v473_v59 = vmul.f32 %v472_v48, %v4952_v31 }
  0xe4   : > { %v589_v23 = vmul.f32 %v4935_v18, %v4935_v18  ;;  %v513_v60 = vmul.f32 %v512_v49, %v4954_v32 }
  0xe5   : > { %v4948_v25 = vmin.f32 %v549_v22, 16.0  ;;  %v474_v19 = vadd.f32 0.0036580483, %v473_v59 }
  0xe6   : > { %v4950_v26 = vmin.f32 %v589_v23, 16.0  ;;  %v418_v27 = vpop.f32.mrf.mxu0  ;;  %v5003_v20 = vadd.f32 0.0036580483, %v513_v60 }
  0xe7   : > { %v447_v28 = vpop.f32.mrf.mxu1  ;;  %v419_v29 = vadd.f32 %v418_v27, %v279_v24  ;;  %v551_v33 = vmul.f32 2.1237322e-06, %v4948_v25  ;;  %v562_v2 = vmul.f32 3.8918573e-05, %v4948_v25 }
  0xe8   : > { %v448_v30 = vadd.f32 %v447_v28, %v279_v24  ;;  %v591_v34 = vmul.f32 2.1237322e-06, %v4950_v26  ;;  %v1735_v28 = vld [vmem:[%s8012_s4 + $0x88] sm:$0xff] }
  0xe9   : > { %v4958_v35 = vmul.f32 0.70710677, %v419_v29  ;;  %v552_v42 = vadd.f32 0.00028619796, %v551_v33  ;;  %v5008_v23 = vmul.f32 0.5, %v419_v29  ;;  %1773 = vperm.xlu2 %4454, %v1735_v28  }
  0xea   : > { %v4960_v36 = vmul.f32 0.70710677, %v448_v30  ;;  %v592_v43 = vadd.f32 0.00028619796, %v591_v34  ;;  %v5017_v37 = vmul.f32 0.5, %v448_v30  ;;  %v5027_v30 = vmul.f32 %v474_v19, %v4952_v31 }
  0xeb   : > { %v629_v40 = vmul.f32 %v4958_v35, %v4958_v35  ;;  %v553_v55 = vmul.f32 %v552_v42, %v4948_v25  ;;  %v563_v39 = vadd.f32 0.001143296, %v562_v2  ;;  %v602_v42 = vmul.f32 3.8918573e-05, %v4950_v26 }
  0xec   : > { %v669_v41 = vmul.f32 %v4960_v36, %v4960_v36  ;;  %v593_v56 = vmul.f32 %v592_v43, %v4950_v26 }
  0xed   : > { %v4971_v44 = vmin.f32 %v629_v40, 16.0  ;;  %v554_v3 = vadd.f32 0.0036580483, %v553_v55 }
  0xee   : > { %v421_v45 = vpop.f32.mrf.mxu0  ;;  %v4973_v47 = vmin.f32 %v669_v41, 16.0  ;;  %v594_v4 = vadd.f32 0.0036580483, %v593_v56 }
  0xef   : > { %v450_v46 = vpop.f32.mrf.mxu1  ;;  %v631_v50 = vmul.f32 2.1237322e-06, %v4971_v44  ;;  %v4976_v51 = vadd.f32 %v421_v45, %v284_v7  ;;  %v642_v1 = vmul.f32 3.8918573e-05, %v4971_v44  ;;  %v555_v34 = vmul.f32 %v554_v3, %v4948_v25 }
  0xf0   : > { %v671_v52 = vmul.f32 2.1237322e-06, %v4973_v47  ;;  %v4979_v53 = vadd.f32 %v450_v46, %v284_v7  ;;  %v682_v12 = vmul.f32 3.8918573e-05, %v4973_v47  ;;  %v595_v40 = vmul.f32 %v594_v4, %v4950_v26 }
  0xf1   : > { %v632_v57 = vadd.f32 0.00028619796, %v631_v50  ;;  %v4990_v62 = vmul.f32 0.70710677, %v4976_v51  ;;  %v643_v11 = vadd.f32 0.001143296, %v642_v1 }
  0xf2   : > { %v672_v58 = vadd.f32 0.00028619796, %v671_v52  ;;  %v4994_v0 = vmul.f32 0.70710677, %v4979_v53  ;;  %v683_v33 = vadd.f32 0.001143296, %v682_v12 }
  0xf3   : > { %v633_v61 = vmul.f32 %v632_v57, %v4971_v44  ;;  %v709_v6 = vmul.f32 %v4990_v62, %v4990_v62  ;;  %v644_v38 = vmul.f32 %v643_v11, %v4971_v44  ;;  %v556_v54 = vadd.f32 0.05243302, %v555_v34 }
  0xf4   : > { %v673_v63 = vmul.f32 %v672_v58, %v4973_v47  ;;  %v749_v8 = vmul.f32 %v4994_v0, %v4994_v0  ;;  %v684_v48 = vmul.f32 %v683_v33, %v4973_v47  ;;  %v564_v57 = vmul.f32 %v563_v39, %v4948_v25 }
  0xf5   : > { %v634_v5 = vadd.f32 0.0036580483, %v633_v61  ;;  %v5006_v22 = vmin.f32 %v709_v6, 16.0  ;;  %v645_v56 = vadd.f32 0.014752088, %v644_v38  ;;  %v557_v11 = vmul.f32 %v556_v54, %v4948_v25 }
  0xf6   : > { %v674_v7 = vadd.f32 0.0036580483, %v673_v63  ;;  %v5011_v27 = vmin.f32 %v749_v8, 16.0  ;;  %v596_v58 = vadd.f32 0.05243302, %v595_v40 }
  0xf7   : > { %v635_v21 = vmul.f32 %v634_v5, %v4971_v44  ;;  %v711_v29 = vmul.f32 2.1237322e-06, %v5006_v22  ;;  %v722_v46 = vmul.f32 3.8918573e-05, %v5006_v22  ;;  %v646_v2 = vmul.f32 %v645_v56, %v4971_v44 }
  0xf8   : > { %v675_v24 = vmul.f32 %v674_v7, %v4973_v47  ;;  %v751_v41 = vmul.f32 2.1237322e-06, %v5011_v27  ;;  %v762_v52 = vmul.f32 3.8918573e-05, %v5011_v27  ;;  %v685_v3 = vadd.f32 0.014752088, %v684_v48 }
  0xf9   : > { %v636_v43 = vadd.f32 0.05243302, %v635_v21  ;;  %v712_v49 = vadd.f32 0.00028619796, %v711_v29  ;;  %v723_v55 = vadd.f32 0.001143296, %v722_v46 }
  0xfa   : > { %v676_v45 = vadd.f32 0.05243302, %v675_v24  ;;  %v752_v50 = vadd.f32 0.00028619796, %v751_v41  ;;  %v763_v61 = vadd.f32 0.001143296, %v762_v52  ;;  %v686_v21 = vmul.f32 %v685_v3, %v4973_v47 }
  0xfb   : > { %v713_v59 = vmul.f32 %v712_v49, %v5006_v22  ;;  %v637_v63 = vmul.f32 %v636_v43, %v4971_v44  ;;  %v724_v1 = vmul.f32 %v723_v55, %v5006_v22  ;;  %v1732_v7 = vld [vmem:[%s8012_s4 + $0x70] sm:$0xff]  ;;  %v647_v19 = vadd.f32 0.112945676, %v646_v2 }
  0xfc   : > { %v753_v60 = vmul.f32 %v752_v50, %v5011_v27  ;;  %v677_v4 = vmul.f32 %v676_v45, %v4973_v47  ;;  %v764_v8 = vmul.f32 %v763_v61, %v5011_v27  ;;  %v597_v24 = vmul.f32 %v596_v58, %v4950_v26  ;;  %1758 = vperm.xlu2 %4454, %v1732_v7  }
  0xfd   : > { %v714_v5 = vadd.f32 0.0036580483, %v713_v59  ;;  %v725_v12 = vadd.f32 0.014752088, %v724_v1  ;;  %v638_v38 = vadd.f32 0.18741608, %v637_v63  ;;  %v648_v40 = vmul.f32 %v647_v19, %v4971_v44 }
  0xfe   : > { %v754_v6 = vadd.f32 0.0036580483, %v753_v60  ;;  %v765_v34 = vadd.f32 0.014752088, %v764_v8  ;;  %v687_v29 = vadd.f32 0.112945676, %v686_v21 }
  0xff   : > { %v715_v28 = vmul.f32 %v714_v5, %v5006_v22  ;;  %v726_v39 = vmul.f32 %v725_v12, %v5006_v22  ;;  %v678_v41 = vadd.f32 0.18741608, %v677_v4  ;;  %v649_v49 = vadd.f32 0.4994258, %v648_v40 }
 0x100   : > { %v755_v33 = vmul.f32 %v754_v6, %v5011_v27  ;;  %v766_v46 = vmul.f32 %v765_v34, %v5011_v27  ;;  %v688_v50 = vmul.f32 %v687_v29, %v4973_v47  ;;  %v565_v52 = vadd.f32 0.014752088, %v564_v57 }
 0x101   : > { %v716_v43 = vadd.f32 0.05243302, %v715_v28  ;;  %v727_v48 = vadd.f32 0.112945676, %v726_v39  ;;  %v603_v58 = vadd.f32 0.001143296, %v602_v42  ;;  %v650_v60 = vmul.f32 %v649_v49, %v4971_v44 }
 0x102   : > { %v756_v45 = vadd.f32 0.05243302, %v755_v33  ;;  %v767_v56 = vadd.f32 0.112945676, %v766_v46  ;;  %v689_v61 = vadd.f32 0.4994258, %v688_v50  ;;  %v566_v63 = vmul.f32 %v565_v52, %v4948_v25 }
 0x103   : > { %v717_v54 = vmul.f32 %v716_v43, %v5006_v22  ;;  %v728_v59 = vmul.f32 %v727_v48, %v5006_v22  ;;  %v639_v1 = vmul.f32 %v638_v38, %v4971_v44  ;;  %v679_v57 = vmul.f32 %v678_v41, %v4973_v47  ;;  %v2723_v42 = vld [vmem:[%s8012_s4 + $0x118] sm:$0xff] }
 0x104   : > { %v757_v55 = vmul.f32 %v756_v45, %v5011_v27  ;;  %v768_v4 = vmul.f32 %v767_v56, %v5011_v27  ;;  %v5061_v6 = vadd.f32 1.0, %v650_v60  ;;  %v690_v7 = vmul.f32 %v689_v61, %v4973_v47  ;;  %2761 = vperm.xlu2 %4454, %v2723_v42  }
 0x105   : > { %v718_v2 = vadd.f32 0.18741608, %v717_v54  ;;  %v729_v5 = vadd.f32 0.4994258, %v728_v59  ;;  %v558_v8 = vadd.f32 0.18741608, %v557_v11  ;;  %v604_v33 = vmul.f32 %v603_v58, %v4950_v26 }
 0x106   : > { %v758_v3 = vadd.f32 0.18741608, %v757_v55  ;;  %v598_v12 = vadd.f32 0.18741608, %v597_v24  ;;  %v769_v44 = vadd.f32 0.4994258, %v768_v4  ;;  %4455 = vrcp.f32 %v5061_v6 }
 0x107   : > { %v719_v19 = vmul.f32 %v718_v2, %v5006_v22  ;;  %v730_v21 = vmul.f32 %v729_v5, %v5006_v22  ;;  %v567_v28 = vadd.f32 0.112945676, %v566_v63  ;;  %v640_v34 = vadd.f32 1.1283791, %v639_v1 }
 0x108   : > { %v5069_v38 = vmul.f32 0.5, %v4976_v51  ;;  %v759_v39 = vmul.f32 %v758_v3, %v5011_v27  ;;  %v770_v47 = vmul.f32 %v769_v44, %v5011_v27  ;;  %v680_v11 = vadd.f32 1.1283791, %v679_v57 }
 0x109   : > { %v5074_v24 = vmul.f32 0.5, %v4979_v53  ;;  %v5076_v40 = vadd.f32 1.0, %v730_v21  ;;  %v5078_v22 = vadd.f32 1.0, %v690_v7  ;;  %v5081_v29 = vmul.f32 %v558_v8, %v4948_v25 }
 0x10a   : > { %v720_v41 = vadd.f32 1.1283791, %v719_v19  ;;  %v5083_v43 = vadd.f32 1.0, %v770_v47  ;;  %v661_v51 = vand.u32 2147483647, %v5061_v6  ;;  %v5087_v45 = vmul.f32 %v598_v12, %v4950_v26 }
 0x10b   : > { %4457 = vrcp.f32 %v5076_v40  ;;  %v568_v53 = vmul.f32 %v567_v28, %v4948_v25  ;;  %v605_v27 = vadd.f32 0.014752088, %v604_v33  ;;  %v641_v46 = vmul.f32 %v640_v34, %v4958_v35 }
 0x10c   : > { %v760_v48 = vadd.f32 1.1283791, %v759_v39  ;;  %4459 = vrcp.f32 %v5083_v43  ;;  %v663_v49 = vand.u32 2147483648, %v5061_v6  ;;  %v4456_v50 = vpop.eup %4455  ;;  %v5095_v52 = vmul.f32 %v680_v11, %v4960_v36 }
 0x10d   : > { %v743_v54 = vand.u32 2147483648, %v5076_v40  ;;  %vm657_vm1 = vweird.f32 %v5061_v6  ;;  %4461 = vrcp.f32 %v5078_v22  ;;  %v5101_v55 = vmul.f32 %v720_v41, %v4990_v62 }
 0x10e   : > { %v741_v35 = vand.u32 2147483647, %v5076_v40  ;;  %v653_v56 = vmul.f32 %v4456_v50, %v5061_v6  ;;  %vm5105_vm2 = vcmp.eq.f32.partialorder %v661_v51, 8.507059e+37  ;;  %v781_v36 = vand.u32 2147483647, %v5083_v43 }
 0x10f   : > { %v783_v59 = vand.u32 2147483648, %v5083_v43  ;;  %v569_v60 = vadd.f32 0.4994258, %v568_v53  ;;  %v606_v61 = vmul.f32 %v605_v27, %v4950_v26  ;;  %v5113_v63 = vmul.f32 %v760_v48, %v4994_v0 }
 0x110   : > { %vm737_vm3 = vweird.f32 %v5076_v40  ;;  %v654_v62 = vsub.f32 1.0, %v653_v56  ;;  %v664_v1 = vor.u32 1.1754944e-38, %v663_v49  ;;  %v744_v3 = vor.u32 1.1754944e-38, %v743_v54 }
 0x111   : > { %v4458_v2 = vpop.eup %4457  ;;  %vm777_vm4 = vweird.f32 %v5083_v43  ;;  %v570_v4 = vmul.f32 %v569_v60, %v4948_v25  ;;  %v607_v57 = vadd.f32 0.112945676, %v606_v61  ;;  %v482_v5 = vmul.f32 3.8918573e-05, %v4952_v31 }
 0x112   : > { %v4460_v42 = vpop.eup %4459  ;;  %v733_v7 = vmul.f32 %v4458_v2, %v5076_v40  ;;  %vm5120_vm5 = vcmp.eq.f32.partialorder %v741_v35, 8.507059e+37  ;;  %v655_v0 = vmul.f32 %v4456_v50, %v654_v62  ;;  %vm658_vm6 = vweird.f32 %v4456_v50 }
 0x113   : > { %vm697_vm7 = vweird.f32 %v5078_v22  ;;  %v4462_v12 = vpop.eup %4461  ;;  %v773_v19 = vmul.f32 %v4460_v42, %v5083_v43  ;;  %vm5126_vm8 = vcmp.eq.f32.partialorder %v781_v36, 8.507059e+37  ;;  %v784_v25 = vor.u32 1.1754944e-38, %v783_v59  ;;  %vm659_vm9 = vmor %vm657_vm1, %vm658_vm6 }
 0x114   : > { %v5130_v21 = vadd.f32 1.0, %v570_v4  ;;  %v608_v28 = vmul.f32 %v607_v57, %v4950_v26  ;;  %v734_v33 = vsub.f32 1.0, %v733_v7  ;;  %v656_v34 = vadd.f32 %v4456_v50, %v655_v0 }
 0x115   : > { %v693_v39 = vmul.f32 %v4462_v12, %v5078_v22  ;;  %v701_v47 = vand.u32 2147483647, %v5078_v22  ;;  %v774_v11 = vsub.f32 1.0, %v773_v19  ;;  %v703_v41 = vand.u32 2147483648, %v5078_v22 }
 0x116   : > { %4463 = vrcp.f32 %v5130_v21  ;;  %v483_v51 = vadd.f32 0.001143296, %v482_v5  ;;  %v735_v53 = vmul.f32 %v4458_v2, %v734_v33  ;;  %vm738_vm10 = vweird.f32 %v4458_v2 }
 0x117   : > { %v660_v27 = vsel %vm659_vm9, %v4456_v50, %v656_v34  ;;  %v694_v48 = vsub.f32 1.0, %v693_v39  ;;  %v775_v49 = vmul.f32 %v4460_v42, %v774_v11  ;;  %vm778_vm11 = vweird.f32 %v4460_v42  ;;  %vm739_vm13 = vmor %vm737_vm3, %vm738_vm10 }
 0x118   : > { %v665_v54 = vsel %vm5105_vm2, %v664_v1, %v660_v27  ;;  %v609_v35 = vadd.f32 0.4994258, %v608_v28  ;;  %v736_v56 = vadd.f32 %v4458_v2, %v735_v53  ;;  %vm698_vm12 = vweird.f32 %v4462_v12  ;;  %vm779_vm14 = vmor %vm777_vm4, %vm778_vm11 }
 0x119   : > { %v666_v36 = vmul.f32 %v665_v54, %v641_v46  ;;  %v695_v59 = vmul.f32 %v4462_v12, %v694_v48  ;;  %v776_v6 = vadd.f32 %v4460_v42, %v775_v49  ;;  %v484_v61 = vmul.f32 %v483_v51, %v4952_v31  ;;  %vm699_vm0 = vmor %vm697_vm7, %vm698_vm12 }
 0x11a   : > { %v610_v60 = vmul.f32 %v609_v35, %v4950_v26  ;;  %v522_v50 = vmul.f32 3.8918573e-05, %v4954_v32  ;;  %v740_v62 = vsel %vm739_vm13, %v4458_v2, %v736_v56  ;;  %vm702_vm15 = vcmp.eq.f32.partialorder %v701_v47, 8.507059e+37 }
 0x11b   : > { %v696_v58 = vadd.f32 %v4462_v12, %v695_v59  ;;  %v704_v1 = vor.u32 1.1754944e-38, %v703_v41  ;;  %v745_v4 = vsel %vm5120_vm5, %v744_v3, %v740_v62  ;;  %v780_v40 = vsel %vm779_vm14, %v4460_v42, %v776_v6 }
 0x11c   : > { %v4464_v46 = vpop.eup %4463  ;;  %v4274_v57 = vclamps-f32 %v666_v36, 1.0  ;;  %v5153_v26 = vadd.f32 1.0, %v610_v60  ;;  %v746_v2 = vmul.f32 %v745_v4, %v5101_v55  ;;  %v785_v43 = vsel %vm5126_vm8, %v784_v25, %v780_v40 }
 0x11d   : > { %v700_v5 = vsel %vm699_vm0, %v4462_v12, %v696_v58  ;;  %v485_v7 = vadd.f32 0.014752088, %v484_v61  ;;  %v786_v0 = vmul.f32 %v785_v43, %v5113_v63  ;;  %v573_v3 = vmul.f32 %v4464_v46, %v5130_v21 }
 0x11e   : > { %v705_v19 = vsel %vm702_vm15, %v704_v1, %v700_v5  ;;  %v523_v42 = vadd.f32 0.001143296, %v522_v50  ;;  %v560_v8 = vadd.f32 1.1283791, %v5081_v29  ;;  %v4276_v28 = vclamps-f32 %v746_v2, 1.0 }
 0x11f   : > { %v706_v22 = vmul.f32 %v705_v19, %v5095_v52  ;;  %4465 = vrcp.f32 %v5153_v26  ;;  %v4277_v33 = vclamps-f32 %v786_v0, 1.0  ;;  %v574_v55 = vsub.f32 1.0, %v573_v3  ;;  %v2720_v0 = vld [vmem:[%s8012_s4 + $0x100] sm:$0xff] }
 0x120   : > { %v581_v44 = vand.u32 2147483647, %v5130_v21  ;;  %v583_v12 = vand.u32 2147483648, %v5130_v21  ;;  %v795_v25 = vadd.f32 1.0, %v4276_v28  ;;  %v793_v34 = vadd.f32 1.0, %v4274_v57  ;;  %2746 = vperm.xlu2 %4454, %v2720_v0   ;;  %v4042_v0 = vld [vmem:[%s8012_s4 + $0x148] sm:$0xff] }
 0x121   : > { %v4275_v63 = vclamps-f32 %v706_v22, 1.0  ;;  %v486_v39 = vmul.f32 %v485_v7, %v4952_v31  ;;  %v796_v47 = vadd.f32 1.0, %v4277_v33  ;;  %v575_v11 = vmul.f32 %v4464_v46, %v574_v55 }
 0x122   : > { %vm578_vm1 = vweird.f32 %v4464_v46  ;;  %v524_v29 = vmul.f32 %v523_v42, %v4954_v32  ;;  %v561_v52 = vmul.f32 %v560_v8, %v4932_v17  ;;  %v5169_v41 = vmul.f32 %v795_v25, %v5069_v38 }
 0x123   : > { %v794_v51 = vadd.f32 1.0, %v4275_v63  ;;  %v487_v53 = vadd.f32 0.112945676, %v486_v39  ;;  %v5172_v27 = vmul.f32 %v796_v47, %v5074_v24  ;;  %v576_v48 = vadd.f32 %v4464_v46, %v575_v11  ;;  %v2717_v47 = vld [vmem:[%s8012_s4 + $0xe8] sm:$0xff] }
 0x124   : > { %vm577_vm2 = vweird.f32 %v5130_v21  ;;  %v525_v49 = vadd.f32 0.014752088, %v524_v29  ;;  %858 = vmatpush.msra.mxu2 %v5169_v41  ;;  %v5177_v35 = vmul.f32 %v793_v34, %v5008_v23  ;;  %vm582_vm4 = vcmp.eq.f32.partialorder %v581_v44, 8.507059e+37 }
 0x125   : > { %v4466_v54 = vpop.eup %4465  ;;  %vm579_vm3 = vmor %vm577_vm2, %vm578_vm1  ;;  %v584_v17 = vor.u32 1.1754944e-38, %v583_v12  ;;  %v488_v38 = vmul.f32 %v487_v53, %v4952_v31  ;;  %887 = vmatpush.msra.mxu3 %v5172_v27  ;;  %v5182_v24 = vmul.f32 %v794_v51, %v5017_v37  ;;  %v476_v59 = vadd.f32 0.05243302, %v5027_v30 }
 0x126   : > { %v580_v56 = vsel %vm579_vm3, %v4464_v46, %v576_v48  ;;  %v613_v21 = vmul.f32 %v4466_v54, %v5153_v26  ;;  %v526_v36 = vmul.f32 %v525_v49, %v4954_v32  ;;  %v515_v23 = vmul.f32 %v5003_v20, %v4954_v32  ;;  %859 = vmatpush.msra.mxu2 %v5177_v35 }
 0x127   : > { %v585_v6 = vsel %vm582_vm4, %v584_v17, %v580_v56  ;;  %v489_v60 = vadd.f32 0.4994258, %v488_v38  ;;  %888 = vmatpush.msra.mxu3 %v5182_v24  ;;  %v600_v62 = vadd.f32 1.1283791, %v5087_v45  ;;  %v621_v58 = vand.u32 2147483647, %v5153_v26 }
 0x128   : > { %v586_v61 = vmul.f32 %v585_v6, %v561_v52  ;;  %v614_v50 = vsub.f32 1.0, %v613_v21  ;;  %v527_v37 = vadd.f32 0.112945676, %v526_v36  ;;  %v623_v1 = vand.u32 2147483648, %v5153_v26  ;;  %2731 = vperm.xlu2 %4454, %v2717_v47  }
 0x129   : > { %v490_v30 = vmul.f32 %v489_v60, %v4952_v31  ;;  %vm618_vm5 = vweird.f32 %v4466_v54  ;;  %v477_v40 = vmul.f32 %v476_v59, %v4952_v31  ;;  %v516_v57 = vadd.f32 0.05243302, %v515_v23  ;;  %v1744_v59 = vld [vmem:[%s8012_s4 + $0xd0] sm:$0xff] }
 0x12a   : > { %v4272_v46 = vclamps-f32 %v586_v61, 1.0  ;;  %v615_v4 = vmul.f32 %v4466_v54, %v614_v50  ;;  %v528_v20 = vmul.f32 %v527_v37, %v4954_v32  ;;  %v455_v2 = vmul.f32 0.5, %v4921_v13 }
 0x12b   : > { %v491_v43 = vadd.f32 1.0, %v490_v30  ;;  %vm617_vm6 = vweird.f32 %v5153_v26  ;;  %v601_v19 = vmul.f32 %v600_v62, %v4935_v18  ;;  %v624_v3 = vor.u32 1.1754944e-38, %v623_v1 }
 0x12c   : > { %v791_v5 = vadd.f32 1.0, %v4272_v46  ;;  %v616_v7 = vadd.f32 %v4466_v54, %v615_v4  ;;  %v529_v45 = vadd.f32 0.4994258, %v528_v20  ;;  %vm619_vm7 = vmor %vm617_vm6, %vm618_vm5  ;;  %vm622_vm8 = vcmp.eq.f32.partialorder %v621_v58, 8.507059e+37 }
 0x12d   : > { %4467 = vrcp.f32 %v491_v43  ;;  %v517_v28 = vmul.f32 %v516_v57, %v4954_v32  ;;  %v478_v22 = vadd.f32 0.18741608, %v477_v40  ;;  %v456_v34 = vmul.f32 0.5, %v4923_v14  ;;  %v805_v40 = vld [vmem:[%s8010_s2] sm:$0xff]  ;;  %v1741_v57 = vld [vmem:[%s8012_s4 + $0xb8] sm:$0xff] }
 0x12e   : > { %v5203_v42 = vmul.f32 %v791_v5, %v455_v2  ;;  %v620_v8 = vsel %vm619_vm7, %v4466_v54, %v616_v7  ;;  %v530_v13 = vmul.f32 %v529_v45, %v4954_v32  ;;  %v503_v51 = vand.u32 2147483648, %v491_v43  ;;  %v1738_v5 = vld [vmem:[%s8012_s4 + $0xa0] sm:$0xff]  ;;  %v806_v7 = vld [vmem:[%s8010_s2 + $0x8] sm:$0xff]  ;;  %v807_v45 = vld [vmem:[%s8010_s2 + $0x10] sm:$0xff] }
 0x12f   : > { %v625_v26 = vsel %vm622_vm8, %v624_v3, %v620_v8  ;;  %v518_v12 = vadd.f32 0.18741608, %v517_v28  ;;  %v479_v25 = vmul.f32 %v478_v22, %v4952_v31  ;;  %v501_v14 = vand.u32 2147483647, %v491_v43  ;;  %v4091_v3 = vld [vmem:[%s8012_s4 + $0x160] sm:$0x1]  ;;  %v816_v8 = vpop.permute.xlu1 %815 }
 0x130   : > { %860 = vmatpush.msra.mxu2 %v5203_v42  ;;  %v626_v33 = vmul.f32 %v625_v26, %v601_v19  ;;  %v531_v55 = vadd.f32 1.0, %v530_v13  ;;  %vm497_vm10 = vweird.f32 %v491_v43  ;;  %v504_v38 = vor.u32 1.1754944e-38, %v503_v51  ;;  %1818 = vperm.xlu2 %4454, %v1744_v59   ;;  %v808_v19 = vld [vmem:[%s8010_s2 + $0x18] sm:$0xff] }
 0x131   : > { %v519_v52 = vmul.f32 %v518_v12, %v4954_v32  ;;  %v480_v48 = vadd.f32 1.1283791, %v479_v25  ;;  %vm502_vm12 = vcmp.eq.f32.partialorder %v501_v14, 8.507059e+37  ;;  %v453_v1 = vmul.f32 0.5, %v4917_v9 }
 0x132   : > { %v4273_v44 = vclamps-f32 %v626_v33, 1.0  ;;  %4469 = vrcp.f32 %v531_v55  ;;  %v543_v32 = vand.u32 2147483648, %v531_v55  ;;  %v541_v60 = vand.u32 2147483647, %v531_v55 }
 0x133   : > { %v4468_v18 = vpop.eup %4467  ;;  %v520_v17 = vadd.f32 1.1283791, %v519_v52  ;;  %v481_v21 = vmul.f32 %v480_v48, %v4926_v15  ;;  %vm537_vm14 = vweird.f32 %v531_v55  ;;  %vm833_vm1 = vcmask 261120  }
 0x134   : > { %v792_v63 = vadd.f32 1.0, %v4273_v44  ;;  %v493_v39 = vmul.f32 %v4468_v18, %v491_v43  ;;  %vm498_vm9 = vweird.f32 %v4468_v18  ;;  %v544_v62 = vor.u32 1.1754944e-38, %v543_v32 }
 0x135   : > { %vm499_vm11 = vmor %vm497_vm10, %vm498_vm9  ;;  %v521_v15 = vmul.f32 %v520_v17, %v4929_v16  ;;  %vm542_vm0 = vcmp.eq.f32.partialorder %v541_v60, 8.507059e+37  ;;  %v454_v9 = vmul.f32 0.5, %v4919_v10  ;;  %v3597_v10 = vld [vmem:[%s8012_s4 + $0x130] sm:$0xff] }
 0x136   : > { %v5213_v11 = vmul.f32 %v792_v63, %v456_v34  ;;  %v494_v29 = vsub.f32 1.0, %v493_v39 }
 0x138   : > { %v4470_v53 = vpop.eup %4469  ;;  %889 = vmatpush.msra.mxu3 %v5213_v11  ;;  %v495_v31 = vmul.f32 %v4468_v18, %v494_v29  ;;  %1803 = vperm.xlu2 %4454, %v1741_v57  }
 0x139   : > { %v533_v49 = vmul.f32 %v4470_v53, %v531_v55  ;;  %vm538_vm13 = vweird.f32 %v4470_v53  ;;  %v831_v55 = vpop.permute.xlu2 %830 }
 0x13a   : > { %v496_v54 = vadd.f32 %v4468_v18, %v495_v31  ;;  %vm539_vm15 = vmor %vm537_vm14, %vm538_vm13 }
 0x13b   : > { %v534_v56 = vsub.f32 1.0, %v533_v49 }
 0x13c   : > { %v500_v36 = vsel %vm499_vm11, %v4468_v18, %v496_v54  ;;  %v821_v18 = vpop.permute.xlu0 %820 }
 0x13d   : > { %v505_v23 = vsel %vm502_vm12, %v504_v38, %v500_v36  ;;  %v535_v6 = vmul.f32 %v4470_v53, %v534_v56 }
 0x13e   : > { %v506_v61 = vmul.f32 %v505_v23, %v481_v21 }
 0x13f   : > { %v536_v50 = vadd.f32 %v4470_v53, %v535_v6 }
 0x140   : > { %v4270_v37 = vclamps-f32 %v506_v61, 1.0  ;;  %1788 = vperm.xlu2 %4454, %v1738_v5  }
 0x141   : > { %v540_v58 = vsel %vm539_vm15, %v4470_v53, %v536_v50  ;;  %v826_v48 = vpop.permute.xlu2 %825 }
 0x142   : > { %v789_v30 = vadd.f32 1.0, %v4270_v37  ;;  %v545_v46 = vsel %vm542_vm0, %v544_v62, %v540_v58 }
 0x143   : > { %v546_v4 = vmul.f32 %v545_v46, %v521_v15 }
 0x144   : > { %v5223_v20 = vmul.f32 %v789_v30, %v453_v1 }
 0x145   : > { %v4271_v2 = vclamps-f32 %v546_v4, 1.0 }
 0x146   : > { %861 = vmatpush.msra.mxu2 %v5223_v20 }
 0x147   : > { %v790_v16 = vadd.f32 1.0, %v4271_v2  ;;  %4278 = vmatmul.msk.f32.vlgmr.msra.gmra.mxu2 %vm833_vm1, %v805_v40 }
 0x148   : > { %3611 = vperm.xlu2 %4454, %v3597_v10  }
 0x149   : > { %v5234_v43 = vmul.f32 %v790_v16, %v454_v9 }
 0x14b   : > { %8056 = vst [vmem:[#allocation5_spill] sm:$0xff] %v5234_v43  ;;  %890 = vmatpush.msra.mxu3 %v5234_v43 }
 0x14c   : > { %4282 = vmatmul.msk.f32.vlgmr.msra.gmra.mxu3 %vm833_vm1, %v805_v40 }
 0x14f   : > { %4279 = vmatmul.msk.f32.gmra.mxu2 %vm833_vm1, %v806_v7 }
 0x150   : > { %4052 = vperm.xlu2 %4454, %v4042_v0  }
 0x154   : > { %4283 = vmatmul.msk.f32.gmra.mxu3 %vm833_vm1, %v806_v7 }
 0x157   : > { %4280 = vmatmul.msk.f32.gmra.mxu2 %vm833_vm1, %v807_v45 }
 0x158   : > { %4094 = vperm.xlu2 %4454, %v4091_v3  }
 0x15c   : > { %4284 = vmatmul.msk.f32.gmra.mxu3 %vm833_vm1, %v807_v45 }
 0x15f   : > { %4281 = vmatmul.msk.f32.gmra.mxu2 %vm833_vm1, %v808_v19 }
 0x164   : > { %4285 = vmatmul.msk.f32.gmra.mxu3 %vm833_vm1, %v808_v19 }
 0x1ca   : > { %v863_v13 = vpop.f32.mrf.mxu2 }
 0x1cb   : > { %v5265_v28 = vadd.f32 %v863_v13, %v816_v8 }
 0x1cd   : > { %v5268_v26 = vmul.f32 0.70710677, %v5265_v28 }
 0x1cf   : > { %v920_v22 = vmul.f32 %v5268_v26, %v5268_v26  ;;  %v892_v33 = vpop.f32.mrf.mxu3 }
 0x1d0   : > { %v5272_v44 = vadd.f32 %v892_v33, %v816_v8 }
 0x1d1   : > { %v5274_v25 = vmin.f32 %v920_v22, 16.0 }
 0x1d2   : > { %v866_v12 = vpop.f32.mrf.mxu2  ;;  %v5279_v63 = vmul.f32 0.70710677, %v5272_v44 }
 0x1d3   : > { %v5276_v34 = vadd.f32 %v866_v12, %v821_v18  ;;  %v922_v47 = vmul.f32 2.1237322e-06, %v5274_v25 }
 0x1d4   : > { %v960_v51 = vmul.f32 %v5279_v63, %v5279_v63 }
 0x1d5   : > { %v5282_v39 = vmul.f32 0.70710677, %v5276_v34  ;;  %v923_v49 = vadd.f32 0.00028619796, %v922_v47 }
 0x1d6   : > { %v5294_v38 = vmin.f32 %v960_v51, 16.0 }
 0x1d7   : > { %v1000_v29 = vmul.f32 %v5282_v39, %v5282_v39  ;;  %v895_v52 = vpop.f32.mrf.mxu3  ;;  %v924_v32 = vmul.f32 %v923_v49, %v5274_v25 }
 0x1d8   : > { %v5291_v31 = vadd.f32 %v895_v52, %v821_v18  ;;  %v962_v61 = vmul.f32 2.1237322e-06, %v5294_v38 }
 0x1d9   : > { %v5289_v53 = vmin.f32 %v1000_v29, 16.0  ;;  %v925_v15 = vadd.f32 0.0036580483, %v924_v32 }
 0x1da   : > { %v869_v14 = vpop.f32.mrf.mxu2  ;;  %v5297_v21 = vmul.f32 0.70710677, %v5291_v31  ;;  %v963_v4 = vadd.f32 0.00028619796, %v962_v61 }
 0x1db   : > { %v1002_v54 = vmul.f32 2.1237322e-06, %v5289_v53  ;;  %v870_v17 = vadd.f32 %v869_v14, %v826_v48  ;;  %v926_v9 = vmul.f32 %v925_v15, %v5274_v25  ;;  %v1013_v51 = vmul.f32 3.8918573e-05, %v5289_v53 }
 0x1dc   : > { %v1040_v50 = vmul.f32 %v5297_v21, %v5297_v21  ;;  %v964_v19 = vmul.f32 %v963_v4, %v5294_v38 }
 0x1dd   : > { %v1003_v56 = vadd.f32 0.00028619796, %v1002_v54  ;;  %v5299_v36 = vmul.f32 0.70710677, %v870_v17  ;;  %v5338_v18 = vadd.f32 0.05243302, %v926_v9 }
 0x1de   : > { %v5320_v57 = vmin.f32 %v1040_v50, 16.0  ;;  %v5353_v15 = vmul.f32 0.5, %v870_v17 }
 0x1df   : > { %v898_v59 = vpop.f32.mrf.mxu3  ;;  %v1004_v23 = vmul.f32 %v1003_v56, %v5289_v53  ;;  %v1080_v6 = vmul.f32 %v5299_v36, %v5299_v36 }
 0x1e0   : > { %v5305_v60 = vadd.f32 %v898_v59, %v826_v48  ;;  %v1042_v13 = vmul.f32 2.1237322e-06, %v5320_v57  ;;  %v965_v48 = vadd.f32 0.0036580483, %v964_v19 }
 0x1e1   : > { %v5310_v37 = vmin.f32 %v1080_v6, 16.0  ;;  %v1005_v30 = vadd.f32 0.0036580483, %v1004_v23 }
 0x1e2   : > { %v872_v62 = vpop.f32.mrf.mxu2  ;;  %v5313_v58 = vmul.f32 0.70710677, %v5305_v60  ;;  %v1043_v56 = vadd.f32 0.00028619796, %v1042_v13 }
 0x1e3   : > { %v5315_v1 = vadd.f32 %v872_v62, %v831_v55  ;;  %v1082_v46 = vmul.f32 2.1237322e-06, %v5310_v37  ;;  %v1006_v10 = vmul.f32 %v1005_v30, %v5289_v53  ;;  %v1093_v33 = vmul.f32 3.8918573e-05, %v5310_v37 }
 0x1e4   : > { %v1120_v40 = vmul.f32 %v5313_v58, %v5313_v58 }
 0x1e5   : > { %v1083_v2 = vadd.f32 0.00028619796, %v1082_v46  ;;  %v5326_v5 = vmul.f32 0.70710677, %v5315_v1  ;;  %v1007_v29 = vadd.f32 0.05243302, %v1006_v10  ;;  %v1044_v10 = vmul.f32 %v1043_v56, %v5320_v57 }
 0x1e6   : > { %v5323_v16 = vmin.f32 %v1120_v40, 16.0  ;;  %v1094_v23 = vadd.f32 0.001143296, %v1093_v33  ;;  %v1014_v46 = vadd.f32 0.001143296, %v1013_v51 }
 0x1e7   : > { %v901_v7 = vpop.f32.mrf.mxu3  ;;  %v1084_v45 = vmul.f32 %v1083_v2, %v5310_v37  ;;  %v1160_v8 = vmul.f32 %v5326_v5, %v5326_v5  ;;  %v1008_v62 = vmul.f32 %v1007_v29, %v5289_v53 }
 0x1e8   : > { %v5330_v0 = vadd.f32 %v901_v7, %v831_v55  ;;  %v1122_v3 = vmul.f32 2.1237322e-06, %v5323_v16  ;;  %v1095_v9 = vmul.f32 %v1094_v23, %v5310_v37  ;;  %v5362_v7 = vmul.f32 %v965_v48, %v5294_v38 }
 0x1e9   : > { %v1085_v22 = vadd.f32 0.0036580483, %v1084_v45  ;;  %v5340_v47 = vmin.f32 %v1160_v8, 16.0  ;;  %v1133_v17 = vmul.f32 3.8918573e-05, %v5323_v16  ;;  %v1015_v29 = vmul.f32 %v1014_v46, %v5289_v53 }
 0x1ea   : > { %v1123_v12 = vadd.f32 0.00028619796, %v1122_v3  ;;  %v5344_v52 = vmul.f32 0.70710677, %v5330_v0 }
 0x1eb   : > { %v1086_v55 = vmul.f32 %v1085_v22, %v5310_v37  ;;  %v1162_v49 = vmul.f32 2.1237322e-06, %v5340_v47  ;;  %v1173_v54 = vmul.f32 3.8918573e-05, %v5340_v47  ;;  %v1009_v22 = vadd.f32 0.18741608, %v1008_v62 }
 0x1ec   : > { %v1124_v14 = vmul.f32 %v1123_v12, %v5323_v16  ;;  %v1200_v59 = vmul.f32 %v5344_v52, %v5344_v52 }
 0x1ed   : > { %v1087_v32 = vadd.f32 0.05243302, %v1086_v55  ;;  %v1163_v61 = vadd.f32 0.00028619796, %v1162_v49  ;;  %v1174_v50 = vadd.f32 0.001143296, %v1173_v54 }
 0x1ee   : > { %v1125_v6 = vadd.f32 0.0036580483, %v1124_v14  ;;  %v5355_v30 = vmin.f32 %v1200_v59, 16.0  ;;  %v1096_v14 = vadd.f32 0.014752088, %v1095_v9 }
 0x1ef   : > { %v1164_v40 = vmul.f32 %v1163_v61, %v5340_v47  ;;  %v1175_v2 = vmul.f32 %v1174_v50, %v5340_v47  ;;  %v1088_v19 = vmul.f32 %v1087_v32, %v5310_v37  ;;  %v1045_v49 = vadd.f32 0.0036580483, %v1044_v10 }
 0x1f0   : > { %v1126_v4 = vmul.f32 %v1125_v6, %v5323_v16  ;;  %v1202_v45 = vmul.f32 2.1237322e-06, %v5355_v30  ;;  %v1213_v12 = vmul.f32 3.8918573e-05, %v5355_v30  ;;  %v1134_v32 = vadd.f32 0.001143296, %v1133_v17 }
 0x1f1   : > { %v1165_v8 = vadd.f32 0.0036580483, %v1164_v40  ;;  %v1176_v13 = vadd.f32 0.014752088, %v1175_v2  ;;  %v1089_v59 = vadd.f32 0.18741608, %v1088_v19  ;;  %v1097_v61 = vmul.f32 %v1096_v14, %v5310_v37 }
 0x1f2   : > { %v1127_v3 = vadd.f32 0.05243302, %v1126_v4  ;;  %v1203_v33 = vadd.f32 0.00028619796, %v1202_v45  ;;  %v1214_v56 = vadd.f32 0.001143296, %v1213_v12  ;;  %v1010_v50 = vmul.f32 %v1009_v22, %v5289_v53 }
 0x1f3   : > { %v1166_v51 = vmul.f32 %v1165_v8, %v5340_v47  ;;  %v1177_v48 = vmul.f32 %v1176_v13, %v5340_v47  ;;  %v1135_v4 = vmul.f32 %v1134_v32, %v5323_v16  ;;  %v1098_v10 = vadd.f32 0.112945676, %v1097_v61 }
 0x1f4   : > { %v1128_v55 = vmul.f32 %v1127_v3, %v5323_v16  ;;  %v1204_v54 = vmul.f32 %v1203_v33, %v5355_v30  ;;  %v1215_v46 = vmul.f32 %v1214_v56, %v5355_v30  ;;  %v1016_v3 = vadd.f32 0.014752088, %v1015_v29 }
 0x1f5   : > { %v1167_v23 = vadd.f32 0.05243302, %v1166_v51  ;;  %v1178_v6 = vadd.f32 0.112945676, %v1177_v48  ;;  %v1136_v19 = vadd.f32 0.014752088, %v1135_v4  ;;  %v1090_v8 = vmul.f32 %v1089_v59, %v5310_v37 }
 0x1f6   : > { %v1205_v62 = vadd.f32 0.0036580483, %v1204_v54  ;;  %v1129_v40 = vadd.f32 0.18741608, %v1128_v55  ;;  %v1216_v17 = vadd.f32 0.014752088, %v1215_v46  ;;  %v1099_v33 = vmul.f32 %v1098_v10, %v5310_v37 }
 0x1f7   : > { %v1168_v2 = vmul.f32 %v1167_v23, %v5340_v47  ;;  %v1179_v9 = vmul.f32 %v1178_v6, %v5340_v47  ;;  %v1137_v55 = vmul.f32 %v1136_v19, %v5323_v16  ;;  %v1017_v48 = vmul.f32 %v1016_v3, %v5289_v53 }
 0x1f8   : > { %v1206_v45 = vmul.f32 %v1205_v62, %v5355_v30  ;;  %v1217_v51 = vmul.f32 %v1216_v17, %v5355_v30  ;;  %v1130_v14 = vmul.f32 %v1129_v40, %v5323_v16  ;;  %v1100_v29 = vadd.f32 0.4994258, %v1099_v33 }
 0x1f9   : > { %v1169_v13 = vadd.f32 0.18741608, %v1168_v2  ;;  %v1180_v22 = vadd.f32 0.4994258, %v1179_v9  ;;  %v1138_v23 = vadd.f32 0.112945676, %v1137_v55  ;;  %v1046_v62 = vmul.f32 %v1045_v49, %v5320_v57 }
 0x1fa   : > { %v1207_v12 = vadd.f32 0.05243302, %v1206_v45  ;;  %v1218_v59 = vadd.f32 0.112945676, %v1217_v51  ;;  %v1018_v6 = vadd.f32 0.112945676, %v1017_v48  ;;  %v1101_v4 = vmul.f32 %v1100_v29, %v5310_v37 }
 0x1fb   : > { %v1170_v54 = vmul.f32 %v1169_v13, %v5340_v47  ;;  %v1181_v56 = vmul.f32 %v1180_v22, %v5340_v47  ;;  %v1011_v61 = vadd.f32 1.1283791, %v1010_v50  ;;  %v1139_v9 = vmul.f32 %v1138_v23, %v5323_v16 }
 0x1fc   : > { %v1208_v32 = vmul.f32 %v1207_v12, %v5355_v30  ;;  %v1219_v40 = vmul.f32 %v1218_v59, %v5355_v30  ;;  %v1019_v47 = vmul.f32 %v1018_v6, %v5289_v53  ;;  %v1091_v10 = vadd.f32 1.1283791, %v1090_v8 }
 0x1fd   : > { %v5391_v46 = vadd.f32 1.0, %v1181_v56  ;;  %v1131_v45 = vadd.f32 1.1283791, %v1130_v14  ;;  %v5398_v17 = vmul.f32 0.5, %v5315_v1  ;;  %v1171_v50 = vadd.f32 1.1283791, %v1170_v54 }
 0x1fe   : > { %v1209_v2 = vadd.f32 0.18741608, %v1208_v32  ;;  %v1220_v19 = vadd.f32 0.4994258, %v1219_v40  ;;  %v5402_v3 = vadd.f32 1.0, %v1101_v4  ;;  %v5405_v37 = vmul.f32 %v1011_v61, %v5282_v39 }
 0x1ff   : > { %4471 = vrcp.f32 %v5391_v46  ;;  %v5407_v13 = vadd.f32 0.05243302, %v1046_v62  ;;  %v1140_v22 = vadd.f32 0.4994258, %v1139_v9  ;;  %v1020_v33 = vadd.f32 0.4994258, %v1019_v47 }
 0x200   : > { %v1210_v49 = vmul.f32 %v1209_v2, %v5355_v30  ;;  %v1192_v8 = vand.u32 2147483647, %v5391_v46  ;;  %v1194_v1 = vand.u32 2147483648, %v5391_v46  ;;  %v1221_v12 = vmul.f32 %v1220_v19, %v5355_v30 }
 0x201   : > { %4473 = vrcp.f32 %v5402_v3  ;;  %v5414_v51 = vmul.f32 %v1091_v10, %v5299_v36  ;;  %v1141_v48 = vmul.f32 %v1140_v22, %v5323_v16  ;;  %v1053_v39 = vmul.f32 3.8918573e-05, %v5320_v57 }
 0x202   : > { %v1211_v55 = vadd.f32 1.1283791, %v1210_v49  ;;  %v5419_v14 = vmul.f32 %v1131_v45, %v5313_v58  ;;  %v1172_v54 = vmul.f32 %v1171_v50, %v5326_v5  ;;  %v5422_v56 = vadd.f32 1.0, %v1221_v12 }
 0x203   : > { %v1021_v29 = vmul.f32 %v1020_v33, %v5289_v53  ;;  %vm1188_vm2 = vweird.f32 %v5391_v46  ;;  %v1112_v36 = vand.u32 2147483647, %v5402_v3  ;;  %v1114_v32 = vand.u32 2147483648, %v5402_v3 }
 0x204   : > { %v5428_v59 = vadd.f32 1.0, %v1141_v48  ;;  %vm5431_vm3 = vcmp.eq.f32.partialorder %v1192_v8, 8.507059e+37  ;;  %v1195_v5 = vor.u32 1.1754944e-38, %v1194_v1  ;;  %4475 = vrcp.f32 %v5422_v56 }
 0x205   : > { %v4472_v30 = vpop.eup %4471  ;;  %v5437_v53 = vmul.f32 %v1211_v55, %v5344_v52  ;;  %v1234_v23 = vand.u32 2147483648, %v5422_v56  ;;  %vm1108_vm4 = vweird.f32 %v5402_v3  ;;  %v1054_v6 = vadd.f32 0.001143296, %v1053_v39 }
 0x206   : > { %v1184_v16 = vmul.f32 %v4472_v30, %v5391_v46  ;;  %4477 = vrcp.f32 %v5428_v59  ;;  %v1154_v4 = vand.u32 2147483648, %v5428_v59  ;;  %v5443_v2 = vadd.f32 1.0, %v1021_v29 }
 0x207   : > { %v4474_v61 = vpop.eup %4473  ;;  %v933_v40 = vmul.f32 3.8918573e-05, %v5274_v25  ;;  %vm1189_vm5 = vweird.f32 %v4472_v30  ;;  %v1232_v9 = vand.u32 2147483647, %v5422_v56  ;;  %vm5448_vm6 = vcmp.eq.f32.partialorder %v1112_v36, 8.507059e+37 }
 0x208   : > { %v1185_v62 = vsub.f32 1.0, %v1184_v16  ;;  %v1104_v52 = vmul.f32 %v4474_v61, %v5402_v3  ;;  %v1115_v10 = vor.u32 1.1754944e-38, %v1114_v32  ;;  %v1235_v50 = vor.u32 1.1754944e-38, %v1234_v23  ;;  %vm1190_vm10 = vmor %vm1188_vm2, %vm1189_vm5 }
 0x209   : > { %v1152_v49 = vand.u32 2147483647, %v5428_v59  ;;  %4479 = vrcp.f32 %v5443_v2  ;;  %vm1228_vm7 = vweird.f32 %v5422_v56  ;;  %vm1109_vm8 = vweird.f32 %v4474_v61 }
 0x20a   : > { %v1186_v45 = vmul.f32 %v4472_v30, %v1185_v62  ;;  %v1105_v19 = vsub.f32 1.0, %v1104_v52  ;;  %v1155_v22 = vor.u32 1.1754944e-38, %v1154_v4  ;;  %v1034_v33 = vand.u32 2147483648, %v5443_v2  ;;  %v4476_v8 = vpop.eup %4475  ;;  %vm1110_vm0 = vmor %vm1108_vm4, %vm1109_vm8 }
 0x20b   : > { %vm1148_vm9 = vweird.f32 %v5428_v59  ;;  %v1055_v12 = vmul.f32 %v1054_v6, %v5320_v57  ;;  %v934_v55 = vadd.f32 0.001143296, %v933_v40  ;;  %v973_v48 = vmul.f32 3.8918573e-05, %v5294_v38 }
 0x20c   : > { %v1187_v1 = vadd.f32 %v4472_v30, %v1186_v45  ;;  %v4478_v39 = vpop.eup %4477  ;;  %v1224_v29 = vmul.f32 %v4476_v8, %v5422_v56  ;;  %vm1229_vm11 = vweird.f32 %v4476_v8  ;;  %vm5463_vm12 = vcmp.eq.f32.partialorder %v1232_v9, 8.507059e+37 }
 0x20d   : > { %v1106_v32 = vmul.f32 %v4474_v61, %v1105_v19  ;;  %v1032_v16 = vand.u32 2147483647, %v5443_v2  ;;  %v1144_v6 = vmul.f32 %v4478_v39, %v5428_v59  ;;  %vm1149_vm13 = vweird.f32 %v4478_v39 }
 0x20e   : > { %v1191_v23 = vsel %vm1190_vm10, %v4472_v30, %v1187_v1  ;;  %vm5469_vm14 = vcmp.eq.f32.partialorder %v1152_v49, 8.507059e+37  ;;  %v1035_v46 = vor.u32 1.1754944e-38, %v1034_v33  ;;  %v1225_v40 = vsub.f32 1.0, %v1224_v29  ;;  %vm1150_vm4 = vmor %vm1148_vm9, %vm1149_vm13 }
 0x20f   : > { %v1196_v4 = vsel %vm5431_vm3, %v1195_v5, %v1191_v23  ;;  %v1107_v9 = vadd.f32 %v4474_v61, %v1106_v32  ;;  %vm1028_vm15 = vweird.f32 %v5443_v2  ;;  %v1056_v52 = vadd.f32 0.014752088, %v1055_v12  ;;  %v4480_v45 = vpop.eup %4479  ;;  %vm1230_vm3 = vmor %vm1228_vm7, %vm1229_vm11 }
 0x210   : > { %v1197_v19 = vmul.f32 %v1196_v4, %v1172_v54  ;;  %v1145_v30 = vsub.f32 1.0, %v1144_v6  ;;  %v935_v49 = vmul.f32 %v934_v55, %v5274_v25  ;;  %v974_v1 = vadd.f32 0.001143296, %v973_v48 }
 0x211   : > { %v1226_v43 = vmul.f32 %v4476_v8, %v1225_v40  ;;  %v1111_v33 = vsel %vm1110_vm0, %v4474_v61, %v1107_v9  ;;  %v1024_v58 = vmul.f32 %v4480_v45, %v5443_v2  ;;  %vm1029_vm2 = vweird.f32 %v4480_v45 }
 0x212   : > { %v4292_v5 = vclamps-f32 %v1197_v19, 1.0  ;;  %v1116_v29 = vsel %vm5448_vm6, %v1115_v10, %v1111_v33  ;;  %v1146_v12 = vmul.f32 %v4478_v39, %v1145_v30  ;;  %v1057_v54 = vmul.f32 %v1056_v52, %v5320_v57  ;;  %vm1030_vm5 = vmor %vm1028_vm15, %vm1029_vm2 }
 0x213   : > { %v1227_v32 = vadd.f32 %v4476_v8, %v1226_v43  ;;  %v1117_v3 = vmul.f32 %v1116_v29, %v5414_v51  ;;  %v1025_v23 = vsub.f32 1.0, %v1024_v58  ;;  %v936_v6 = vadd.f32 0.014752088, %v935_v49 }
 0x214   : > { %v1246_v4 = vadd.f32 1.0, %v4292_v5  ;;  %v1147_v61 = vadd.f32 %v4478_v39, %v1146_v12  ;;  %v1058_v55 = vadd.f32 0.112945676, %v1057_v54  ;;  %v975_v48 = vmul.f32 %v974_v1, %v5294_v38 }
 0x215   : > { %v1231_v40 = vsel %vm1230_vm3, %v4476_v8, %v1227_v32  ;;  %v4290_v47 = vclamps-f32 %v1117_v3, 1.0  ;;  %v1026_v43 = vmul.f32 %v4480_v45, %v1025_v23  ;;  %v937_v51 = vmul.f32 %v936_v6, %v5274_v25 }
 0x216   : > { %v1254_v10 = vmul.f32 %v1246_v4, %v5398_v17  ;;  %v1236_v9 = vsel %vm5463_vm12, %v1235_v50, %v1231_v40  ;;  %v1151_v56 = vsel %vm1150_vm4, %v4478_v39, %v1147_v61  ;;  %v1059_v52 = vmul.f32 %v1058_v55, %v5320_v57 }
 0x217   : > { %v1237_v19 = vmul.f32 %v1236_v9, %v5437_v53  ;;  %v1244_v30 = vadd.f32 1.0, %v4290_v47  ;;  %v1156_v8 = vsel %vm5469_vm14, %v1155_v22, %v1151_v56  ;;  %v1027_v49 = vadd.f32 %v4480_v45, %v1026_v43 }
 0x218   : > { %1308 = vmatpush.msrb.mxu2 %v1254_v10  ;;  %v1157_v59 = vmul.f32 %v1156_v8, %v5419_v14  ;;  %v1060_v17 = vadd.f32 0.4994258, %v1059_v52  ;;  %v938_v36 = vadd.f32 0.112945676, %v937_v51  ;;  %v976_v50 = vadd.f32 0.014752088, %v975_v48 }
 0x219   : > { %v4293_v39 = vclamps-f32 %v1237_v19, 1.0  ;;  %v1252_v1 = vmul.f32 %v1244_v30, %v5353_v15  ;;  %v1031_v33 = vsel %vm1030_vm5, %v4480_v45, %v1027_v49  ;;  %vm1033_vm6 = vcmp.eq.f32.partialorder %v1032_v16, 8.507059e+37 }
 0x21a   : > { %v4291_v53 = vclamps-f32 %v1157_v59, 1.0  ;;  %v1036_v58 = vsel %vm1033_vm6, %v1035_v46, %v1031_v33  ;;  %v1061_v22 = vmul.f32 %v1060_v17, %v5320_v57  ;;  %v939_v62 = vmul.f32 %v938_v36, %v5274_v25 }
 0x21b   : > { %v911_v14 = vmul.f32 0.5, %v5330_v0  ;;  %v1247_v5 = vadd.f32 1.0, %v4293_v39  ;;  %1309 = vmatpush.msrb.mxu2 %v1252_v1  ;;  %v1037_v2 = vmul.f32 %v1036_v58, %v5405_v37  ;;  %v977_v29 = vmul.f32 %v976_v50, %v5294_v38 }
 0x21c   : > { %v909_v12 = vmul.f32 0.5, %v5305_v60  ;;  %v1245_v54 = vadd.f32 1.0, %v4291_v53  ;;  %v1062_v15 = vadd.f32 1.0, %v1061_v22  ;;  %v940_v45 = vadd.f32 0.4994258, %v939_v62 }
 0x21d   : > { %v1048_v16 = vmul.f32 %v5407_v13, %v5320_v57  ;;  %v1255_v46 = vmul.f32 %v1247_v5, %v911_v14  ;;  %v4288_v32 = vclamps-f32 %v1037_v2, 1.0  ;;  %v978_v3 = vadd.f32 0.112945676, %v977_v29 }
 0x21e   : > { %v906_v23 = vmul.f32 0.5, %v5276_v34  ;;  %4481 = vrcp.f32 %v1062_v15  ;;  %v1253_v0 = vmul.f32 %v1245_v54, %v909_v12  ;;  %v941_v37 = vmul.f32 %v940_v45, %v5274_v25 }
 0x21f   : > { %1337 = vmatpush.msrb.mxu3 %v1255_v46  ;;  %v1242_v6 = vadd.f32 1.0, %v4288_v32  ;;  %v979_v4 = vmul.f32 %v978_v3, %v5294_v38  ;;  %v928_v60 = vmul.f32 %v5338_v18, %v5274_v25  ;;  %v967_v61 = vadd.f32 0.05243302, %v5362_v7 }
 0x220   : > { %v1049_v55 = vadd.f32 0.18741608, %v1048_v16  ;;  %v942_v48 = vadd.f32 1.0, %v941_v37  ;;  %v1074_v19 = vand.u32 2147483648, %v1062_v15  ;;  %v1072_v59 = vand.u32 2147483647, %v1062_v15 }
 0x221   : > { %1338 = vmatpush.msrb.mxu3 %v1253_v0  ;;  %v1250_v13 = vmul.f32 %v1242_v6, %v906_v23  ;;  %v980_v40 = vadd.f32 0.4994258, %v979_v4  ;;  %v929_v47 = vadd.f32 0.18741608, %v928_v60  ;;  %v968_v43 = vmul.f32 %v967_v61, %v5294_v38 }
 0x222   : > { %4483 = vrcp.f32 %v942_v48  ;;  %v1050_v10 = vmul.f32 %v1049_v55, %v5320_v57  ;;  %vm1068_vm8 = vweird.f32 %v1062_v15  ;;  %v1075_v57 = vor.u32 1.1754944e-38, %v1074_v19 }
 0x223   : > { %1310 = vmatpush.msrb.mxu2 %v1250_v13  ;;  %v981_v51 = vmul.f32 %v980_v40, %v5294_v38  ;;  %v930_v7 = vmul.f32 %v929_v47, %v5274_v25  ;;  %v969_v52 = vadd.f32 0.18741608, %v968_v43  ;;  %vm1073_vm10 = vcmp.eq.f32.partialorder %v1072_v59, 8.507059e+37  ;;  %v1256_v47 = vld [vmem:[%s8010_s2 + $0x20] sm:$0xff] }
 0x224   : > { %v4482_v34 = vpop.eup %4481  ;;  %v1051_v8 = vadd.f32 1.1283791, %v1050_v10  ;;  %v954_v53 = vand.u32 2147483648, %v942_v48  ;;  %v952_v14 = vand.u32 2147483647, %v942_v48  ;;  %v907_v12 = vmul.f32 0.5, %v5291_v31 }
 0x225   : > { %v1064_v9 = vmul.f32 %v4482_v34, %v1062_v15  ;;  %v982_v56 = vadd.f32 1.0, %v981_v51  ;;  %vm1069_vm7 = vweird.f32 %v4482_v34  ;;  %v931_v50 = vadd.f32 1.1283791, %v930_v7 }
 0x226   : > { %v970_v39 = vmul.f32 %v969_v52, %v5294_v38  ;;  %vm1070_vm9 = vmor %vm1068_vm8, %vm1069_vm7  ;;  %v1052_v33 = vmul.f32 %v1051_v8, %v5297_v21  ;;  %vm948_vm12 = vweird.f32 %v942_v48  ;;  %v955_v21 = vor.u32 1.1754944e-38, %v954_v53 }
 0x227   : > { %v1065_v18 = vsub.f32 1.0, %v1064_v9  ;;  %4485 = vrcp.f32 %v982_v56  ;;  %v932_v29 = vmul.f32 %v931_v50, %v5268_v26  ;;  %vm953_vm14 = vcmp.eq.f32.partialorder %v952_v14, 8.507059e+37  ;;  %v1258_v9 = vld [vmem:[%s8010_s2 + $0x30] sm:$0xff] }
 0x228   : > { %v4484_v30 = vpop.eup %4483  ;;  %v971_v54 = vadd.f32 1.1283791, %v970_v39  ;;  %v992_v46 = vand.u32 2147483647, %v982_v56  ;;  %v994_v32 = vand.u32 2147483648, %v982_v56  ;;  %vm988_vm0 = vweird.f32 %v982_v56 }
 0x229   : > { %v1066_v49 = vmul.f32 %v4482_v34, %v1065_v18  ;;  %v944_v17 = vmul.f32 %v4484_v30, %v942_v48  ;;  %vm949_vm11 = vweird.f32 %v4484_v30  ;;  %v904_v55 = vmul.f32 0.5, %v5265_v28  ;;  %v1257_v28 = vld [vmem:[%s8010_s2 + $0x28] sm:$0xff] }
 0x22a   : > { %vm950_vm13 = vmor %vm948_vm12, %vm949_vm11  ;;  %v995_v4 = vor.u32 1.1754944e-38, %v994_v32  ;;  %v972_v60 = vmul.f32 %v971_v54, %v5279_v63  ;;  %vm993_vm3 = vcmp.eq.f32.partialorder %v992_v46, 8.507059e+37  ;;  %v905_v51 = vmul.f32 0.5, %v5272_v44  ;;  %v1259_v44 = vld [vmem:[%s8010_s2 + $0x38] sm:$0xff] }
 0x22b   : > { %v1067_v36 = vadd.f32 %v4482_v34, %v1066_v49  ;;  %v945_v1 = vsub.f32 1.0, %v944_v17  ;;  %v1272_v17 = vpop.permute.xlu1 %1271 }
 0x22d   : > { %v1071_v25 = vsel %vm1070_vm9, %v4482_v34, %v1067_v36  ;;  %v4486_v58 = vpop.eup %4485  ;;  %v946_v62 = vmul.f32 %v4484_v30, %v945_v1 }
 0x22e   : > { %v1076_v22 = vsel %vm1073_vm10, %v1075_v57, %v1071_v25  ;;  %v984_v2 = vmul.f32 %v4486_v58, %v982_v56  ;;  %vm989_vm15 = vweird.f32 %v4486_v58  ;;  %v5550_v56 = vpop.permute.xlu2 %1281 }
 0x22f   : > { %v1077_v5 = vmul.f32 %v1076_v22, %v1052_v33  ;;  %v947_v38 = vadd.f32 %v4484_v30, %v946_v62  ;;  %vm990_vm2 = vmor %vm988_vm0, %vm989_vm15 }
 0x230   : > { %v985_v45 = vsub.f32 1.0, %v984_v2 }
 0x231   : > { %v4289_v15 = vclamps-f32 %v1077_v5, 1.0  ;;  %v951_v16 = vsel %vm950_vm13, %v4484_v30, %v947_v38 }
 0x232   : > { %v956_v23 = vsel %vm953_vm14, %v955_v21, %v951_v16  ;;  %v986_v0 = vmul.f32 %v4486_v58, %v985_v45 }
 0x233   : > { %v1243_v3 = vadd.f32 1.0, %v4289_v15  ;;  %v957_v6 = vmul.f32 %v956_v23, %v932_v29 }
 0x234   : > { %v987_v26 = vadd.f32 %v4486_v58, %v986_v0 }
 0x235   : > { %v1251_v37 = vmul.f32 %v1243_v3, %v907_v12  ;;  %v4286_v31 = vclamps-f32 %v957_v6, 1.0  ;;  %v1277_v6 = vpop.permute.xlu0 %1276 }
 0x236   : > { %v991_v61 = vsel %vm990_vm2, %v4486_v58, %v987_v26  ;;  %v1267_v18 = vpop.permute.xlu2 %1266 }
 0x237   : > { %1339 = vmatpush.msrb.mxu3 %v1251_v37  ;;  %v1240_v13 = vadd.f32 1.0, %v4286_v31  ;;  %v996_v48 = vsel %vm993_vm3, %v995_v4, %v991_v61 }
 0x238   : > { %v997_v40 = vmul.f32 %v996_v48, %v972_v60 }
 0x239   : > { %v1248_v34 = vmul.f32 %v1240_v13, %v904_v55 }
 0x23a   : > { %v4287_v43 = vclamps-f32 %v997_v40, 1.0 }
 0x23b   : > { %1311 = vmatpush.msrb.mxu2 %v1248_v34 }
 0x23c   : > { %v1241_v10 = vadd.f32 1.0, %v4287_v43  ;;  %4294 = vmatmul.msk.f32.vlgmr.msrb.gmra.mxu2 %vm833_vm1, %v1256_v47 }
 0x23e   : > { %v1249_v63 = vmul.f32 %v1241_v10, %v905_v51 }
 0x240   : > { %1340 = vmatpush.msrb.mxu3 %v1249_v63 }
 0x241   : > { %4298 = vmatmul.msk.f32.vlgmr.msrb.gmra.mxu3 %vm833_vm1, %v1256_v47 }
 0x244   : > { %4295 = vmatmul.msk.f32.gmra.mxu2 %vm833_vm1, %v1257_v28 }
 0x249   : > { %4299 = vmatmul.msk.f32.gmra.mxu3 %vm833_vm1, %v1257_v28 }
 0x24c   : > { %4296 = vmatmul.msk.f32.gmra.mxu2 %vm833_vm1, %v1258_v9 }
 0x251   : > { %4300 = vmatmul.msk.f32.gmra.mxu3 %vm833_vm1, %v1258_v9 }
 0x254   : > { %4297 = vmatmul.msk.f32.gmra.mxu2 %vm833_vm1, %v1259_v44 }
 0x259   : > { %4301 = vmatmul.msk.f32.gmra.mxu3 %vm833_vm1, %v1259_v44 }
 0x2bf   : > { %v1313_v7 = vpop.f32.mrf.mxu2 }
 0x2c0   : > { %v5552_v52 = vadd.f32 %v1313_v7, %v1267_v18 }
 0x2c2   : > { %v5555_v19 = vmul.f32 0.70710677, %v5552_v52 }
 0x2c4   : > { %v1370_v30 = vmul.f32 %v5555_v19, %v5555_v19  ;;  %v1342_v8 = vpop.f32.mrf.mxu3 }
 0x2c5   : > { %v5561_v59 = vadd.f32 %v1342_v8, %v1267_v18 }
 0x2c6   : > { %v5559_v49 = vmin.f32 %v1370_v30, 16.0 }
 0x2c7   : > { %v5565_v50 = vmul.f32 0.70710677, %v5561_v59  ;;  %v1316_v39 = vpop.f32.mrf.mxu2 }
 0x2c8   : > { %v1383_v36 = vmul.f32 3.8918573e-05, %v5559_v49  ;;  %v5567_v57 = vadd.f32 %v1316_v39, %v1272_v17  ;;  %v1372_v53 = vmul.f32 2.1237322e-06, %v5559_v49 }
 0x2c9   : > { %v1410_v33 = vmul.f32 %v5565_v50, %v5565_v50 }
 0x2ca   : > { %v1384_v1 = vadd.f32 0.001143296, %v1383_v36  ;;  %v5572_v25 = vmul.f32 0.70710677, %v5567_v57  ;;  %v1373_v2 = vadd.f32 0.00028619796, %v1372_v53 }
 0x2cb   : > { %v5578_v14 = vmin.f32 %v1410_v33, 16.0 }
 0x2cc   : > { %v1450_v58 = vmul.f32 %v5572_v25, %v5572_v25  ;;  %v1345_v22 = vpop.f32.mrf.mxu3  ;;  %v1385_v62 = vmul.f32 %v1384_v1, %v5559_v49  ;;  %v1374_v15 = vmul.f32 %v1373_v2, %v5559_v49 }
 0x2cd   : > { %v5582_v29 = vadd.f32 %v1345_v22, %v1272_v17  ;;  %v1423_v54 = vmul.f32 3.8918573e-05, %v5578_v14  ;;  %v1412_v32 = vmul.f32 2.1237322e-06, %v5578_v14 }
 0x2ce   : > { %v5580_v5 = vmin.f32 %v1450_v58, 16.0  ;;  %v1386_v38 = vadd.f32 0.014752088, %v1385_v62  ;;  %v1375_v23 = vadd.f32 0.0036580483, %v1374_v15 }
 0x2cf   : > { %v5588_v21 = vmul.f32 0.70710677, %v5582_v29  ;;  %v1424_v46 = vadd.f32 0.001143296, %v1423_v54  ;;  %v1319_v3 = vpop.f32.mrf.mxu2  ;;  %v1413_v60 = vadd.f32 0.00028619796, %v1412_v32 }
 0x2d0   : > { %v1463_v12 = vmul.f32 3.8918573e-05, %v5580_v5  ;;  %v1387_v16 = vmul.f32 %v1386_v38, %v5559_v49  ;;  %v5596_v4 = vadd.f32 %v1319_v3, %v1277_v6  ;;  %v1376_v61 = vmul.f32 %v1375_v23, %v5559_v49 }
 0x2d1   : > { %v1490_v0 = vmul.f32 %v5588_v21, %v5588_v21  ;;  %v1425_v31 = vmul.f32 %v1424_v46, %v5578_v14  ;;  %v1414_v43 = vmul.f32 %v1413_v60, %v5578_v14  ;;  %v1452_v51 = vmul.f32 2.1237322e-06, %v5580_v5 }
 0x2d2   : > { %v1464_v45 = vadd.f32 0.001143296, %v1463_v12  ;;  %v1388_v26 = vadd.f32 0.112945676, %v1387_v16  ;;  %v5603_v34 = vmul.f32 0.70710677, %v5596_v4 }
 0x2d3   : > { %v5599_v55 = vmin.f32 %v1490_v0, 16.0  ;;  %v1426_v40 = vadd.f32 0.014752088, %v1425_v31  ;;  %v1377_v10 = vadd.f32 0.05243302, %v1376_v61 }
 0x2d4   : > { %v1465_v37 = vmul.f32 %v1464_v45, %v5580_v5  ;;  %v1389_v48 = vmul.f32 %v1388_v26, %v5559_v49  ;;  %v1348_v47 = vpop.f32.mrf.mxu3  ;;  %v1530_v7 = vmul.f32 %v5603_v34, %v5603_v34  ;;  %v1415_v30 = vadd.f32 0.0036580483, %v1414_v43 }
 0x2d5   : > { %v1503_v63 = vmul.f32 3.8918573e-05, %v5599_v55  ;;  %v5609_v9 = vadd.f32 %v1348_v47, %v1277_v6  ;;  %v1427_v18 = vmul.f32 %v1426_v40, %v5578_v14  ;;  %v1453_v8 = vadd.f32 0.00028619796, %v1452_v51 }
 0x2d6   : > { %v1466_v13 = vadd.f32 0.014752088, %v1465_v37  ;;  %v1390_v44 = vadd.f32 0.4994258, %v1389_v48  ;;  %v1378_v17 = vmul.f32 %v1377_v10, %v5559_v49  ;;  %v5619_v58 = vmin.f32 %v1530_v7, 16.0 }
 0x2d7   : > { %v1504_v36 = vadd.f32 0.001143296, %v1503_v63  ;;  %v5616_v1 = vmul.f32 0.70710677, %v5609_v9  ;;  %v1428_v53 = vadd.f32 0.112945676, %v1427_v18  ;;  %v1416_v22 = vmul.f32 %v1415_v30, %v5578_v14  ;;  %v1322_v2 = vpop.f32.mrf.mxu2 }
 0x2d8   : > { %v1467_v28 = vmul.f32 %v1466_v13, %v5580_v5  ;;  %v1391_v33 = vmul.f32 %v1390_v44, %v5559_v49  ;;  %v1454_v62 = vmul.f32 %v1453_v8, %v5580_v5  ;;  %v1379_v12 = vadd.f32 0.18741608, %v1378_v17 }
 0x2d9   : > { %v1505_v38 = vmul.f32 %v1504_v36, %v5599_v55  ;;  %v1570_v15 = vmul.f32 %v5616_v1, %v5616_v1  ;;  %v1429_v16 = vmul.f32 %v1428_v53, %v5578_v14  ;;  %v1543_v46 = vmul.f32 3.8918573e-05, %v5619_v58 }
 0x2da   : > { %v1468_v39 = vadd.f32 0.112945676, %v1467_v28  ;;  %v5627_v45 = vadd.f32 1.0, %v1391_v33  ;;  %v5632_v32 = vadd.f32 %v1322_v2, %v5550_v56  ;;  %v1417_v3 = vadd.f32 0.05243302, %v1416_v22 }
 0x2db   : > { %v1455_v23 = vadd.f32 0.0036580483, %v1454_v62  ;;  %v1380_v0 = vmul.f32 %v1379_v12, %v5559_v49  ;;  %v1492_v6 = vmul.f32 2.1237322e-06, %v5599_v55  ;;  %v1506_v37 = vadd.f32 0.014752088, %v1505_v38 }
 0x2dc   : > { %v1469_v54 = vmul.f32 %v1468_v39, %v5580_v5  ;;  %v1544_v26 = vadd.f32 0.001143296, %v1543_v46  ;;  %v1532_v60 = vmul.f32 2.1237322e-06, %v5619_v58  ;;  %v5637_v61 = vmin.f32 %v1570_v15, 16.0 }
 0x2dd   : > { %4487 = vrcp.f32 %v5627_v45  ;;  %v1430_v13 = vadd.f32 0.4994258, %v1429_v16  ;;  %v5641_v48 = vmul.f32 0.70710677, %v5632_v32  ;;  %v1456_v40 = vmul.f32 %v1455_v23, %v5580_v5 }
 0x2de   : > { %v1470_v31 = vadd.f32 0.4994258, %v1469_v54  ;;  %v1381_v47 = vadd.f32 1.1283791, %v1380_v0  ;;  %v1418_v49 = vmul.f32 %v1417_v3, %v5578_v14  ;;  %v1493_v43 = vadd.f32 0.00028619796, %v1492_v6 }
 0x2df   : > { %v1545_v51 = vmul.f32 %v1544_v26, %v5619_v58  ;;  %v1507_v63 = vmul.f32 %v1506_v37, %v5599_v55  ;;  %v1533_v28 = vadd.f32 0.00028619796, %v1532_v60  ;;  %v1583_v44 = vmul.f32 3.8918573e-05, %v5637_v61 }
 0x2e0   : > { %v1471_v10 = vmul.f32 %v1470_v31, %v5580_v5  ;;  %v5650_v18 = vmul.f32 0.5, %v5552_v52  ;;  %v1431_v7 = vmul.f32 %v1430_v13, %v5578_v14  ;;  %v1610_v8 = vmul.f32 %v5641_v48, %v5641_v48 }
 0x2e1   : > { %v1546_v30 = vadd.f32 0.014752088, %v1545_v51  ;;  %v5656_v17 = vmul.f32 0.5, %v5567_v57  ;;  %v1457_v36 = vadd.f32 0.05243302, %v1456_v40  ;;  %v5659_v39 = vmul.f32 0.5, %v5596_v4 }
 0x2e2   : > { %v1584_v33 = vadd.f32 0.001143296, %v1583_v44  ;;  %v1419_v22 = vadd.f32 0.18741608, %v1418_v49  ;;  %v1494_v52 = vmul.f32 %v1493_v43, %v5599_v55  ;;  %v5665_v2 = vmin.f32 %v1610_v8, 16.0  ;;  %v1351_v44 = vpop.f32.mrf.mxu3 }
 0x2e3   : > { %v5661_v53 = vpop.eup %4487  ;;  %v1547_v62 = vmul.f32 %v1546_v30, %v5619_v58  ;;  %v5668_v12 = vmul.f32 %v1381_v47, %v5555_v19  ;;  %v5670_v38 = vadd.f32 1.0, %v1471_v10  ;;  %v1508_v57 = vadd.f32 0.112945676, %v1507_v63 }
 0x2e4   : > { %v1534_v54 = vmul.f32 %v1533_v28, %v5619_v58  ;;  %v1402_v4 = vand.u32 2147483647, %v5627_v45  ;;  %v5674_v15 = vadd.f32 1.0, %v1431_v7  ;;  %v1585_v46 = vmul.f32 %v1584_v33, %v5637_v61 }
 0x2e5   : > { %v1548_v16 = vadd.f32 0.112945676, %v1547_v62  ;;  %v1394_v3 = vmul.f32 %v5661_v53, %v5627_v45  ;;  %v1404_v23 = vand.u32 2147483648, %v5627_v45  ;;  %v1458_v19 = vmul.f32 %v1457_v36, %v5580_v5 }
 0x2e6   : > { %v1612_v0 = vmul.f32 2.1237322e-06, %v5665_v2  ;;  %v1495_v6 = vadd.f32 0.0036580483, %v1494_v52  ;;  %v1586_v26 = vadd.f32 0.014752088, %v1585_v46  ;;  %4489 = vrcp.f32 %v5670_v38 }
 0x2e7   : > { %v1549_v37 = vmul.f32 %v1548_v16, %v5619_v58  ;;  %v1623_v31 = vmul.f32 3.8918573e-05, %v5665_v2  ;;  %v1509_v60 = vmul.f32 %v1508_v57, %v5599_v55  ;;  %v1535_v13 = vadd.f32 0.0036580483, %v1534_v54 }
 0x2e8   : > { %v1613_v40 = vadd.f32 0.00028619796, %v1612_v0  ;;  %4491 = vrcp.f32 %v5674_v15  ;;  %v1587_v49 = vmul.f32 %v1586_v26, %v5637_v61  ;;  %v1395_v51 = vsub.f32 1.0, %v1394_v3 }
 0x2e9   : > { %v1550_v47 = vadd.f32 0.4994258, %v1549_v37  ;;  %v1624_v43 = vadd.f32 0.001143296, %v1623_v31  ;;  %v1420_v10 = vmul.f32 %v1419_v22, %v5578_v14  ;;  %v1459_v63 = vadd.f32 0.18741608, %v1458_v19 }
 0x2ea   : > { %v1572_v28 = vmul.f32 2.1237322e-06, %v5637_v61  ;;  %v1588_v30 = vadd.f32 0.112945676, %v1587_v49  ;;  %v1614_v8 = vmul.f32 %v1613_v40, %v5665_v2  ;;  %v5693_v33 = vor.u32 1.1754944e-38, %v1404_v23 }
 0x2eb   : > { %v1551_v7 = vmul.f32 %v1550_v47, %v5619_v58  ;;  %v1625_v36 = vmul.f32 %v1624_v43, %v5665_v2  ;;  %v1496_v52 = vmul.f32 %v1495_v6, %v5599_v55  ;;  %v1510_v62 = vadd.f32 0.4994258, %v1509_v60 }
 0x2ec   : > { %v1536_v57 = vmul.f32 %v1535_v13, %v5619_v58  ;;  %vm1398_vm4 = vweird.f32 %v5627_v45  ;;  %v1589_v22 = vmul.f32 %v1588_v30, %v5637_v61  ;;  %v5702_v16 = vadd.f32 %v1351_v44, %v5550_v56  ;;  %v5704_v46 = vpop.eup %4489 }
 0x2ed   : > { %v5698_v14 = vadd.f32 1.0, %v1551_v7  ;;  %v1626_v54 = vadd.f32 0.014752088, %v1625_v36  ;;  %v5706_v3 = vadd.f32 1.1283791, %v1420_v10  ;;  %v1460_v19 = vmul.f32 %v1459_v63, %v5580_v5 }
 0x2ee   : > { %v1442_v23 = vand.u32 2147483647, %v5674_v15  ;;  %v1573_v0 = vadd.f32 0.00028619796, %v1572_v28  ;;  %v5710_v6 = vpop.eup %4491  ;;  %v1396_v37 = vmul.f32 %v5661_v53, %v1395_v51  ;;  %v1444_v26 = vand.u32 2147483648, %v5674_v15 }
 0x2ef   : > { %4493 = vrcp.f32 %v5698_v14  ;;  %v1615_v31 = vadd.f32 0.0036580483, %v1614_v8  ;;  %vm1399_vm5 = vweird.f32 %v5661_v53  ;;  %v1497_v56 = vadd.f32 0.05243302, %v1496_v52 }
 0x2f0   : > { %v1511_v60 = vmul.f32 %v1510_v62, %v5599_v55  ;;  %v1590_v13 = vadd.f32 0.4994258, %v1589_v22  ;;  %v1474_v40 = vmul.f32 %v5704_v46, %v5670_v38  ;;  %v1537_v5 = vadd.f32 0.05243302, %v1536_v57  ;;  %vm5756_vm7 = vmor %vm1398_vm4, %vm1399_vm5 }
 0x2f1   : > { %v1627_v47 = vmul.f32 %v1626_v54, %v5665_v2  ;;  %v5721_v49 = vmul.f32 0.70710677, %v5702_v16  ;;  %v5725_v43 = vmul.f32 %v5710_v6, %v5674_v15  ;;  %v1461_v51 = vadd.f32 1.1283791, %v1460_v19 }
 0x2f2   : > { %v1574_v10 = vmul.f32 %v1573_v0, %v5637_v61  ;;  %v1591_v63 = vmul.f32 %v1590_v13, %v5637_v61  ;;  %v1397_v28 = vadd.f32 %v5661_v53, %v1396_v37  ;;  %vm5730_vm6 = vcmp.eq.f32.partialorder %v1402_v4, 8.507059e+37 }
 0x2f3   : > { %v1616_v7 = vmul.f32 %v1615_v31, %v5665_v2  ;;  %v1628_v30 = vadd.f32 0.112945676, %v1627_v47  ;;  %v1650_v8 = vmul.f32 %v5721_v49, %v5721_v49  ;;  %v5737_v36 = vor.u32 1.1754944e-38, %v1444_v26 }
 0x2f4   : > { %v5739_v52 = vadd.f32 1.0, %v1511_v60  ;;  %v5741_v62 = vadd.f32 1.0, %v1591_v63  ;;  %v5744_v57 = vmul.f32 0.5, %v5632_v32  ;;  %v1475_v4 = vsub.f32 1.0, %v1474_v40 }
 0x2f5   : > { %v5746_v22 = vpop.eup %4493  ;;  %v1538_v54 = vmul.f32 %v1537_v5, %v5619_v58  ;;  %v1629_v19 = vmul.f32 %v1628_v30, %v5665_v2  ;;  %v5750_v0 = vmin.f32 %v1650_v8, 16.0  ;;  %v1435_v32 = vsub.f32 1.0, %v5725_v43 }
 0x2f6   : > { %v1498_v26 = vmul.f32 %v1497_v56, %v5599_v55  ;;  %v1554_v31 = vmul.f32 %v5746_v22, %v5698_v14  ;;  %v1575_v60 = vadd.f32 0.0036580483, %v1574_v10  ;;  %v1401_v13 = vsel %vm5756_vm7, %v5661_v53, %v1397_v28 }
 0x2f7   : > { %v5768_v40 = vmul.f32 %v1461_v51, %v5572_v25  ;;  %v1617_v45 = vadd.f32 0.05243302, %v1616_v7  ;;  %v1630_v5 = vadd.f32 0.4994258, %v1629_v19  ;;  %4495 = vrcp.f32 %v5741_v62 }
 0x2f8   : > { %v1555_v47 = vsub.f32 1.0, %v1554_v31  ;;  %v1652_v43 = vmul.f32 2.1237322e-06, %v5750_v0  ;;  %v1663_v56 = vmul.f32 3.8918573e-05, %v5750_v0  ;;  %v1476_v63 = vmul.f32 %v5704_v46, %v1475_v4 }
 0x2f9   : > { %vm1478_vm8 = vweird.f32 %v5670_v38  ;;  %4497 = vrcp.f32 %v5739_v52  ;;  %v1539_v10 = vadd.f32 0.18741608, %v1538_v54  ;;  %v1631_v53 = vmul.f32 %v1630_v5, %v5665_v2 }
 0x2fa   : > { %v1556_v25 = vmul.f32 %v5746_v22, %v1555_v47  ;;  %v1576_v51 = vmul.f32 %v1575_v60, %v5637_v61  ;;  %v1653_v28 = vadd.f32 0.00028619796, %v1652_v43  ;;  %v1664_v7 = vadd.f32 0.001143296, %v1663_v56 }
 0x2fb   : > { %v1482_v30 = vand.u32 2147483647, %v5670_v38  ;;  %v1484_v8 = vand.u32 2147483648, %v5670_v38  ;;  %v1618_v19 = vmul.f32 %v1617_v45, %v5665_v2  ;;  %v5782_v4 = vadd.f32 1.0, %v1631_v53 }
 0x2fc   : > { %v1406_v54 = vsel %vm5730_vm6, %v5693_v33, %v1401_v13  ;;  %v1499_v37 = vadd.f32 0.18741608, %v1498_v26  ;;  %v1654_v31 = vmul.f32 %v1653_v28, %v5750_v0  ;;  %v1665_v5 = vmul.f32 %v1664_v7, %v5750_v0 }
 0x2fd   : > { %v1540_v60 = vmul.f32 %v1539_v10, %v5619_v58  ;;  %v1557_v47 = vadd.f32 %v5746_v22, %v1556_v25  ;;  %vm1559_vm9 = vweird.f32 %v5746_v22  ;;  %4499 = vrcp.f32 %v5782_v4  ;;  %v5793_v45 = vpop.eup %4495 }
 0x2fe   : > { %v1477_v43 = vadd.f32 %v5704_v46, %v1476_v63  ;;  %vm1479_vm10 = vweird.f32 %v5704_v46  ;;  %v1564_v33 = vand.u32 2147483648, %v5698_v14  ;;  %v1577_v44 = vadd.f32 0.05243302, %v1576_v51 }
 0x2ff   : > { %v5798_v26 = vpop.eup %4497  ;;  %vm1558_vm11 = vweird.f32 %v5698_v14  ;;  %v1562_v58 = vand.u32 2147483647, %v5698_v14  ;;  %v1619_v13 = vadd.f32 0.18741608, %v1618_v19  ;;  %v1666_v56 = vadd.f32 0.014752088, %v1665_v5  ;;  %vm5826_vm14 = vmor %vm1478_vm8, %vm1479_vm10 }
 0x300   : > { %v5803_v10 = vmul.f32 %v1406_v54, %v5668_v12  ;;  %v1436_v53 = vmul.f32 %v5710_v6, %v1435_v32  ;;  %vm5806_vm12 = vcmp.eq.f32.partialorder %v1482_v30, 8.507059e+37  ;;  %vm5812_vm13 = vmor %vm1558_vm11, %vm1559_vm9  ;;  %v1655_v51 = vadd.f32 0.0036580483, %v1654_v31 }
 0x301   : > { %v1541_v28 = vadd.f32 1.1283791, %v1540_v60  ;;  %v1561_v14 = vsel %vm5812_vm13, %v5746_v22, %v1557_v47  ;;  %v1594_v12 = vmul.f32 %v5793_v45, %v5741_v62  ;;  %v1667_v32 = vmul.f32 %v1666_v56, %v5750_v0 }
 0x302   : > { %v1485_v30 = vor.u32 1.1754944e-38, %v1484_v8  ;;  %v1514_v19 = vmul.f32 %v5798_v26, %v5739_v52  ;;  %v1565_v54 = vor.u32 1.1754944e-38, %v1564_v33  ;;  %v1578_v22 = vmul.f32 %v1577_v44, %v5637_v61 }
 0x303   : > { %v4500_v31 = vpop.eup %4499  ;;  %v1481_v5 = vsel %vm5826_vm14, %v5704_v46, %v1477_v43  ;;  %vm1563_vm15 = vcmp.eq.f32.partialorder %v1562_v58, 8.507059e+37  ;;  %v1620_v60 = vmul.f32 %v1619_v13, %v5665_v2  ;;  %v1668_v38 = vadd.f32 0.112945676, %v1667_v32 }
 0x304   : > { %vm1439_vm0 = vweird.f32 %v5710_v6  ;;  %v1500_v47 = vmul.f32 %v1499_v37, %v5599_v55  ;;  %v1566_v8 = vsel %vm1563_vm15, %v1565_v54, %v1561_v14  ;;  %v1634_v56 = vmul.f32 %v4500_v31, %v5782_v4 }
 0x305   : > { %v1656_v33 = vmul.f32 %v1655_v51, %v5750_v0  ;;  %v5842_v44 = vadd.f32 %v5710_v6, %v1436_v53  ;;  %v1542_v25 = vmul.f32 %v1541_v28, %v5603_v34  ;;  %v1595_v7 = vsub.f32 1.0, %v1594_v12 }
 0x306   : > { %v1669_v46 = vmul.f32 %v1668_v38, %v5750_v0  ;;  %vm1438_vm2 = vweird.f32 %v5674_v15  ;;  %v1486_v2 = vsel %vm5806_vm12, %v1485_v30, %v1481_v5  ;;  %v1515_v43 = vsub.f32 1.0, %v1514_v19 }
 0x307   : > { %v1579_v55 = vadd.f32 0.18741608, %v1578_v22  ;;  %v1635_v37 = vsub.f32 1.0, %v1634_v56  ;;  %v1567_v58 = vmul.f32 %v1566_v8, %v1542_v25  ;;  %v1621_v13 = vadd.f32 1.1283791, %v1620_v60  ;;  %vm5877_vm10 = vmor %vm1438_vm2, %vm1439_vm0 }
 0x308   : > { %v1644_v51 = vand.u32 2147483648, %v5782_v4  ;;  %v1670_v14 = vadd.f32 0.4994258, %v1669_v46  ;;  %vm1639_vm3 = vweird.f32 %v4500_v31  ;;  %v1642_v34 = vand.u32 2147483647, %v5782_v4 }
 0x309   : > { %v1636_v53 = vmul.f32 %v4500_v31, %v1635_v37  ;;  %v1657_v28 = vadd.f32 0.05243302, %v1656_v33  ;;  %v4302_v12 = vclamps-f32 %v5803_v10, 1.0  ;;  %v1501_v32 = vadd.f32 1.1283791, %v1500_v47 }
 0x30a   : > { %v1596_v54 = vmul.f32 %v5793_v45, %v1595_v7  ;;  %v1671_v63 = vmul.f32 %v1670_v14, %v5750_v0  ;;  %vm5856_vm4 = vcmp.eq.f32.partialorder %v1442_v23, 8.507059e+37  ;;  %v1487_v19 = vmul.f32 %v1486_v2, %v5768_v40 }
 0x30b   : > { %v1516_v22 = vmul.f32 %v5798_v26, %v1515_v43  ;;  %v1637_v5 = vadd.f32 %v4500_v31, %v1636_v53  ;;  %vm1638_vm5 = vweird.f32 %v5782_v4  ;;  %v4306_v60 = vclamps-f32 %v1567_v58, 1.0 }
 0x30c   : > { %v1580_v10 = vmul.f32 %v1579_v55, %v5637_v61  ;;  %vm1640_vm6 = vmor %vm1638_vm5, %vm1639_vm3  ;;  %v1645_v38 = vor.u32 1.1754944e-38, %v1644_v51  ;;  %v5864_v47 = vadd.f32 1.0, %v1671_v63  ;;  %v1622_v8 = vmul.f32 %v1621_v13, %v5641_v48 }
 0x30d   : > { %v1641_v23 = vsel %vm1640_vm6, %v4500_v31, %v1637_v5  ;;  %vm1643_vm7 = vcmp.eq.f32.partialorder %v1642_v34, 8.507059e+37  ;;  %v1658_v56 = vmul.f32 %v1657_v28, %v5750_v0  ;;  %v1597_v40 = vadd.f32 %v5793_v45, %v1596_v54 }
 0x30e   : > { %vm1599_vm8 = vweird.f32 %v5793_v45  ;;  %v1646_v33 = vsel %vm1643_vm7, %v1645_v38, %v1641_v23  ;;  %4501 = vrcp.f32 %v5864_v47  ;;  %v4304_v4 = vclamps-f32 %v1487_v19, 1.0 }
 0x30f   : > { %vm1519_vm9 = vweird.f32 %v5798_v26  ;;  %v1604_v61 = vand.u32 2147483648, %v5741_v62  ;;  %v1647_v25 = vmul.f32 %v1646_v33, %v1622_v8  ;;  %v1517_v31 = vadd.f32 %v5798_v26, %v1516_v22 }
 0x310   : > { %v1694_v7 = vadd.f32 1.0, %v4306_v60  ;;  %vm1598_vm11 = vweird.f32 %v5741_v62  ;;  %v1602_v46 = vand.u32 2147483647, %v5741_v62  ;;  %v1690_v2 = vadd.f32 1.0, %v4302_v12 }
 0x311   : > { %v1441_v43 = vsel %vm5877_vm10, %v5710_v6, %v5842_v44  ;;  %vm5888_vm12 = vmor %vm1598_vm11, %vm1599_vm8  ;;  %v4308_v15 = vclamps-f32 %v1647_v25, 1.0  ;;  %v1659_v37 = vadd.f32 0.18741608, %v1658_v56  ;;  %vm1518_vm13 = vweird.f32 %v5739_v52  ;;  %v1716_v6 = vld [vmem:[%s8010_s2 + $0x50] sm:$0xff] }
 0x312   : > { %v1524_v58 = vand.u32 2147483648, %v5739_v52  ;;  %v1581_v13 = vadd.f32 1.1283791, %v1580_v10  ;;  %v1601_v62 = vsel %vm5888_vm12, %v5793_v45, %v1597_v40  ;;  %v1692_v51 = vadd.f32 1.0, %v4304_v4  ;;  %vm5899_vm14 = vmor %vm1518_vm13, %vm1519_vm9 }
 0x313   : > { %v1522_v44 = vand.u32 2147483647, %v5739_v52  ;;  %v1605_v14 = vor.u32 1.1754944e-38, %v1604_v61  ;;  %v1696_v53 = vadd.f32 1.0, %v4308_v15  ;;  %v1446_v28 = vsel %vm5856_vm4, %v5737_v36, %v1441_v43  ;;  %v1715_v15 = vld [vmem:[%s8010_s2 + $0x48] sm:$0xff] }
 0x314   : > { %v4502_v34 = vpop.eup %4501  ;;  %v1521_v45 = vsel %vm5899_vm14, %v5798_v26, %v1517_v31  ;;  %v1702_v12 = vmul.f32 %v1694_v7, %v5659_v39  ;;  %vm1603_vm15 = vcmp.eq.f32.partialorder %v1602_v46, 8.507059e+37  ;;  %v1660_v19 = vmul.f32 %v1659_v37, %v5750_v0 }
 0x315   : > { %v1606_v54 = vsel %vm1603_vm15, %v1605_v14, %v1601_v62  ;;  %v1704_v63 = vmul.f32 %v1696_v53, %v5744_v57  ;;  %v1674_v52 = vmul.f32 %v4502_v34, %v5864_v47  ;;  %v1698_v22 = vmul.f32 %v1690_v2, %v5650_v18  ;;  %v8083_v62 = vld [vmem:[#allocation5_spill] sm:$0xff] }
 0x316   : > { %v1502_v5 = vmul.f32 %v1501_v32, %v5588_v21  ;;  %v1525_v30 = vor.u32 1.1754944e-38, %v1524_v58  ;;  %v1582_v36 = vmul.f32 %v1581_v13, %v5616_v1  ;;  %v1700_v60 = vmul.f32 %v1692_v51, %v5656_v17  ;;  %v1722_v14 = vld [vmem:[%s8010_s2 + $0x80] sm:$0xff]  ;;  %v1723_v53 = vld [vmem:[%s8010_s2 + $0x88] sm:$0xff] }
 0x317   : > { %vm1523_vm0 = vcmp.eq.f32.partialorder %v1522_v44, 8.507059e+37  ;;  %v1712_v39 = vadd.f32 %v1704_v63, %v5169_v41  ;;  %v1675_v26 = vsub.f32 1.0, %v1674_v52  ;;  %v1684_v57 = vand.u32 2147483648, %v5864_v47  ;;  %v1721_v44 = vld [vmem:[%s8010_s2 + $0x78] sm:$0xff]  ;;  %v6016_v52 = vpop.permute.xlu0 %1783 }
 0x318   : > { %v1526_v10 = vsel %vm1523_vm0, %v1525_v30, %v1521_v45  ;;  %v1607_v38 = vmul.f32 %v1606_v54, %v1582_v36  ;;  %v1710_v0 = vadd.f32 %v1702_v12, %v5177_v35  ;;  %v1661_v8 = vadd.f32 1.1283791, %v1660_v19  ;;  %v1726_v45 = vld [vmem:[%s8010_s2 + $0xa0] sm:$0xff]  ;;  %v1727_v12 = vld [vmem:[%s8010_s2 + $0xa8] sm:$0xff]  ;;  %v1728_v54 = vld [vmem:[%s8010_s2 + $0xb0] sm:$0xff]  ;;  %v6014_v19 = vpop.permute.xlu1 %1778  ;;  %v6022_v36 = vpop.permute.xlu2 %1773 }
 0x319   : > { %v1676_v23 = vmul.f32 %v4502_v34, %v1675_v26  ;;  %vm1679_vm2 = vweird.f32 %v4502_v34  ;;  %v1682_v21 = vand.u32 2147483647, %v5864_v47  ;;  %1886 = vmatpush.msra.mxu2 %v1712_v39  ;;  %v1422_v1 = vmul.f32 %v5706_v3, %v5565_v50  ;;  %v1714_v50 = vld [vmem:[%s8010_s2 + $0x40] sm:$0xff]  ;;  %v1729_v63 = vld [vmem:[%s8010_s2 + $0xb8] sm:$0xff] }
 0x31a   : > { %v1527_v18 = vmul.f32 %v1526_v10, %v1502_v5  ;;  %vm1678_vm3 = vweird.f32 %v5864_v47  ;;  %v1708_v41 = vadd.f32 %v1700_v60, %v5203_v42  ;;  %v1685_v56 = vor.u32 1.1754944e-38, %v1684_v57 }
 0x31b   : > { %v1677_v17 = vadd.f32 %v4502_v34, %v1676_v23  ;;  %1887 = vmatpush.msra.mxu2 %v1710_v0  ;;  %v1447_v32 = vmul.f32 %v1446_v28, %v1422_v1  ;;  %vm1680_vm4 = vmor %vm1678_vm3, %vm1679_vm2  ;;  %v1706_v35 = vadd.f32 %v1698_v22, %v5223_v20  ;;  %v4307_v40 = vclamps-f32 %v1607_v38, 1.0  ;;  %v1725_v28 = vld [vmem:[%s8010_s2 + $0x98] sm:$0xff] }
 0x31c   : > { %v1662_v33 = vmul.f32 %v1661_v8, %v5721_v49  ;;  %vm1683_vm5 = vcmp.eq.f32.partialorder %v1682_v21, 8.507059e+37  ;;  %v4305_v47 = vclamps-f32 %v1527_v18, 1.0  ;;  %v1359_v31 = vmul.f32 0.5, %v5609_v9 }
 0x31d   : > { %v1681_v4 = vsel %vm1680_vm4, %v4502_v34, %v1677_v17  ;;  %1888 = vmatpush.msra.mxu2 %v1708_v41  ;;  %v4303_v42 = vclamps-f32 %v1447_v32, 1.0  ;;  %v1695_v25 = vadd.f32 1.0, %v4307_v40  ;;  %v1361_v49 = vmul.f32 0.5, %v5702_v16  ;;  %v1724_v34 = vld [vmem:[%s8010_s2 + $0x90] sm:$0xff] }
 0x31e   : > { %v1686_v3 = vsel %vm1683_vm5, %v1685_v56, %v1681_v4  ;;  %v1693_v20 = vadd.f32 1.0, %v4305_v47  ;;  %v1357_v2 = vmul.f32 0.5, %v5582_v29  ;;  %v1355_v37 = vmul.f32 0.5, %v5561_v59  ;;  %v1720_v59 = vld [vmem:[%s8010_s2 + $0x70] sm:$0xff] }
 0x31f   : > { %v1687_v61 = vmul.f32 %v1686_v3, %v1662_v33  ;;  %1889 = vmatpush.msra.mxu2 %v1706_v35  ;;  %v1691_v46 = vadd.f32 1.0, %v4303_v42  ;;  %v1703_v43 = vmul.f32 %v1695_v25, %v1359_v31  ;;  %v6019_v30 = vpop.permute.xlu0 %1768 }
 0x320   : > { %4310 = vmatmul.msk.f32.vlgmr.msra.gmra.mxu2 %vm833_vm1, %v1714_v50  ;;  %v1701_v58 = vmul.f32 %v1693_v20, %v1357_v2  ;;  %v1764_v5 = vpop.permute.xlu1 %1763  ;;  %v1759_v8 = vpop.permute.xlu2 %1758 }
 0x321   : > { %v4309_v48 = vclamps-f32 %v1687_v61, 1.0  ;;  %v1699_v9 = vmul.f32 %v1691_v46, %v1355_v37  ;;  %v1711_v16 = vadd.f32 %v1703_v43, %v5182_v24  ;;  %v1718_v24 = vld [vmem:[%s8010_s2 + $0x60] sm:$0xff] }
 0x322   : > { %v1709_v29 = vadd.f32 %v1701_v58, %v5213_v11  ;;  %v1719_v11 = vld [vmem:[%s8010_s2 + $0x68] sm:$0xff] }
 0x323   : > { %v1697_v7 = vadd.f32 1.0, %v4309_v48  ;;  %v1707_v51 = vadd.f32 %v1699_v9, %v8083_v62 }
 0x325   : > { %v1705_v55 = vmul.f32 %v1697_v7, %v1361_v49 }
 0x327   : > { %v1713_v13 = vadd.f32 %v1705_v55, %v5172_v27  ;;  %v1717_v27 = vld [vmem:[%s8010_s2 + $0x58] sm:$0xff]  ;;  %v1754_v26 = vpop.permute.xlu0 %1753 }
 0x328   : > { %4311 = vmatmul.msk.f32.gmra.mxu2 %vm833_vm1, %v1715_v15  ;;  %v1749_v39 = vpop.permute.xlu1 %1748 }
 0x329   : > { %1951 = vmatpush.msra.mxu3 %v1713_v13 }
 0x32b   : > { %1952 = vmatpush.msra.mxu3 %v1711_v16 }
 0x32d   : > { %1953 = vmatpush.msra.mxu3 %v1709_v29 }
 0x32f   : > { %1954 = vmatpush.msra.mxu3 %v1707_v51 }
 0x330   : > { %4326 = vmatmul.msk.f32.vlgmr.msra.gmra.mxu3 %vm833_vm1, %v1714_v50  ;;  %4312 = vmatmul.msk.f32.gmra.mxu2 %vm833_vm1, %v1716_v6 }
 0x338   : > { %4327 = vmatmul.msk.f32.gmra.mxu3 %vm833_vm1, %v1715_v15  ;;  %4313 = vmatmul.msk.f32.gmra.mxu2 %vm833_vm1, %v1717_v27 }
 0x340   : > { %4328 = vmatmul.msk.f32.gmra.mxu3 %vm833_vm1, %v1716_v6  ;;  %4314 = vmatmul.msk.f32.gmra.mxu2 %vm833_vm1, %v1718_v24 }
 0x348   : > { %4329 = vmatmul.msk.f32.gmra.mxu3 %vm833_vm1, %v1717_v27  ;;  %4315 = vmatmul.msk.f32.gmra.mxu2 %vm833_vm1, %v1719_v11 }
 0x350   : > { %4330 = vmatmul.msk.f32.gmra.mxu3 %vm833_vm1, %v1718_v24  ;;  %4316 = vmatmul.msk.f32.gmra.mxu2 %vm833_vm1, %v1720_v59 }
 0x358   : > { %4331 = vmatmul.msk.f32.gmra.mxu3 %vm833_vm1, %v1719_v11  ;;  %4317 = vmatmul.msk.f32.gmra.mxu2 %vm833_vm1, %v1721_v44 }
 0x360   : > { %4332 = vmatmul.msk.f32.gmra.mxu3 %vm833_vm1, %v1720_v59  ;;  %4318 = vmatmul.msk.f32.gmra.mxu2 %vm833_vm1, %v1722_v14 }
 0x368   : > { %4333 = vmatmul.msk.f32.gmra.mxu3 %vm833_vm1, %v1721_v44  ;;  %4319 = vmatmul.msk.f32.gmra.mxu2 %vm833_vm1, %v1723_v53 }
 0x370   : > { %4334 = vmatmul.msk.f32.gmra.mxu3 %vm833_vm1, %v1722_v14  ;;  %4320 = vmatmul.msk.f32.gmra.mxu2 %vm833_vm1, %v1724_v34 }
 0x378   : > { %4335 = vmatmul.msk.f32.gmra.mxu3 %vm833_vm1, %v1723_v53  ;;  %4321 = vmatmul.msk.f32.gmra.mxu2 %vm833_vm1, %v1725_v28 }
 0x380   : > { %4336 = vmatmul.msk.f32.gmra.mxu3 %vm833_vm1, %v1724_v34  ;;  %4322 = vmatmul.msk.f32.gmra.mxu2 %vm833_vm1, %v1726_v45 }
 0x388   : > { %4337 = vmatmul.msk.f32.gmra.mxu3 %vm833_vm1, %v1725_v28  ;;  %4323 = vmatmul.msk.f32.gmra.mxu2 %vm833_vm1, %v1727_v12 }
 0x390   : > { %4338 = vmatmul.msk.f32.gmra.mxu3 %vm833_vm1, %v1726_v45  ;;  %4324 = vmatmul.msk.f32.gmra.mxu2 %vm833_vm1, %v1728_v54 }
 0x398   : > { %4339 = vmatmul.msk.f32.gmra.mxu3 %vm833_vm1, %v1727_v12  ;;  %4325 = vmatmul.msk.f32.gmra.mxu2 %vm833_vm1, %v1729_v63 }
 0x3a0   : > { %4340 = vmatmul.msk.f32.gmra.mxu3 %vm833_vm1, %v1728_v54 }
 0x3a3   : > { %v1891_v22 = vpop.f32.mrf.mxu2 }
 0x3a4   : > { %v6024_v10 = vadd.f32 %v1891_v22, %v1749_v39 }
 0x3a6   : > { %8084 = vst [vmem:[#allocation5_spill] sm:$0xff] %v6024_v10  ;;  %v6029_v23 = vmul.f32 0.70710677, %v6024_v10 }
 0x3a8   : > { %4341 = vmatmul.msk.f32.gmra.mxu3 %vm833_vm1, %v1729_v63  ;;  %8086 = vst [vmem:[#allocation7_spill] sm:$0xff] %v6029_v23  ;;  %v2036_v18 = vmul.f32 %v6029_v23, %v6029_v23 }
 0x3aa   : > { %v6045_v40 = vmin.f32 %v2036_v18, 16.0 }
 0x3ab   : > { %v1894_v60 = vpop.f32.mrf.mxu2 }
 0x3ac   : > { %v6026_v0 = vadd.f32 %v1894_v60, %v1754_v26  ;;  %v2038_v3 = vmul.f32 2.1237322e-06, %v6045_v40 }
 0x3ae   : > { %8085 = vst [vmem:[#allocation6_spill] sm:$0xff] %v6026_v0  ;;  %v6034_v1 = vmul.f32 0.70710677, %v6026_v0  ;;  %v2039_v46 = vadd.f32 0.00028619796, %v2038_v3 }
 0x3b0   : > { %8088 = vst [vmem:[#allocation9_spill] sm:$0xff] %v6034_v1  ;;  %v2116_v56 = vmul.f32 %v6034_v1, %v6034_v1  ;;  %v2040_v9 = vmul.f32 %v2039_v46, %v6045_v40 }
 0x3b2   : > { %v6049_v4 = vmin.f32 %v2116_v56, 16.0  ;;  %v2041_v28 = vadd.f32 0.0036580483, %v2040_v9 }
 0x3b3   : > { %v1956_v38 = vpop.f32.mrf.mxu3  ;;  %v1897_v57 = vpop.f32.mrf.mxu2 }
 0x3b4   : > { %v6031_v21 = vadd.f32 %v1897_v57, %v1759_v8  ;;  %v2118_v20 = vmul.f32 2.1237322e-06, %v6049_v4  ;;  %v6089_v11 = vadd.f32 %v1956_v38, %v1749_v39  ;;  %v2042_v38 = vmul.f32 %v2041_v28, %v6045_v40 }
 0x3b6   : > { %8087 = vst [vmem:[#allocation8_spill] sm:$0xff] %v6031_v21  ;;  %v6039_v17 = vmul.f32 0.70710677, %v6031_v21  ;;  %v2119_v15 = vadd.f32 0.00028619796, %v2118_v20 }
 0x3b7   : > { %8094 = vst [vmem:[#allocation15_spill] sm:$0xff] %v6089_v11  ;;  %v6105_v63 = vmul.f32 0.70710677, %v6089_v11 }
 0x3b8   : > { %8089 = vst [vmem:[#allocation10_spill] sm:$0xff] %v6039_v17  ;;  %v2196_v33 = vmul.f32 %v6039_v17, %v6039_v17  ;;  %v2120_v59 = vmul.f32 %v2119_v15, %v6049_v4  ;;  %v2043_v15 = vadd.f32 0.05243302, %v2042_v38 }
 0x3b9   : > { %8096 = vst [vmem:[#allocation17_spill] sm:$0xff] %v6105_v63  ;;  %v2076_v3 = vmul.f32 %v6105_v63, %v6105_v63 }
 0x3ba   : > { %v6055_v47 = vmin.f32 %v2196_v33, 16.0  ;;  %v2121_v22 = vadd.f32 0.0036580483, %v2120_v59 }
 0x3bb   : > { %v1959_v41 = vpop.f32.mrf.mxu3  ;;  %v1900_v32 = vpop.f32.mrf.mxu2 }
 0x3bc   : > { %v6043_v35 = vadd.f32 %v1900_v32, %v1764_v5  ;;  %v6059_v42 = vadd.f32 %v1959_v41, %v1754_v26  ;;  %v2198_v2 = vmul.f32 2.1237322e-06, %v6055_v47  ;;  %v2122_v20 = vmul.f32 %v2121_v22, %v6049_v4 }
 0x3be   : > { %v6052_v50 = vmul.f32 0.70710677, %v6043_v35  ;;  %8090 = vst [vmem:[#allocation11_spill] sm:$0xff] %v6059_v42  ;;  %v6074_v55 = vmul.f32 0.70710677, %v6059_v42  ;;  %v6193_v63 = vmul.f32 0.5, %v6043_v35 }
 0x3bf   : > { %v2199_v16 = vadd.f32 0.00028619796, %v2198_v2 }
 0x3c0   : > { %v2276_v61 = vmul.f32 %v6052_v50, %v6052_v50  ;;  %8093 = vst [vmem:[#allocation14_spill] sm:$0xff] %v6074_v55  ;;  %v2156_v51 = vmul.f32 %v6074_v55, %v6074_v55 }
 0x3c1   : > { %v2200_v45 = vmul.f32 %v2199_v16, %v6055_v47  ;;  %8100 = vst [vmem:[#allocation21_spill] sm:$0xff] %v6193_v63 }
 0x3c2   : > { %v6064_v49 = vmin.f32 %v2276_v61, 16.0  ;;  %v6101_v12 = vmin.f32 %v2156_v51, 16.0 }
 0x3c3   : > { %v1962_v25 = vpop.f32.mrf.mxu3  ;;  %v1903_v48 = vpop.f32.mrf.mxu2  ;;  %v2201_v57 = vadd.f32 0.0036580483, %v2200_v45 }
 0x3c4   : > { %v6062_v31 = vadd.f32 %v1962_v25, %v1759_v8  ;;  %v6067_v7 = vadd.f32 %v1903_v48, %v6019_v30  ;;  %v2278_v58 = vmul.f32 2.1237322e-06, %v6064_v49  ;;  %v2158_v18 = vmul.f32 2.1237322e-06, %v6101_v12 }
 0x3c5   : > { %v2202_v9 = vmul.f32 %v2201_v57, %v6055_v47 }
 0x3c6   : > { %8091 = vst [vmem:[#allocation12_spill] sm:$0xff] %v6062_v31  ;;  %v6071_v43 = vmul.f32 0.70710677, %v6062_v31  ;;  %v6080_v13 = vmul.f32 0.70710677, %v6067_v7 }
 0x3c7   : > { %v2279_v6 = vadd.f32 0.00028619796, %v2278_v58  ;;  %v2159_v58 = vadd.f32 0.00028619796, %v2158_v18  ;;  %v2203_v22 = vadd.f32 0.05243302, %v2202_v9 }
 0x3c8   : > { %8092 = vst [vmem:[#allocation13_spill] sm:$0xff] %v6071_v43  ;;  %v2236_v37 = vmul.f32 %v6071_v43, %v6071_v43  ;;  %v2356_v62 = vmul.f32 %v6080_v13, %v6080_v13 }
 0x3c9   : > { %v2280_v54 = vmul.f32 %v2279_v6, %v6064_v49 }
 0x3ca   : > { %v6083_v29 = vmin.f32 %v2236_v37, 16.0  ;;  %v6095_v53 = vmin.f32 %v2356_v62, 16.0 }
 0x3cb   : > { %v1965_v27 = vpop.f32.mrf.mxu3  ;;  %v1906_v24 = vpop.f32.mrf.mxu2  ;;  %v2281_v41 = vadd.f32 0.0036580483, %v2280_v54  ;;  %v2160_v54 = vmul.f32 %v2159_v58, %v6101_v12  ;;  %v2204_v58 = vmul.f32 %v2203_v22, %v6055_v47 }
 0x3cc   : > { %v6092_v44 = vadd.f32 %v1965_v27, %v1764_v5  ;;  %v2238_v14 = vmul.f32 2.1237322e-06, %v6083_v29  ;;  %v6098_v34 = vadd.f32 %v1906_v24, %v6022_v36  ;;  %v2358_v39 = vmul.f32 2.1237322e-06, %v6095_v53 }
 0x3cd   : > { %v2282_v16 = vmul.f32 %v2281_v41, %v6064_v49  ;;  %v2123_v27 = vadd.f32 0.05243302, %v2122_v20 }
 0x3ce   : > { %8095 = vst [vmem:[#allocation16_spill] sm:$0xff] %v6092_v44  ;;  %v6108_v5 = vmul.f32 0.70710677, %v6092_v44  ;;  %v2239_v60 = vadd.f32 0.00028619796, %v2238_v14  ;;  %v2044_v14 = vmul.f32 %v2043_v15, %v6045_v40 }
 0x3cf   : > { %v6112_v26 = vmul.f32 0.70710677, %v6098_v34  ;;  %v2359_v32 = vadd.f32 0.00028619796, %v2358_v39 }
 0x3d0   : > { %v2316_v8 = vmul.f32 %v6108_v5, %v6108_v5  ;;  %v2240_v46 = vmul.f32 %v2239_v60, %v6083_v29  ;;  %v2283_v60 = vadd.f32 0.05243302, %v2282_v16  ;;  %v6167_v15 = vadd.f32 0.18741608, %v2044_v14 }
 0x3d1   : > { %v2436_v48 = vmul.f32 %v6112_v26, %v6112_v26  ;;  %v2360_v37 = vmul.f32 %v2359_v32, %v6095_v53  ;;  %v2124_v32 = vmul.f32 %v2123_v27, %v6049_v4 }
 0x3d2   : > { %v6120_v61 = vmin.f32 %v2316_v8, 16.0  ;;  %v2241_v24 = vadd.f32 0.0036580483, %v2240_v46  ;;  %8098 = vst [vmem:[#allocation19_spill] sm:$0xff] %v6167_v15  ;;  %v2284_v9 = vmul.f32 %v2283_v60, %v6064_v49 }
 0x3d3   : > { %v1968_v56 = vpop.f32.mrf.mxu3  ;;  %v1909_v33 = vpop.f32.mrf.mxu2  ;;  %v6141_v6 = vmin.f32 %v2436_v48, 16.0  ;;  %v2361_v28 = vadd.f32 0.0036580483, %v2360_v37  ;;  %v2161_v37 = vadd.f32 0.0036580483, %v2160_v54 }
 0x3d4   : > { %v6123_v25 = vadd.f32 %v1968_v56, %v6019_v30  ;;  %v6130_v2 = vadd.f32 %v1909_v33, %v6014_v19  ;;  %v6135_v30 = vmin.f32 %v2076_v3, 16.0  ;;  %v2318_v62 = vmul.f32 2.1237322e-06, %v6120_v61 }
 0x3d5   : > { %v2438_v41 = vmul.f32 2.1237322e-06, %v6141_v6  ;;  %v2242_v56 = vmul.f32 %v2241_v24, %v6083_v29  ;;  %v2362_v48 = vmul.f32 %v2361_v28, %v6095_v53  ;;  %v2125_v24 = vadd.f32 0.18741608, %v2124_v32 }
 0x3d6   : > { %8097 = vst [vmem:[#allocation18_spill] sm:$0xff] %v6135_v30  ;;  %v6139_v51 = vmul.f32 0.70710677, %v6123_v25  ;;  %v6144_v59 = vmul.f32 0.70710677, %v6130_v2  ;;  %v2162_v60 = vmul.f32 %v2161_v37, %v6101_v12 }
 0x3d7   : > { %v2078_v8 = vmul.f32 2.1237322e-06, %v6135_v30  ;;  %v2319_v18 = vadd.f32 0.00028619796, %v2318_v62  ;;  %v2439_v62 = vadd.f32 0.00028619796, %v2438_v41 }
 0x3d8   : > { %v2396_v45 = vmul.f32 %v6139_v51, %v6139_v51  ;;  %v2516_v38 = vmul.f32 %v6144_v59, %v6144_v59  ;;  %v2243_v28 = vadd.f32 0.05243302, %v2242_v56 }
 0x3d9   : > { %v2079_v16 = vadd.f32 0.00028619796, %v2078_v8  ;;  %v2440_v32 = vmul.f32 %v2439_v62, %v6141_v6 }
 0x3da   : > { %v6159_v3 = vmin.f32 %v2516_v38, 16.0  ;;  %v6162_v20 = vmin.f32 %v2396_v45, 16.0  ;;  %v2205_v38 = vadd.f32 0.18741608, %v2204_v58 }
 0x3db   : > { %v1971_v39 = vpop.f32.mrf.mxu3  ;;  %v1912_v57 = vpop.f32.mrf.mxu2  ;;  %v6190_v11 = vmul.f32 %v2079_v16, %v6135_v30  ;;  %v6205_v16 = vmul.f32 0.5, %v6067_v7 }
 0x3dc   : > { %v6157_v33 = vadd.f32 %v1971_v39, %v6022_v36  ;;  %v6165_v46 = vadd.f32 %v1912_v57, %v6016_v52  ;;  %v2320_v36 = vmul.f32 %v2319_v18, %v6120_v61  ;;  %v2518_v45 = vmul.f32 2.1237322e-06, %v6159_v3 }
 0x3dd   : > { %v2363_v39 = vadd.f32 0.05243302, %v2362_v48  ;;  %v2398_v14 = vmul.f32 2.1237322e-06, %v6162_v20  ;;  %v2285_v57 = vadd.f32 0.18741608, %v2284_v9  ;;  %v6199_v9 = vmul.f32 %v2125_v24, %v6049_v4 }
 0x3de   : > { %v6173_v27 = vmul.f32 0.70710677, %v6157_v33  ;;  %v6180_v22 = vmul.f32 0.70710677, %v6165_v46  ;;  %v2519_v8 = vadd.f32 0.00028619796, %v2518_v45  ;;  %v6214_v24 = vmul.f32 %v2205_v38, %v6055_v47 }
 0x3df   : > { %v2321_v41 = vadd.f32 0.0036580483, %v2320_v36  ;;  %8099 = vst [vmem:[#allocation20_spill] sm:$0xff] %v6190_v11  ;;  %v2244_v36 = vmul.f32 %v2243_v28, %v6083_v29  ;;  %v2364_v62 = vmul.f32 %v2363_v39, %v6095_v53  ;;  %v2286_v45 = vmul.f32 %v2285_v57, %v6064_v49 }
 0x3e0   : > { %v2476_v54 = vmul.f32 %v6173_v27, %v6173_v27  ;;  %v2520_v37 = vmul.f32 %v2519_v8, %v6159_v3  ;;  %v2596_v58 = vmul.f32 %v6180_v22, %v6180_v22  ;;  %8101 = vst [vmem:[#allocation22_spill] sm:$0xff] %v6199_v9  ;;  %v6211_v8 = vadd.f32 0.05243302, %v2162_v60 }
 0x3e1   : > { %8103 = vst [vmem:[#allocation24_spill] sm:$0xff] %v6214_v24  ;;  %v2322_v28 = vmul.f32 %v2321_v41, %v6120_v61  ;;  %v6218_v39 = vmul.f32 0.5, %v6098_v34  ;;  %v2245_v10 = vadd.f32 0.18741608, %v2244_v36  ;;  %v2365_v42 = vadd.f32 0.18741608, %v2364_v62 }
 0x3e2   : > { %v6184_v56 = vmin.f32 %v2476_v54, 16.0  ;;  %8102 = vst [vmem:[#allocation23_spill] sm:$0xff] %v6211_v8  ;;  %v6222_v57 = vmin.f32 %v2596_v58, 16.0  ;;  %v6225_v60 = vmul.f32 0.5, %v6123_v25  ;;  %v2287_v23 = vadd.f32 1.1283791, %v2286_v45 }
 0x3e3   : > { %v1974_v18 = vpop.f32.mrf.mxu3  ;;  %v6229_v41 = vmul.f32 0.5, %v6130_v2  ;;  %v6242_v2 = vmul.f32 3.8918573e-05, %v6141_v6  ;;  %v6245_v45 = vmul.f32 %v2245_v10, %v6083_v29 }
 0x3e4   : > { %v6187_v48 = vadd.f32 %v1974_v18, %v6014_v19  ;;  %v2399_v19 = vadd.f32 0.00028619796, %v2398_v14  ;;  %v2478_v35 = vmul.f32 2.1237322e-06, %v6184_v56  ;;  %v2441_v18 = vadd.f32 0.0036580483, %v2440_v32 }
 0x3e5   : > { %v2521_v14 = vadd.f32 0.0036580483, %v2520_v37  ;;  %v2323_v37 = vadd.f32 0.05243302, %v2322_v28  ;;  %v2598_v58 = vmul.f32 2.1237322e-06, %v6222_v57 }
 0x3e6   : > { %v6209_v54 = vmul.f32 0.70710677, %v6187_v48  ;;  %v2400_v38 = vmul.f32 %v2399_v19, %v6162_v20  ;;  %v2479_v55 = vadd.f32 0.00028619796, %v2478_v35  ;;  %v2442_v0 = vmul.f32 %v2441_v18, %v6141_v6  ;;  %8104 = vst [vmem:[#allocation25_spill] sm:$0xff] %v6245_v45 }
 0x3e7   : > { %v2522_v25 = vmul.f32 %v2521_v14, %v6159_v3  ;;  %v2529_v19 = vmul.f32 3.8918573e-05, %v6159_v3  ;;  %v2366_v35 = vmul.f32 %v2365_v42, %v6095_v53  ;;  %v2599_v18 = vadd.f32 0.00028619796, %v2598_v58 }
 0x3e8   : > { %v2556_v7 = vmul.f32 %v6209_v54, %v6209_v54  ;;  %v2401_v28 = vadd.f32 0.0036580483, %v2400_v38  ;;  %v2324_v1 = vmul.f32 %v2323_v37, %v6120_v61  ;;  %v2443_v31 = vadd.f32 0.05243302, %v2442_v0 }
 0x3e9   : > { %v2600_v15 = vmul.f32 %v2599_v18, %v6222_v57  ;;  %v2609_v10 = vmul.f32 3.8918573e-05, %v6222_v57  ;;  %v2523_v43 = vadd.f32 0.05243302, %v2522_v25  ;;  %v2367_v38 = vadd.f32 1.1283791, %v2366_v35 }
 0x3ea   : > { %v6231_v34 = vmin.f32 %v2556_v7, 16.0  ;;  %v6249_v7 = vmul.f32 %v2287_v23, %v6052_v50  ;;  %v2530_v50 = vadd.f32 0.001143296, %v2529_v19  ;;  %v2444_v18 = vmul.f32 %v2443_v31, %v6141_v6 }
 0x3eb   : > { %v1977_v32 = vpop.f32.mrf.mxu3  ;;  %v2601_v58 = vadd.f32 0.0036580483, %v2600_v15  ;;  %v6267_v25 = vmul.f32 0.5, %v6157_v33  ;;  %v2325_v35 = vadd.f32 0.18741608, %v2324_v1  ;;  %v2524_v15 = vmul.f32 %v2523_v43, %v6159_v3 }
 0x3ec   : > { %v6236_v36 = vadd.f32 %v1977_v32, %v6016_v52  ;;  %v2558_v62 = vmul.f32 2.1237322e-06, %v6231_v34  ;;  %v2480_v52 = vmul.f32 %v2479_v55, %v6184_v56  ;;  %v2402_v55 = vmul.f32 %v2401_v28, %v6162_v20 }
 0x3ed   : > { %v2531_v0 = vmul.f32 %v2530_v50, %v6159_v3  ;;  %v2602_v19 = vmul.f32 %v2601_v58, %v6222_v57  ;;  %v2445_v1 = vadd.f32 0.18741608, %v2444_v18  ;;  %v2525_v63 = vadd.f32 0.18741608, %v2524_v15 }
 0x3ee   : > { %v2559_v14 = vadd.f32 0.00028619796, %v2558_v62  ;;  %v6253_v32 = vmul.f32 0.70710677, %v6236_v36  ;;  %v2610_v62 = vadd.f32 0.001143296, %v2609_v10  ;;  %v6277_v10 = vmul.f32 %v2367_v38, %v6080_v13 }
 0x3ef   : > { %v2481_v17 = vadd.f32 0.0036580483, %v2480_v52  ;;  %v2603_v21 = vadd.f32 0.05243302, %v2602_v19 }
 0x3f0   : > { %v2560_v42 = vmul.f32 %v2559_v14, %v6231_v34  ;;  %v2636_v23 = vmul.f32 %v6253_v32, %v6253_v32  ;;  %v6270_v14 = vmul.f32 0.5, %v6165_v46  ;;  %v2611_v52 = vmul.f32 %v2610_v62, %v6222_v57 }
 0x3f1   : > { %v2482_v46 = vmul.f32 %v2481_v17, %v6184_v56  ;;  %v2326_v62 = vmul.f32 %v2325_v35, %v6120_v61  ;;  %v2569_v17 = vmul.f32 3.8918573e-05, %v6231_v34  ;;  %v6291_v35 = vmul.f32 0.5, %v6187_v48 }
 0x3f2   : > { %v2561_v44 = vadd.f32 0.0036580483, %v2560_v42  ;;  %v6262_v37 = vmin.f32 %v2636_v23, 16.0  ;;  %v2532_v42 = vadd.f32 0.014752088, %v2531_v0  ;;  %v2604_v15 = vmul.f32 %v2603_v21, %v6222_v57 }
 0x3f3   : > { %v2403_v23 = vadd.f32 0.05243302, %v2402_v55  ;;  %v2612_v58 = vadd.f32 0.014752088, %v2611_v52  ;;  %v2483_v18 = vadd.f32 0.05243302, %v2482_v46 }
 0x3f4   : > { %v2638_v28 = vmul.f32 2.1237322e-06, %v6262_v37  ;;  %v2562_v31 = vmul.f32 %v2561_v44, %v6231_v34  ;;  %v2649_v33 = vmul.f32 3.8918573e-05, %v6262_v37  ;;  %v2533_v9 = vmul.f32 %v2532_v42, %v6159_v3 }
 0x3f5   : > { %v2613_v44 = vmul.f32 %v2612_v58, %v6222_v57 }
 0x3f6   : > { %v2639_v50 = vadd.f32 0.00028619796, %v2638_v28  ;;  %v2650_v43 = vadd.f32 0.001143296, %v2649_v33  ;;  %v2563_v38 = vadd.f32 0.05243302, %v2562_v31  ;;  %v2404_v28 = vmul.f32 %v2403_v23, %v6162_v20 }
 0x3f7   : > { %v2534_v55 = vadd.f32 0.112945676, %v2533_v9  ;;  %v2614_v52 = vadd.f32 0.112945676, %v2613_v44  ;;  %v2446_v33 = vmul.f32 %v2445_v1, %v6141_v6  ;;  %v2526_v31 = vmul.f32 %v2525_v63, %v6159_v3 }
 0x3f8   : > { %v2640_v13 = vmul.f32 %v2639_v50, %v6262_v37  ;;  %v2651_v0 = vmul.f32 %v2650_v43, %v6262_v37  ;;  %v2564_v23 = vmul.f32 %v2563_v38, %v6231_v34  ;;  %v2570_v43 = vadd.f32 0.001143296, %v2569_v17 }
 0x3f9   : > { %v2615_v9 = vmul.f32 %v2614_v52, %v6222_v57  ;;  %v2535_v58 = vmul.f32 %v2534_v55, %v6159_v3  ;;  %v2450_v1 = vadd.f32 0.001143296, %v6242_v2  ;;  %v2405_v48 = vadd.f32 0.18741608, %v2404_v28 }
 0x3fa   : > { %v2641_v19 = vadd.f32 0.0036580483, %v2640_v13  ;;  %v2652_v42 = vadd.f32 0.014752088, %v2651_v0  ;;  %v2484_v13 = vmul.f32 %v2483_v18, %v6184_v56  ;;  %v2605_v0 = vadd.f32 0.18741608, %v2604_v15 }
 0x3fb   : > { %v2616_v44 = vadd.f32 0.4994258, %v2615_v9  ;;  %v2536_v45 = vadd.f32 0.4994258, %v2535_v58  ;;  %v2447_v52 = vadd.f32 1.1283791, %v2446_v33  ;;  %v2406_v18 = vmul.f32 %v2405_v48, %v6162_v20 }
 0x3fc   : > { %v2642_v50 = vmul.f32 %v2641_v19, %v6262_v37  ;;  %v2653_v46 = vmul.f32 %v2652_v42, %v6262_v37  ;;  %v2571_v19 = vmul.f32 %v2570_v43, %v6231_v34  ;;  %v2451_v42 = vmul.f32 %v2450_v1, %v6141_v6 }
 0x3fd   : > { %v2617_v38 = vmul.f32 %v2616_v44, %v6222_v57  ;;  %v2527_v17 = vadd.f32 1.1283791, %v2526_v31  ;;  %v2565_v24 = vadd.f32 0.18741608, %v2564_v23  ;;  %v2537_v28 = vmul.f32 %v2536_v45, %v6159_v3 }
 0x3fe   : > { %v2643_v21 = vadd.f32 0.05243302, %v2642_v50  ;;  %v2654_v63 = vadd.f32 0.112945676, %v2653_v46  ;;  %v2485_v15 = vadd.f32 0.18741608, %v2484_v13  ;;  %v2606_v33 = vmul.f32 %v2605_v0, %v6222_v57 }
 0x3ff   : > { %v6309_v50 = vadd.f32 1.0, %v2617_v38  ;;  %v2572_v9 = vadd.f32 0.014752088, %v2571_v19  ;;  %v6312_v46 = vadd.f32 1.0, %v2537_v28  ;;  %v2452_v43 = vadd.f32 0.014752088, %v2451_v42 }
 0x400   : > { %v2644_v55 = vmul.f32 %v2643_v21, %v6262_v37  ;;  %v2655_v2 = vmul.f32 %v2654_v63, %v6262_v37  ;;  %v6314_v21 = vadd.f32 1.1283791, %v2326_v62  ;;  %v2489_v23 = vmul.f32 3.8918573e-05, %v6184_v56 }
 0x401   : > { %4503 = vrcp.f32 %v6309_v50  ;;  %v6319_v3 = vmul.f32 %v2447_v52, %v6112_v26  ;;  %v2566_v45 = vmul.f32 %v2565_v24, %v6231_v34  ;;  %v6324_v57 = vadd.f32 1.1283791, %v2406_v18 }
 0x402   : > { %v2656_v58 = vadd.f32 0.4994258, %v2655_v2  ;;  %v2645_v31 = vadd.f32 0.18741608, %v2644_v55  ;;  %4505 = vrcp.f32 %v6312_v46  ;;  %v6327_v48 = vmul.f32 %v2485_v15, %v6184_v56 }
 0x403   : > { %v6330_v62 = vmul.f32 %v2527_v17, %v6144_v59  ;;  %v6333_v13 = vmul.f32 0.5, %v6236_v36  ;;  %v2607_v44 = vadd.f32 1.1283791, %v2606_v33  ;;  %v2573_v24 = vmul.f32 %v2572_v9, %v6231_v34 }
 0x404   : > { %v2657_v1 = vmul.f32 %v2656_v58, %v6262_v37  ;;  %v2453_v0 = vmul.f32 %v2452_v43, %v6141_v6  ;;  %v2646_v63 = vmul.f32 %v2645_v31, %v6262_v37  ;;  %v2628_v19 = vand.u32 2147483647, %v6309_v50 }
 0x405   : > { %v2630_v52 = vand.u32 2147483648, %v6309_v50  ;;  %v2490_v55 = vadd.f32 0.001143296, %v2489_v23  ;;  %v6342_v38 = vadd.f32 1.1283791, %v2566_v45  ;;  %v2550_v36 = vand.u32 2147483648, %v6312_v46 }
 0x406   : > { %v6335_v26 = vadd.f32 1.0, %v2657_v1  ;;  %v2548_v59 = vand.u32 2147483647, %v6312_v46  ;;  %v2574_v17 = vadd.f32 0.112945676, %v2573_v24  ;;  %v2608_v15 = vmul.f32 %v2607_v44, %v6180_v22 }
 0x407   : > { %v4504_v42 = vpop.eup %4503  ;;  %v2454_v2 = vadd.f32 0.112945676, %v2453_v0  ;;  %v2491_v28 = vmul.f32 %v2490_v55, %v6184_v56  ;;  %v2369_v37 = vmul.f32 3.8918573e-05, %v6095_v53  ;;  %vm2624_vm1 = vweird.f32 %v6309_v50 }
 0x408   : > { %4507 = vrcp.f32 %v6335_v26  ;;  %v4506_v18 = vpop.eup %4505  ;;  %v2620_v9 = vmul.f32 %v4504_v42, %v6309_v50  ;;  %vm2544_vm6 = vweird.f32 %v6312_v46  ;;  %v2647_v33 = vadd.f32 1.1283791, %v2646_v63 }
 0x409   : > { %vm6353_vm7 = vcmp.eq.f32.partialorder %v2628_v19, 8.507059e+37  ;;  %v2631_v43 = vor.u32 1.1754944e-38, %v2630_v52  ;;  %v2540_v31 = vmul.f32 %v4506_v18, %v6312_v46  ;;  %vm6358_vm8 = vcmp.eq.f32.partialorder %v2548_v59, 8.507059e+37 }
 0x40a   : > { %v2621_v23 = vsub.f32 1.0, %v2620_v9  ;;  %v2575_v22 = vmul.f32 %v2574_v17, %v6231_v34  ;;  %v2455_v1 = vmul.f32 %v2454_v2, %v6141_v6  ;;  %v2551_v24 = vor.u32 1.1754944e-38, %v2550_v36 }
 0x40b   : > { %v2541_v44 = vsub.f32 1.0, %v2540_v31  ;;  %v2492_v0 = vadd.f32 0.014752088, %v2491_v28  ;;  %v2370_v63 = vadd.f32 0.001143296, %v2369_v37  ;;  %vm2625_vm9 = vweird.f32 %v4504_v42 }
 0x40c   : > { %v2622_v55 = vmul.f32 %v4504_v42, %v2621_v23  ;;  %v2576_v8 = vadd.f32 0.4994258, %v2575_v22  ;;  %v2456_v52 = vadd.f32 0.4994258, %v2455_v1  ;;  %v2668_v59 = vand.u32 2147483647, %v6335_v26  ;;  %vm2626_vm11 = vmor %vm2624_vm1, %vm2625_vm9 }
 0x40d   : > { %v2542_v9 = vmul.f32 %v4506_v18, %v2541_v44  ;;  %vm2545_vm10 = vweird.f32 %v4506_v18  ;;  %v2670_v17 = vand.u32 2147483648, %v6335_v26  ;;  %v2493_v31 = vmul.f32 %v2492_v0, %v6184_v56 }
 0x40e   : > { %v4508_v19 = vpop.eup %4507  ;;  %v2623_v30 = vadd.f32 %v4504_v42, %v2622_v55  ;;  %v2577_v2 = vmul.f32 %v2576_v8, %v6231_v34  ;;  %v2457_v36 = vmul.f32 %v2456_v52, %v6141_v6  ;;  %v2371_v23 = vmul.f32 %v2370_v63, %v6095_v53  ;;  %vm2546_vm13 = vmor %vm2544_vm6, %vm2545_vm10 }
 0x40f   : > { %v2660_v11 = vmul.f32 %v4508_v19, %v6335_v26  ;;  %v2543_v37 = vadd.f32 %v4506_v18, %v2542_v9  ;;  %vm2665_vm12 = vweird.f32 %v4508_v19  ;;  %v2409_v8 = vmul.f32 3.8918573e-05, %v6162_v20 }
 0x410   : > { %v2627_v22 = vsel %vm2626_vm11, %v4504_v42, %v2623_v30  ;;  %v6375_v1 = vadd.f32 1.0, %v2577_v2  ;;  %vm2664_vm14 = vweird.f32 %v6335_v26  ;;  %v2494_v0 = vadd.f32 0.112945676, %v2493_v31 }
 0x411   : > { %v2661_v28 = vsub.f32 1.0, %v2660_v11  ;;  %v2632_v6 = vsel %vm6353_vm7, %v2631_v43, %v2627_v22  ;;  %v2547_v50 = vsel %vm2546_vm13, %v4506_v18, %v2543_v37  ;;  %v6380_v11 = vadd.f32 1.0, %v2457_v36  ;;  %vm2666_vm15 = vmor %vm2664_vm14, %vm2665_vm12 }
 0x412   : > { %v2633_v44 = vmul.f32 %v2632_v6, %v2608_v15  ;;  %v2552_v30 = vsel %vm6358_vm8, %v2551_v24, %v2547_v50  ;;  %4509 = vrcp.f32 %v6375_v1  ;;  %v2372_v63 = vadd.f32 0.014752088, %v2371_v23 }
 0x413   : > { %v2662_v34 = vmul.f32 %v4508_v19, %v2661_v28  ;;  %v2553_v42 = vmul.f32 %v2552_v30, %v6330_v62  ;;  %v2671_v58 = vor.u32 1.1754944e-38, %v2670_v17  ;;  %4511 = vrcp.f32 %v6380_v11 }
 0x414   : > { %v4356_v55 = vclamps-f32 %v2633_v44, 1.0  ;;  %v2410_v18 = vadd.f32 0.001143296, %v2409_v8  ;;  %v2648_v15 = vmul.f32 %v2647_v33, %v6253_v32  ;;  %vm2669_vm0 = vcmp.eq.f32.partialorder %v2668_v59, 8.507059e+37 }
 0x415   : > { %v2663_v46 = vadd.f32 %v4508_v19, %v2662_v34  ;;  %v4354_v43 = vclamps-f32 %v2553_v42, 1.0  ;;  %v6391_v45 = vadd.f32 1.1283791, %v6327_v48  ;;  %v2568_v62 = vmul.f32 %v6342_v38, %v6209_v54 }
 0x416   : > { %v2690_v24 = vadd.f32 1.0, %v4356_v55  ;;  %v2495_v17 = vmul.f32 %v2494_v0, %v6184_v56  ;;  %v2373_v36 = vmul.f32 %v2372_v63, %v6095_v53  ;;  %vm2584_vm2 = vweird.f32 %v6375_v1 }
 0x417   : > { %v2667_v26 = vsel %vm2666_vm15, %v4508_v19, %v2663_v46  ;;  %v2688_v2 = vadd.f32 1.0, %v4354_v43  ;;  %v2588_v33 = vand.u32 2147483647, %v6375_v1  ;;  %v2411_v48 = vmul.f32 %v2410_v18, %v6162_v20 }
 0x418   : > { %v2672_v52 = vsel %vm2669_vm0, %v2671_v58, %v2667_v26  ;;  %v4510_v28 = vpop.eup %4509  ;;  %v2706_v32 = vmul.f32 %v2690_v24, %v6270_v14  ;;  %v2590_v38 = vand.u32 2147483648, %v6375_v1  ;;  %v2468_v59 = vand.u32 2147483647, %v6380_v11 }
 0x419   : > { %v2673_v9 = vmul.f32 %v2672_v52, %v2648_v15  ;;  %v2580_v54 = vmul.f32 %v4510_v28, %v6375_v1  ;;  %v4512_v37 = vpop.eup %4511  ;;  %v2704_v31 = vmul.f32 %v2688_v2, %v6229_v41  ;;  %v2496_v23 = vadd.f32 0.4994258, %v2495_v17 }
 0x41a   : > { %2797 = vmatpush.msrb.mxu0 %v2706_v32  ;;  %v2374_v22 = vadd.f32 0.112945676, %v2373_v36  ;;  %v2412_v14 = vadd.f32 0.014752088, %v2411_v48  ;;  %vm2585_vm3 = vweird.f32 %v4510_v28  ;;  %v2460_v34 = vmul.f32 %v4512_v37, %v6380_v11 }
 0x41b   : > { %v4357_v19 = vclamps-f32 %v2673_v9, 1.0  ;;  %v2581_v6 = vsub.f32 1.0, %v2580_v54  ;;  %v2497_v50 = vmul.f32 %v2496_v23, %v6184_v56  ;;  %v2289_v46 = vmul.f32 3.8918573e-05, %v6064_v49  ;;  %vm2586_vm5 = vmor %vm2584_vm2, %vm2585_vm3 }
 0x41c   : > { %2798 = vmatpush.msrb.mxu0 %v2704_v31  ;;  %v2375_v44 = vmul.f32 %v2374_v22, %v6095_v53  ;;  %v2413_v30 = vmul.f32 %v2412_v14, %v6162_v20  ;;  %v2461_v0 = vsub.f32 1.0, %v2460_v34  ;;  %v2329_v63 = vmul.f32 3.8918573e-05, %v6120_v61 }
 0x41d   : > { %v2691_v8 = vadd.f32 1.0, %v4357_v19  ;;  %v2582_v41 = vmul.f32 %v4510_v28, %v2581_v6  ;;  %v2470_v55 = vand.u32 2147483648, %v6380_v11  ;;  %v6413_v58 = vadd.f32 1.0, %v2497_v50 }
 0x41e   : > { %v2376_v18 = vadd.f32 0.4994258, %v2375_v44  ;;  %v2414_v15 = vadd.f32 0.112945676, %v2413_v30  ;;  %v2462_v26 = vmul.f32 %v4512_v37, %v2461_v0  ;;  %vm2465_vm4 = vweird.f32 %v4512_v37 }
 0x41f   : > { %v2707_v42 = vmul.f32 %v2691_v8, %v6333_v13  ;;  %v2583_v56 = vadd.f32 %v4510_v28, %v2582_v41  ;;  %v2290_v43 = vadd.f32 0.001143296, %v2289_v46  ;;  %vm2589_vm1 = vcmp.eq.f32.partialorder %v2588_v33, 8.507059e+37 }
 0x420   : > { %v2591_v13 = vor.u32 1.1754944e-38, %v2590_v38  ;;  %vm2464_vm6 = vweird.f32 %v6380_v11  ;;  %4513 = vrcp.f32 %v6413_v58  ;;  %v2463_v52 = vadd.f32 %v4512_v37, %v2462_v26 }
 0x421   : > { %2838 = vmatpush.msrb.mxu1 %v2707_v42  ;;  %v2587_v24 = vsel %vm2586_vm5, %v4510_v28, %v2583_v56  ;;  %v2377_v9 = vmul.f32 %v2376_v18, %v6095_v53  ;;  %v2330_v2 = vadd.f32 0.001143296, %v2329_v63  ;;  %vm2466_vm7 = vmor %vm2464_vm6, %vm2465_vm4  ;;  %v2471_v36 = vor.u32 1.1754944e-38, %v2470_v55 }
 0x422   : > { %v2592_v17 = vsel %vm2589_vm1, %v2591_v13, %v2587_v24  ;;  %v2415_v32 = vmul.f32 %v2414_v15, %v6162_v20  ;;  %v2291_v48 = vmul.f32 %v2290_v43, %v6064_v49  ;;  %v2467_v19 = vsel %vm2466_vm7, %v4512_v37, %v2463_v52 }
 0x423   : > { %v2593_v1 = vmul.f32 %v2592_v17, %v2568_v62  ;;  %vm2469_vm8 = vcmp.eq.f32.partialorder %v2468_v59, 8.507059e+37  ;;  %v6423_v33 = vadd.f32 1.0, %v2377_v9  ;;  %v6427_v11 = vmul.f32 %v6314_v21, %v6108_v5 }
 0x424   : > { %v2472_v28 = vsel %vm2469_vm8, %v2471_v36, %v2467_v19  ;;  %v2416_v54 = vadd.f32 0.4994258, %v2415_v32  ;;  %v2292_v53 = vadd.f32 0.014752088, %v2291_v48  ;;  %v2331_v23 = vmul.f32 %v2330_v2, %v6120_v61 }
 0x425   : > { %v4355_v38 = vclamps-f32 %v2593_v1, 1.0  ;;  %v2473_v31 = vmul.f32 %v2472_v28, %v6319_v3  ;;  %4515 = vrcp.f32 %v6423_v33  ;;  %v6434_v62 = vmul.f32 %v6324_v57, %v6139_v51 }
 0x426   : > { %v4514_v22 = vpop.eup %4513  ;;  %v2488_v59 = vmul.f32 %v6391_v45, %v6173_v27  ;;  %v2417_v5 = vmul.f32 %v2416_v54, %v6162_v20  ;;  %v2293_v21 = vmul.f32 %v2292_v53, %v6064_v49  ;;  %vm2504_vm9 = vweird.f32 %v6413_v58 }
 0x427   : > { %v2689_v37 = vadd.f32 1.0, %v4355_v38  ;;  %v4352_v14 = vclamps-f32 %v2473_v31, 1.0  ;;  %v2500_v3 = vmul.f32 %v4514_v22, %v6413_v58  ;;  %v2508_v8 = vand.u32 2147483647, %v6413_v58 }
 0x428   : > { %v2510_v6 = vand.u32 2147483648, %v6413_v58  ;;  %v6444_v34 = vadd.f32 1.0, %v2417_v5  ;;  %v2294_v51 = vadd.f32 0.112945676, %v2293_v21  ;;  %v2332_v20 = vadd.f32 0.014752088, %v2331_v23 }
 0x429   : > { %v2705_v57 = vmul.f32 %v2689_v37, %v6291_v35  ;;  %v2686_v27 = vadd.f32 1.0, %v4352_v14  ;;  %v2501_v45 = vsub.f32 1.0, %v2500_v3  ;;  %vm2505_vm10 = vweird.f32 %v4514_v22 }
 0x42a   : > { %v2388_v50 = vand.u32 2147483647, %v6423_v33  ;;  %v2390_v44 = vand.u32 2147483648, %v6423_v33  ;;  %4517 = vrcp.f32 %v6444_v34  ;;  %v2295_v41 = vmul.f32 %v2294_v51, %v6064_v49  ;;  %vm2506_vm13 = vmor %vm2504_vm9, %vm2505_vm10 }
 0x42b   : > { %v4516_v30 = vpop.eup %4515  ;;  %2839 = vmatpush.msrb.mxu1 %v2705_v57  ;;  %v2702_v46 = vmul.f32 %v2686_v27, %v6218_v39  ;;  %v2502_v42 = vmul.f32 %v4514_v22, %v2501_v45  ;;  %v2333_v0 = vmul.f32 %v2332_v20, %v6120_v61  ;;  %vm6453_vm11 = vcmp.eq.f32.partialorder %v2508_v8, 8.507059e+37 }
 0x42c   : > { %v2511_v63 = vor.u32 1.1754944e-38, %v2510_v6  ;;  %v2380_v55 = vmul.f32 %v4516_v30, %v6423_v33  ;;  %vm2384_vm12 = vweird.f32 %v6423_v33  ;;  %v2296_v15 = vadd.f32 0.4994258, %v2295_v41 }
 0x42d   : > { %2799 = vmatpush.msrb.mxu0 %v2702_v46  ;;  %v2503_v18 = vadd.f32 %v4514_v22, %v2502_v42  ;;  %v2334_v56 = vadd.f32 0.112945676, %v2333_v0  ;;  %v2209_v39 = vmul.f32 3.8918573e-05, %v6055_v47  ;;  %vm6463_vm14 = vcmp.eq.f32.partialorder %v2388_v50, 8.507059e+37 }
 0x42e   : > { %v2381_v26 = vsub.f32 1.0, %v2380_v55  ;;  %v2391_v13 = vor.u32 1.1754944e-38, %v2390_v44  ;;  %v2428_v24 = vand.u32 2147483647, %v6444_v34  ;;  %v2297_v9 = vmul.f32 %v2296_v15, %v6064_v49 }
 0x42f   : > { %v2507_v52 = vsel %vm2506_vm13, %v4514_v22, %v2503_v18  ;;  %v2335_v2 = vmul.f32 %v2334_v56, %v6120_v61  ;;  %v2249_v17 = vmul.f32 3.8918573e-05, %v6083_v29  ;;  %vm2385_vm15 = vweird.f32 %v4516_v30 }
 0x430   : > { %v4518_v36 = vpop.eup %4517  ;;  %v2512_v58 = vsel %vm6453_vm11, %v2511_v63, %v2507_v52  ;;  %v2382_v32 = vmul.f32 %v4516_v30, %v2381_v26  ;;  %vm2424_vm0 = vweird.f32 %v6444_v34  ;;  %v6475_v19 = vadd.f32 1.0, %v2297_v9  ;;  %vm2386_vm3 = vmor %vm2384_vm12, %vm2385_vm15 }
 0x431   : > { %v2513_v48 = vmul.f32 %v2512_v58, %v2488_v59  ;;  %v2420_v1 = vmul.f32 %v4518_v36, %v6444_v34  ;;  %v2210_v28 = vadd.f32 0.001143296, %v2209_v39  ;;  %vm6477_vm2 = vcmp.eq.f32.partialorder %v2428_v24, 8.507059e+37 }
 0x432   : > { %v2383_v54 = vadd.f32 %v4516_v30, %v2382_v32  ;;  %v2430_v53 = vand.u32 2147483648, %v6444_v34  ;;  %v2336_v38 = vadd.f32 0.4994258, %v2335_v2  ;;  %4519 = vrcp.f32 %v6475_v19 }
 0x433   : > { %v4353_v31 = vclamps-f32 %v2513_v48, 1.0  ;;  %v2421_v23 = vsub.f32 1.0, %v2420_v1  ;;  %v2250_v22 = vadd.f32 0.001143296, %v2249_v17  ;;  %vm2425_vm4 = vweird.f32 %v4518_v36 }
 0x434   : > { %v2387_v59 = vsel %vm2386_vm3, %v4516_v30, %v2383_v54  ;;  %v2337_v5 = vmul.f32 %v2336_v38, %v6120_v61  ;;  %v2129_v21 = vmul.f32 3.8918573e-05, %v6049_v4  ;;  %v2211_v8 = vmul.f32 %v2210_v28, %v6055_v47  ;;  %vm2426_vm5 = vmor %vm2424_vm0, %vm2425_vm4 }
 0x435   : > { %v2687_v37 = vadd.f32 1.0, %v4353_v31  ;;  %v2392_v14 = vsel %vm6463_vm14, %v2391_v13, %v2387_v59  ;;  %v2422_v3 = vmul.f32 %v4518_v36, %v2421_v23  ;;  %v2308_v6 = vand.u32 2147483647, %v6475_v19 }
 0x436   : > { %v2393_v33 = vmul.f32 %v2392_v14, %v6277_v10  ;;  %v2310_v51 = vand.u32 2147483648, %v6475_v19  ;;  %v6493_v57 = vadd.f32 1.0, %v2337_v5  ;;  %v2212_v45 = vadd.f32 0.014752088, %v2211_v8 }
 0x437   : > { %v2703_v27 = vmul.f32 %v2687_v37, %v6267_v25  ;;  %v2423_v61 = vadd.f32 %v4518_v36, %v2422_v3  ;;  %v2251_v20 = vmul.f32 %v2250_v22, %v6083_v29  ;;  %v2431_v44 = vor.u32 1.1754944e-38, %v2430_v53 }
 0x438   : > { %v4350_v50 = vclamps-f32 %v2393_v33, 1.0  ;;  %4521 = vrcp.f32 %v6493_v57  ;;  %v2130_v10 = vadd.f32 0.001143296, %v2129_v21  ;;  %v4520_v30 = vpop.eup %4519  ;;  %vm2304_vm1 = vweird.f32 %v6475_v19 }
 0x439   : > { %2840 = vmatpush.msrb.mxu1 %v2703_v27  ;;  %v2427_v46 = vsel %vm2426_vm5, %v4518_v36, %v2423_v61  ;;  %v2213_v25 = vmul.f32 %v2212_v45, %v6055_v47  ;;  %v2252_v42 = vadd.f32 0.014752088, %v2251_v20  ;;  %v2300_v35 = vmul.f32 %v4520_v30, %v6475_v19 }
 0x43a   : > { %v2684_v41 = vadd.f32 1.0, %v4350_v50  ;;  %v2432_v0 = vsel %vm6477_vm2, %v2431_v44, %v2427_v46  ;;  %vm6506_vm6 = vcmp.eq.f32.partialorder %v2308_v6, 8.507059e+37  ;;  %v2311_v63 = vor.u32 1.1754944e-38, %v2310_v51  ;;  %v8117_v50 = vld [vmem:[#allocation18_spill] sm:$0xff] }
 0x43b   : > { %v2433_v55 = vmul.f32 %v2432_v0, %v6434_v62  ;;  %v2348_v18 = vand.u32 2147483647, %v6493_v57  ;;  %v2350_v15 = vand.u32 2147483648, %v6493_v57  ;;  %v2214_v56 = vadd.f32 0.112945676, %v2213_v25  ;;  %v8119_v25 = vld [vmem:[#allocation23_spill] sm:$0xff] }
 0x43c   : > { %v2700_v39 = vmul.f32 %v2684_v41, %v6205_v16  ;;  %v2301_v26 = vsub.f32 1.0, %v2300_v35  ;;  %v2253_v43 = vmul.f32 %v2252_v42, %v6083_v29  ;;  %v2131_v13 = vmul.f32 %v2130_v10, %v6049_v4  ;;  %v8118_v10 = vld [vmem:[#allocation20_spill] sm:$0xff]  ;;  %v8121_v35 = vld [vmem:[#allocation25_spill] sm:$0xff] }
 0x43d   : > { %v4351_v24 = vclamps-f32 %v2433_v55, 1.0  ;;  %v2215_v52 = vmul.f32 %v2214_v56, %v6055_v47  ;;  %v2169_v9 = vmul.f32 3.8918573e-05, %v6101_v12  ;;  %v2049_v2 = vmul.f32 3.8918573e-05, %v6045_v40  ;;  %v8120_v41 = vld [vmem:[#allocation24_spill] sm:$0xff] }
 0x43e   : > { %v4522_v62 = vpop.eup %4521  ;;  %2800 = vmatpush.msrb.mxu0 %v2700_v39  ;;  %v2302_v17 = vmul.f32 %v4520_v30, %v2301_v26  ;;  %vm2305_vm7 = vweird.f32 %v4520_v30  ;;  %v2254_v36 = vadd.f32 0.112945676, %v2253_v43  ;;  %v2132_v58 = vadd.f32 0.014752088, %v2131_v13  ;;  %v8122_v55 = vld [vmem:[#allocation21_spill] sm:$0xff]  ;;  %v8123_v43 = vld [vmem:[#allocation22_spill] sm:$0xff] }
 0x43f   : > { %v2685_v32 = vadd.f32 1.0, %v4351_v24  ;;  %v2340_v16 = vmul.f32 %v4522_v62, %v6493_v57  ;;  %vm2345_vm8 = vweird.f32 %v4522_v62  ;;  %v2216_v48 = vadd.f32 0.4994258, %v2215_v52  ;;  %vm2306_vm9 = vmor %vm2304_vm1, %vm2305_vm7  ;;  %v8124_v24 = vld [vmem:[#allocation8_spill] sm:$0xff] }
 0x440   : > { %v2303_v1 = vadd.f32 %v4520_v30, %v2302_v17  ;;  %v2255_v28 = vmul.f32 %v2254_v36, %v6083_v29  ;;  %v2133_v54 = vmul.f32 %v2132_v58, %v6049_v4  ;;  %v2170_v49 = vadd.f32 0.001143296, %v2169_v9  ;;  %v8126_v58 = vld [vmem:[#allocation10_spill] sm:$0xff] }
 0x441   : > { %v2701_v53 = vmul.f32 %v2685_v32, %v6225_v60  ;;  %v2341_v38 = vsub.f32 1.0, %v2340_v16  ;;  %v2217_v31 = vmul.f32 %v2216_v48, %v6055_v47  ;;  %v2050_v23 = vadd.f32 0.001143296, %v2049_v2 }
 0x442   : > { %v2307_v22 = vsel %vm2306_vm9, %v4520_v30, %v2303_v1  ;;  %v2256_v59 = vadd.f32 0.4994258, %v2255_v28  ;;  %v2134_v5 = vadd.f32 0.112945676, %v2133_v54  ;;  %v2171_v21 = vmul.f32 %v2170_v49, %v6101_v12  ;;  %v8127_v49 = vld [vmem:[#allocation13_spill] sm:$0xff] }
 0x443   : > { %2841 = vmatpush.msrb.mxu1 %v2701_v53  ;;  %v2312_v37 = vsel %vm6506_vm6, %v2311_v63, %v2307_v22  ;;  %v2342_v14 = vmul.f32 %v4522_v62, %v2341_v38  ;;  %v6529_v3 = vadd.f32 1.0, %v2217_v31  ;;  %v2051_v60 = vmul.f32 %v2050_v23, %v6045_v40 }
 0x444   : > { %v2313_v19 = vmul.f32 %v2312_v37, %v6249_v7  ;;  %v2257_v8 = vmul.f32 %v2256_v59, %v6083_v29  ;;  %v2135_v47 = vmul.f32 %v2134_v5, %v6049_v4  ;;  %v2172_v33 = vadd.f32 0.014752088, %v2171_v21 }
 0x445   : > { %v2343_v6 = vadd.f32 %v4522_v62, %v2342_v14  ;;  %vm2344_vm10 = vweird.f32 %v6493_v57  ;;  %vm2349_vm11 = vcmp.eq.f32.partialorder %v2348_v18, 8.507059e+37  ;;  %4523 = vrcp.f32 %v6529_v3 }
 0x446   : > { %v4348_v51 = vclamps-f32 %v2313_v19, 1.0  ;;  %vm2346_vm12 = vmor %vm2344_vm10, %vm2345_vm8  ;;  %v2351_v27 = vor.u32 1.1754944e-38, %v2350_v15  ;;  %v6538_v61 = vadd.f32 1.0, %v2257_v8  ;;  %v2136_v45 = vadd.f32 0.4994258, %v2135_v47 }
 0x447   : > { %v2347_v20 = vsel %vm2346_vm12, %v4522_v62, %v2343_v6  ;;  %v2173_v7 = vmul.f32 %v2172_v33, %v6101_v12  ;;  %v2052_v29 = vadd.f32 0.014752088, %v2051_v60  ;;  %v2089_v44 = vmul.f32 3.8918573e-05, %v8117_v50  ;;  %v8125_v62 = vld [vmem:[#allocation16_spill] sm:$0xff] }
 0x448   : > { %v6543_v30 = vadd.f32 0.0036580483, %v8118_v10  ;;  %v2682_v57 = vadd.f32 1.0, %v4348_v51  ;;  %v2352_v46 = vsel %vm2349_vm11, %v2351_v27, %v2347_v20  ;;  %4525 = vrcp.f32 %v6538_v61 }
 0x449   : > { %v2164_v42 = vmul.f32 %v8119_v25, %v6101_v12  ;;  %v2207_v0 = vadd.f32 1.1283791, %v8120_v41  ;;  %v2247_v34 = vadd.f32 1.1283791, %v8121_v35  ;;  %v2353_v63 = vmul.f32 %v2352_v46, %v6427_v11 }
 0x44a   : > { %v2698_v18 = vmul.f32 %v2682_v57, %v8122_v55  ;;  %v2137_v15 = vmul.f32 %v2136_v45, %v6049_v4  ;;  %v2174_v56 = vadd.f32 0.112945676, %v2173_v7  ;;  %v2053_v39 = vmul.f32 %v2052_v29, %v6045_v40 }
 0x44b   : > { %v4524_v26 = vpop.eup %4523  ;;  %v6555_v13 = vadd.f32 1.1283791, %v8123_v43  ;;  %v6558_v52 = vmul.f32 0.5, %v8124_v24  ;;  %v4349_v9 = vclamps-f32 %v2353_v63, 1.0  ;;  %v2090_v2 = vadd.f32 0.001143296, %v2089_v44 }
 0x44c   : > { %v2011_v17 = vmul.f32 0.5, %v8125_v62  ;;  %2801 = vmatpush.msrb.mxu0 %v2698_v18  ;;  %v2220_v11 = vmul.f32 %v4524_v26, %v6529_v3  ;;  %v6562_v36 = vadd.f32 1.0, %v2137_v15  ;;  %v2175_v4 = vmul.f32 %v2174_v56, %v6101_v12  ;;  %v8128_v56 = vld [vmem:[#allocation19_spill] sm:$0xff]  ;;  %v8129_v43 = vld [vmem:[#allocation12_spill] sm:$0xff] }
 0x44d   : > { %v2208_v32 = vmul.f32 %v2207_v0, %v8126_v58  ;;  %v2683_v16 = vadd.f32 1.0, %v4349_v9  ;;  %v2054_v48 = vadd.f32 0.112945676, %v2053_v39  ;;  %v2091_v1 = vmul.f32 %v2090_v2, %v8117_v50 }
 0x44e   : > { %v4526_v28 = vpop.eup %4525  ;;  %v2165_v54 = vadd.f32 0.18741608, %v2164_v42  ;;  %v2248_v53 = vmul.f32 %v2247_v34, %v8127_v49  ;;  %v2221_v38 = vsub.f32 1.0, %v2220_v11  ;;  %4527 = vrcp.f32 %v6562_v36  ;;  %v8131_v49 = vld [vmem:[#allocation6_spill] sm:$0xff] }
 0x44f   : > { %v2699_v31 = vmul.f32 %v2683_v16, %v2011_v17  ;;  %v2228_v23 = vand.u32 2147483647, %v6529_v3  ;;  %v2230_v22 = vand.u32 2147483648, %v6529_v3  ;;  %v2260_v59 = vmul.f32 %v4526_v28, %v6538_v61 }
 0x450   : > { %v2222_v5 = vmul.f32 %v4524_v26, %v2221_v38  ;;  %vm2225_vm13 = vweird.f32 %v4524_v26  ;;  %v2176_v21 = vadd.f32 0.4994258, %v2175_v4  ;;  %v2055_v37 = vmul.f32 %v2054_v48, %v6045_v40  ;;  %v8130_v4 = vld [vmem:[#allocation9_spill] sm:$0xff] }
 0x451   : > { %2842 = vmatpush.msrb.mxu1 %v2699_v31  ;;  %vm2224_vm14 = vweird.f32 %v6529_v3  ;;  %v2261_v14 = vsub.f32 1.0, %v2260_v59  ;;  %v2268_v60 = vand.u32 2147483647, %v6538_v61  ;;  %v2092_v19 = vadd.f32 0.014752088, %v2091_v1 }
 0x452   : > { %v2223_v8 = vadd.f32 %v4524_v26, %v2222_v5  ;;  %v2270_v47 = vand.u32 2147483648, %v6538_v61  ;;  %v2177_v33 = vmul.f32 %v2176_v21, %v6101_v12  ;;  %v2056_v6 = vadd.f32 0.4994258, %v2055_v37  ;;  %vm2226_vm15 = vmor %vm2224_vm14, %vm2225_vm13 }
 0x453   : > { %vm2229_vm0 = vcmp.eq.f32.partialorder %v2228_v23, 8.507059e+37  ;;  %v2231_v51 = vor.u32 1.1754944e-38, %v2230_v22  ;;  %v2262_v27 = vmul.f32 %v4526_v28, %v2261_v14  ;;  %vm2265_vm2 = vweird.f32 %v4526_v28 }
 0x454   : > { %v4528_v45 = vpop.eup %4527  ;;  %v2227_v20 = vsel %vm2226_vm15, %v4524_v26, %v2223_v8  ;;  %v6577_v7 = vadd.f32 1.0, %v2177_v33  ;;  %v2057_v3 = vmul.f32 %v2056_v6, %v6045_v40  ;;  %v2093_v29 = vmul.f32 %v2092_v19, %v8117_v50 }
 0x455   : > { %v2232_v44 = vsel %vm2229_vm0, %v2231_v51, %v2227_v20  ;;  %v2263_v10 = vadd.f32 %v4526_v28, %v2262_v27  ;;  %vm2264_vm3 = vweird.f32 %v6538_v61  ;;  %v2140_v57 = vmul.f32 %v4528_v45, %v6562_v36  ;;  %v8132_v20 = vld [vmem:[#allocation14_spill] sm:$0xff] }
 0x456   : > { %v2233_v46 = vmul.f32 %v2232_v44, %v2208_v32  ;;  %vm2266_vm4 = vmor %vm2264_vm3, %vm2265_vm2  ;;  %vm2269_vm5 = vcmp.eq.f32.partialorder %v2268_v60, 8.507059e+37  ;;  %v2271_v25 = vor.u32 1.1754944e-38, %v2270_v47  ;;  %4529 = vrcp.f32 %v6577_v7 }
 0x457   : > { %v2267_v42 = vsel %vm2266_vm4, %v4526_v28, %v2263_v10  ;;  %v2141_v41 = vsub.f32 1.0, %v2140_v57  ;;  %v2148_v0 = vand.u32 2147483647, %v6562_v36  ;;  %v6585_v35 = vadd.f32 1.0, %v2057_v3 }
 0x458   : > { %v4346_v34 = vclamps-f32 %v2233_v46, 1.0  ;;  %v2272_v63 = vsel %vm2269_vm5, %v2271_v25, %v2267_v42  ;;  %v2150_v55 = vand.u32 2147483648, %v6562_v36  ;;  %v2094_v18 = vadd.f32 0.112945676, %v2093_v29  ;;  %v8133_v42 = vld [vmem:[#allocation7_spill] sm:$0xff] }
 0x459   : > { %v2273_v61 = vmul.f32 %v2272_v63, %v2248_v53  ;;  %v2142_v15 = vmul.f32 %v4528_v45, %v2141_v41  ;;  %vm2145_vm1 = vweird.f32 %v4528_v45  ;;  %4531 = vrcp.f32 %v6585_v35 }
 0x45a   : > { %v2046_v39 = vmul.f32 %v8128_v56, %v6045_v40  ;;  %v2082_v26 = vmul.f32 %v6543_v30, %v8117_v50  ;;  %v2009_v24 = vmul.f32 0.5, %v8129_v43  ;;  %v2680_v9 = vadd.f32 1.0, %v4346_v34 }
 0x45b   : > { %v4347_v2 = vclamps-f32 %v2273_v61, 1.0  ;;  %v2143_v62 = vadd.f32 %v4528_v45, %v2142_v15  ;;  %vm2144_vm6 = vweird.f32 %v6562_v36  ;;  %v2095_v17 = vmul.f32 %v2094_v18, %v8117_v50  ;;  %v8134_v15 = vld [vmem:[#allocation11_spill] sm:$0xff] }
 0x45c   : > { %v4530_v11 = vpop.eup %4529  ;;  %v2128_v58 = vmul.f32 %v6555_v13, %v8130_v4  ;;  %v2166_v32 = vmul.f32 %v2165_v54, %v6101_v12  ;;  %v2696_v40 = vmul.f32 %v2680_v9, %v6558_v52  ;;  %vm2146_vm7 = vmor %vm2144_vm6, %vm2145_vm1  ;;  %v2151_v16 = vor.u32 1.1754944e-38, %v2150_v55  ;;  %v8135_v9 = vld [vmem:[#allocation5_spill] sm:$0xff] }
 0x45d   : > { %v2681_v30 = vadd.f32 1.0, %v4347_v2  ;;  %v2147_v48 = vsel %vm2146_vm7, %v4528_v45, %v2143_v62  ;;  %vm2149_vm8 = vcmp.eq.f32.partialorder %v2148_v0, 8.507059e+37  ;;  %v2180_v1 = vmul.f32 %v4530_v11, %v6577_v7 }
 0x45e   : > { %v2083_v28 = vadd.f32 0.05243302, %v2082_v26  ;;  %v2006_v36 = vmul.f32 0.5, %v8131_v49  ;;  %2802 = vmatpush.msrb.mxu0 %v2696_v40  ;;  %v2152_v53 = vsel %vm2149_vm8, %v2151_v16, %v2147_v48  ;;  %v2096_v38 = vadd.f32 0.4994258, %v2095_v17 }
 0x45f   : > { %v4532_v31 = vpop.eup %4531  ;;  %v2697_v23 = vmul.f32 %v2681_v30, %v2009_v24  ;;  %v2153_v13 = vmul.f32 %v2152_v53, %v2128_v58  ;;  %v2181_v22 = vsub.f32 1.0, %v2180_v1  ;;  %v2190_v12 = vand.u32 2147483648, %v6577_v7  ;;  %v8136_v30 = vld [vmem:[#allocation17_spill] sm:$0xff] }
 0x460   : > { %v2047_v52 = vadd.f32 1.1283791, %v2046_v39  ;;  %v2167_v54 = vadd.f32 1.1283791, %v2166_v32  ;;  %v2060_v59 = vmul.f32 %v4532_v31, %v6585_v35  ;;  %v2097_v5 = vmul.f32 %v2096_v38, %v8117_v50  ;;  %v2709_v53 = vld [vmem:[%s8011_s3 + $0x8] sm:$0xff]  ;;  %v8137_v38 = vld [vmem:[#allocation15_spill] sm:$0xff] }
 0x461   : > { %2843 = vmatpush.msrb.mxu1 %v2697_v23  ;;  %v4344_v21 = vclamps-f32 %v2153_v13, 1.0  ;;  %v2182_v37 = vmul.f32 %v4530_v11, %v2181_v22  ;;  %vm2185_vm9 = vweird.f32 %v4530_v11  ;;  %v2188_v14 = vand.u32 2147483647, %v6577_v7  ;;  %v2710_v22 = vld [vmem:[%s8011_s3 + $0x10] sm:$0xff] }
 0x462   : > { %v2084_v60 = vmul.f32 %v2083_v28, %v8117_v50  ;;  %vm2184_vm10 = vweird.f32 %v6577_v7  ;;  %v2061_v19 = vsub.f32 1.0, %v2060_v59  ;;  %v2098_v8 = vadd.f32 1.0, %v2097_v5  ;;  %v2714_v59 = vld [vmem:[%s8011_s3 + $0x30] sm:$0xff]  ;;  %v2715_v5 = vld [vmem:[%s8011_s3 + $0x38] sm:$0xff] }
 0x463   : > { %v2678_v47 = vadd.f32 1.0, %v4344_v21  ;;  %v2183_v33 = vadd.f32 %v4530_v11, %v2182_v37  ;;  %v2191_v6 = vor.u32 1.1754944e-38, %v2190_v12  ;;  %v2070_v51 = vand.u32 2147483648, %v6585_v35  ;;  %vm2186_vm11 = vmor %vm2184_vm10, %vm2185_vm9  ;;  %v2711_v12 = vld [vmem:[%s8011_s3 + $0x18] sm:$0xff]  ;;  %v6658_v21 = vpop.permute.xlu0 %2756 }
 0x464   : > { %v2062_v27 = vmul.f32 %v4532_v31, %v2061_v19  ;;  %vm2065_vm12 = vweird.f32 %v4532_v31  ;;  %v2068_v45 = vand.u32 2147483647, %v6585_v35  ;;  %4533 = vrcp.f32 %v2098_v8 }
 0x465   : > { %v2168_v3 = vmul.f32 %v2167_v54, %v8132_v20  ;;  %v2694_v29 = vmul.f32 %v2678_v47, %v2006_v36  ;;  %v2187_v44 = vsel %vm2186_vm11, %v4530_v11, %v2183_v33  ;;  %vm2189_vm13 = vcmp.eq.f32.partialorder %v2188_v14, 8.507059e+37  ;;  %v2713_v54 = vld [vmem:[%s8011_s3 + $0x28] sm:$0xff] }
 0x466   : > { %v2192_v10 = vsel %vm2189_vm13, %v2191_v6, %v2187_v44  ;;  %v2063_v7 = vadd.f32 %v4532_v31, %v2062_v27  ;;  %vm2064_vm14 = vweird.f32 %v6585_v35  ;;  %v2085_v57 = vadd.f32 0.18741608, %v2084_v60  ;;  %v6669_v6 = vpop.f32.mrf.mxu2 }
 0x467   : > { %2803 = vmatpush.msrb.mxu0 %v2694_v29  ;;  %v2193_v46 = vmul.f32 %v2192_v10, %v2168_v3  ;;  %vm2066_vm15 = vmor %vm2064_vm14, %vm2065_vm12  ;;  %v2071_v25 = vor.u32 1.1754944e-38, %v2070_v51  ;;  %v2048_v41 = vmul.f32 %v2047_v52, %v8133_v42  ;;  %vm2069_vm0 = vcmp.eq.f32.partialorder %v2068_v45, 8.507059e+37  ;;  %v2712_v52 = vld [vmem:[%s8011_s3 + $0x20] sm:$0xff] }
 0x468   : > { %v2067_v0 = vsel %vm2066_vm15, %v4532_v31, %v2063_v7  ;;  %v2086_v61 = vmul.f32 %v2085_v57, %v8117_v50  ;;  %v2007_v56 = vmul.f32 0.5, %v8134_v15  ;;  %v2004_v2 = vmul.f32 0.5, %v8135_v9  ;;  %v2708_v50 = vld [vmem:[%s8011_s3] sm:$0xff]  ;;  %v6707_v9 = vpop.permute.xlu1 %2751 }
 0x469   : > { %v4345_v34 = vclamps-f32 %v2193_v46, 1.0  ;;  %v2072_v63 = vsel %vm2069_vm0, %v2071_v25, %v2067_v0  ;;  %v2110_v17 = vand.u32 2147483648, %v2098_v8  ;;  %v2108_v58 = vand.u32 2147483647, %v2098_v8 }
 0x46a   : > { %v4534_v55 = vpop.eup %4533  ;;  %v2073_v18 = vmul.f32 %v2072_v63, %v2048_v41  ;;  %v2087_v11 = vadd.f32 1.1283791, %v2086_v61  ;;  %vm2764_vm3 = vcmask 523264   ;;  %vm2104_vm4 = vweird.f32 %v2098_v8 }
 0x46b   : > { %v2679_v39 = vadd.f32 1.0, %v4345_v34  ;;  %v2100_v26 = vmul.f32 %v4534_v55, %v2098_v8  ;;  %vm2105_vm2 = vweird.f32 %v4534_v55  ;;  %v2111_v16 = vor.u32 1.1754944e-38, %v2110_v17  ;;  %v6660_v37 = vpop.permute.xlu0 %2741  ;;  %v6664_v8 = vpop.permute.xlu2 %2761 }
 0x46c   : > { %v4342_v35 = vclamps-f32 %v2073_v18, 1.0  ;;  %vm2106_vm5 = vmor %vm2104_vm4, %vm2105_vm2  ;;  %v2088_v48 = vmul.f32 %v2087_v11, %v8136_v30  ;;  %vm2109_vm1 = vcmp.eq.f32.partialorder %v2108_v58, 8.507059e+37  ;;  %v2005_v31 = vmul.f32 0.5, %v8137_v38 }
 0x46d   : > { %v2695_v43 = vmul.f32 %v2679_v39, %v2007_v56  ;;  %v2101_v24 = vsub.f32 1.0, %v2100_v26 }
 0x46e   : > { %v2676_v62 = vadd.f32 1.0, %v4342_v35  ;;  %v6684_v44 = vpop.f32.mrf.mxu2 }
 0x46f   : > { %2844 = vmatpush.msrb.mxu1 %v2695_v43  ;;  %v2102_v4 = vmul.f32 %v4534_v55, %v2101_v24  ;;  %8138 = vst [vmem:[#allocation18_spill] sm:$0xff] %v6684_v44 }
 0x470   : > { %v2692_v32 = vmul.f32 %v2676_v62, %v2004_v2 }
 0x471   : > { %v2103_v40 = vadd.f32 %v4534_v55, %v2102_v4 }
 0x472   : > { %2804 = vmatpush.msrb.mxu0 %v2692_v32 }
 0x473   : > { %v2107_v1 = vsel %vm2106_vm5, %v4534_v55, %v2103_v40  ;;  %4358 = vmatmul.msk.f32.vlgmr.msrb.gmra.mxu0 %vm2764_vm3, %v2708_v50  ;;  %v2727_v60 = vpop.permute.xlu0 %2726  ;;  %v6678_v20 = vpop.permute.xlu2 %2746 }
 0x474   : > { %v2112_v28 = vsel %vm2109_vm1, %v2111_v16, %v2107_v1 }
 0x475   : > { %v2113_v49 = vmul.f32 %v2112_v28, %v2088_v48  ;;  %v2737_v28 = vpop.permute.xlu1 %2736 }
 0x476   : > { %v6693_v34 = vpop.f32.mrf.mxu2 }
 0x477   : > { %v4343_v36 = vclamps-f32 %v2113_v49, 1.0 }
 0x479   : > { %v2677_v23 = vadd.f32 1.0, %v4343_v36 }
 0x47b   : > { %v2693_v13 = vmul.f32 %v2677_v23, %v2005_v31  ;;  %4359 = vmatmul.msk.f32.gmra.mxu0 %vm2764_vm3, %v2709_v53  ;;  %v2732_v46 = vpop.permute.xlu2 %2731 }
 0x47d   : > { %2845 = vmatpush.msrb.mxu1 %v2693_v13 }
 0x47e   : > { %4366 = vmatmul.msk.f32.vlgmr.msrb.gmra.mxu1 %vm2764_vm3, %v2708_v50  ;;  %v6704_v35 = vpop.f32.mrf.mxu2 }
 0x483   : > { %4360 = vmatmul.msk.f32.gmra.mxu0 %vm2764_vm3, %v2710_v22  ;;  %v6722_v23 = vpop.permute.xlu2 %1818 }
 0x484   : > { %8141 = vst [vmem:[#allocation24_spill] sm:$0xff] %v6722_v23 }
 0x486   : > { %4367 = vmatmul.msk.f32.gmra.mxu1 %vm2764_vm3, %v2709_v53  ;;  %v6713_v16 = vpop.f32.mrf.mxu2 }
 0x48b   : > { %4361 = vmatmul.msk.f32.gmra.mxu0 %vm2764_vm3, %v2711_v12 }
 0x48e   : > { %4368 = vmatmul.msk.f32.gmra.mxu1 %vm2764_vm3, %v2710_v22 }
 0x493   : > { %4362 = vmatmul.msk.f32.gmra.mxu0 %vm2764_vm3, %v2712_v52 }
 0x496   : > { %4369 = vmatmul.msk.f32.gmra.mxu1 %vm2764_vm3, %v2711_v12 }
 0x49b   : > { %4363 = vmatmul.msk.f32.gmra.mxu0 %vm2764_vm3, %v2713_v54 }
 0x49e   : > { %4370 = vmatmul.msk.f32.gmra.mxu1 %vm2764_vm3, %v2712_v52 }
 0x4a3   : > { %4364 = vmatmul.msk.f32.gmra.mxu0 %vm2764_vm3, %v2714_v59 }
 0x4a6   : > { %4371 = vmatmul.msk.f32.gmra.mxu1 %vm2764_vm3, %v2713_v54 }
 0x4ab   : > { %4365 = vmatmul.msk.f32.gmra.mxu0 %vm2764_vm3, %v2715_v5 }
 0x4ae   : > { %4372 = vmatmul.msk.f32.gmra.mxu1 %vm2764_vm3, %v2714_v59 }
 0x4b6   : > { %4373 = vmatmul.msk.f32.gmra.mxu1 %vm2764_vm3, %v2715_v5 }
 0x4f0   : > { %v2806_v14 = vpop.f32.mrf.mxu0 }
 0x4f1   : > { %v6662_v19 = vadd.f32 %v2806_v14, %v2727_v60 }
 0x4f3   : > { %v6667_v33 = vmul.f32 0.70710677, %v6662_v19 }
 0x4f5   : > { %v2903_v27 = vmul.f32 %v6667_v33, %v6667_v33 }
 0x4f7   : > { %v6680_v3 = vmin.f32 %v2903_v27, 16.0 }
 0x4f8   : > { %v2809_v25 = vpop.f32.mrf.mxu0 }
 0x4f9   : > { %v2916_v10 = vmul.f32 3.8918573e-05, %v6680_v3  ;;  %v6690_v41 = vadd.f32 %v2809_v25, %v2732_v46  ;;  %v2905_v2 = vmul.f32 2.1237322e-06, %v6680_v3 }
 0x4fb   : > { %v2847_v47 = vpop.f32.mrf.mxu1  ;;  %v2917_v57 = vadd.f32 0.001143296, %v2916_v10  ;;  %8139 = vst [vmem:[#allocation20_spill] sm:$0xff] %v6690_v41  ;;  %v6696_v63 = vmul.f32 0.70710677, %v6690_v41 }
 0x4fc   : > { %v6671_v51 = vadd.f32 %v2847_v47, %v2727_v60  ;;  %v2906_v4 = vadd.f32 0.00028619796, %v2905_v2 }
 0x4fd   : > { %v2918_v0 = vmul.f32 %v2917_v57, %v6680_v3  ;;  %v2983_v61 = vmul.f32 %v6696_v63, %v6696_v63 }
 0x4fe   : > { %v6676_v45 = vmul.f32 0.70710677, %v6671_v51  ;;  %v2907_v30 = vmul.f32 %v2906_v4, %v6680_v3  ;;  %v6768_v4 = vpop.permute.xlu1 %1823 }
 0x4ff   : > { %v2919_v18 = vadd.f32 0.014752088, %v2918_v0  ;;  %v6702_v39 = vmin.f32 %v2983_v61, 16.0  ;;  %8147 = vst [vmem:[#allocation10_spill] sm:$0xff] %v6768_v4 }
 0x500   : > { %v2943_v29 = vmul.f32 %v6676_v45, %v6676_v45  ;;  %v2812_v1 = vpop.f32.mrf.mxu0  ;;  %v2908_v31 = vadd.f32 0.0036580483, %v2907_v30 }
 0x501   : > { %v2920_v56 = vmul.f32 %v2919_v18, %v6680_v3  ;;  %v2996_v24 = vmul.f32 3.8918573e-05, %v6702_v39  ;;  %v6720_v38 = vadd.f32 %v2812_v1, %v2737_v28 }
 0x502   : > { %v6687_v7 = vmin.f32 %v2943_v29, 16.0  ;;  %v2909_v60 = vmul.f32 %v2908_v31, %v6680_v3  ;;  %v6738_v29 = vpop.f32.mrf.mxu2 }
 0x503   : > { %v2921_v43 = vadd.f32 0.112945676, %v2920_v56  ;;  %v2997_v11 = vadd.f32 0.001143296, %v2996_v24  ;;  %v2850_v32 = vpop.f32.mrf.mxu1  ;;  %v6726_v12 = vmul.f32 0.70710677, %v6720_v38 }
 0x504   : > { %v2956_v42 = vmul.f32 3.8918573e-05, %v6687_v7  ;;  %v6717_v49 = vadd.f32 %v2850_v32, %v2732_v46  ;;  %v2945_v13 = vmul.f32 2.1237322e-06, %v6687_v7  ;;  %v2985_v32 = vmul.f32 2.1237322e-06, %v6702_v39 }
 0x505   : > { %v2922_v17 = vmul.f32 %v2921_v43, %v6680_v3  ;;  %v2998_v40 = vmul.f32 %v2997_v11, %v6702_v39  ;;  %v3063_v5 = vmul.f32 %v6726_v12, %v6726_v12  ;;  %v6758_v43 = vpop.permute.xlu0 %1813 }
 0x506   : > { %v2957_v55 = vadd.f32 0.001143296, %v2956_v42  ;;  %8140 = vst [vmem:[#allocation23_spill] sm:$0xff] %v6717_v49  ;;  %v6729_v52 = vmul.f32 0.70710677, %v6717_v49 }
 0x507   : > { %v2923_v50 = vadd.f32 0.4994258, %v2922_v17  ;;  %v2999_v53 = vadd.f32 0.014752088, %v2998_v40  ;;  %v2946_v47 = vadd.f32 0.00028619796, %v2945_v13 }
 0x508   : > { %v2958_v15 = vmul.f32 %v2957_v55, %v6687_v7  ;;  %8142 = vst [vmem:[#allocation25_spill] sm:$0xff] %v6729_v52  ;;  %v3023_v10 = vmul.f32 %v6729_v52, %v6729_v52  ;;  %v6745_v25 = vmin.f32 %v3063_v5, 16.0  ;;  %v2910_v42 = vadd.f32 0.05243302, %v2909_v60  ;;  %v2815_v18 = vpop.f32.mrf.mxu0 }
 0x509   : > { %v2924_v36 = vmul.f32 %v2923_v50, %v6680_v3  ;;  %v3000_v59 = vmul.f32 %v2999_v53, %v6702_v39  ;;  %v2947_v0 = vmul.f32 %v2946_v47, %v6687_v7  ;;  %8146 = vst [vmem:[#allocation16_spill] sm:$0xff] %v6758_v43  ;;  %v6762_v2 = vadd.f32 %v2815_v18, %v6660_v37 }
 0x50a   : > { %v2959_v26 = vadd.f32 0.014752088, %v2958_v15  ;;  %v6750_v61 = vmin.f32 %v3023_v10, 16.0  ;;  %v6752_v15 = vpop.permute.xlu2 %1803  ;;  %v3076_v24 = vmul.f32 3.8918573e-05, %v6745_v25  ;;  %v2911_v17 = vmul.f32 %v2910_v42, %v6680_v3  ;;  %v1933_v30 = vpop.f32.mrf.mxu2 }
 0x50b   : > { %v6731_v54 = vadd.f32 1.0, %v2924_v36  ;;  %v2853_v14 = vpop.f32.mrf.mxu1  ;;  %v3001_v57 = vadd.f32 0.112945676, %v3000_v59  ;;  %8144 = vst [vmem:[#allocation22_spill] sm:$0xff] %v6752_v15  ;;  %v2948_v11 = vadd.f32 0.0036580483, %v2947_v0 }
 0x50c   : > { %v2960_v62 = vmul.f32 %v2959_v26, %v6687_v7  ;;  %v6743_v46 = vadd.f32 %v2853_v14, %v2737_v28  ;;  %v3077_v1 = vadd.f32 0.001143296, %v3076_v24  ;;  %v6777_v28 = vmul.f32 0.70710677, %v6762_v2 }
 0x50d   : > { %4535 = vrcp.f32 %v6731_v54  ;;  %v3002_v56 = vmul.f32 %v3001_v57, %v6702_v39  ;;  %v2912_v36 = vadd.f32 0.18741608, %v2911_v17  ;;  %v2949_v53 = vmul.f32 %v2948_v11, %v6687_v7  ;;  %v6789_v0 = vpop.permute.xlu0 %1798 }
 0x50e   : > { %v2961_v58 = vadd.f32 0.112945676, %v2960_v62  ;;  %8143 = vst [vmem:[#allocation21_spill] sm:$0xff] %v6743_v46  ;;  %v6756_v26 = vmul.f32 0.70710677, %v6743_v46  ;;  %v3078_v47 = vmul.f32 %v3077_v1, %v6745_v25  ;;  %v6801_v11 = vadd.f32 %v6693_v34, %v6789_v0 }
 0x50f   : > { %v3003_v50 = vadd.f32 0.4994258, %v3002_v56  ;;  %v2986_v59 = vadd.f32 0.00028619796, %v2985_v32  ;;  %v2913_v57 = vmul.f32 %v2912_v36, %v6680_v3  ;;  %v2950_v42 = vadd.f32 0.05243302, %v2949_v53 }
 0x510   : > { %v2962_v48 = vmul.f32 %v2961_v58, %v6687_v7  ;;  %8145 = vst [vmem:[#allocation8_spill] sm:$0xff] %v6756_v26  ;;  %v3036_v58 = vmul.f32 3.8918573e-05, %v6750_v61  ;;  %v3103_v40 = vmul.f32 %v6756_v26, %v6756_v26  ;;  %v6815_v36 = vadd.f32 %v6704_v35, %v6752_v15  ;;  %v2818_v49 = vpop.f32.mrf.mxu0 }
 0x511   : > { %v3004_v5 = vmul.f32 %v3003_v50, %v6702_v39  ;;  %8148 = vst [vmem:[#allocation13_spill] sm:$0xff] %v6789_v0  ;;  %v6807_v50 = vpop.permute.xlu1 %1808  ;;  %v2914_v53 = vadd.f32 1.1283791, %v2913_v57  ;;  %v6831_v0 = vadd.f32 %v6738_v29, %v6758_v43  ;;  %vm2931_vm7 = vweird.f32 %v6731_v54 }
 0x512   : > { %v2963_v22 = vadd.f32 0.4994258, %v2962_v48  ;;  %v3037_v31 = vadd.f32 0.001143296, %v3036_v58  ;;  %v6783_v14 = vmin.f32 %v3103_v40, 16.0  ;;  %v1789_v10 = vpop.permute.xlu2 %1788  ;;  %8149 = vst [vmem:[#allocation19_spill] sm:$0xff] %v6801_v11  ;;  %v2987_v58 = vmul.f32 %v2986_v59, %v6702_v39 }
 0x513   : > { %v6764_v62 = vpop.eup %4535  ;;  %v6792_v18 = vadd.f32 %v6669_v6, %v1789_v10  ;;  %v6804_v3 = vadd.f32 1.0, %v3004_v5  ;;  %8150 = vst [vmem:[#allocation12_spill] sm:$0xff] %v6807_v50  ;;  %v3025_v40 = vmul.f32 2.1237322e-06, %v6750_v61  ;;  %v6819_v34 = vadd.f32 %v6713_v16, %v6807_v50 }
 0x514   : > { %v2964_v27 = vmul.f32 %v2963_v22, %v6687_v7  ;;  %v2927_v48 = vmul.f32 %v6764_v62, %v6731_v54  ;;  %v1980_v22 = vpop.f32.mrf.mxu3  ;;  %v3038_v17 = vmul.f32 %v3037_v31, %v6750_v61  ;;  %v3116_v32 = vmul.f32 3.8918573e-05, %v6783_v14  ;;  %8151 = vst [vmem:[#allocation9_spill] sm:$0xff] %v6815_v36 }
 0x515   : > { %v6794_v56 = vadd.f32 %v1980_v22, %v1789_v10  ;;  %8152 = vst [vmem:[#allocation6_spill] sm:$0xff] %v6819_v34  ;;  %v2951_v31 = vmul.f32 %v2950_v42, %v6687_v7  ;;  %v1936_v22 = vpop.f32.mrf.mxu2  ;;  %v2935_v59 = vand.u32 2147483647, %v6731_v54  ;;  %v2937_v5 = vand.u32 2147483648, %v6731_v54  ;;  %v2856_v54 = vpop.f32.mrf.mxu1 }
 0x516   : > { %v6748_v55 = vadd.f32 1.0, %v2964_v27  ;;  %v2928_v60 = vsub.f32 1.0, %v2927_v48  ;;  %v3143_v27 = vmul.f32 %v6777_v28, %v6777_v28  ;;  %v3079_v48 = vadd.f32 0.014752088, %v3078_v47  ;;  %8153 = vst [vmem:[#allocation14_spill] sm:$0xff] %v6831_v0 }
 0x517   : > { %v3039_v47 = vadd.f32 0.014752088, %v3038_v17  ;;  %vm2932_vm6 = vweird.f32 %v6764_v62  ;;  %v3117_v35 = vadd.f32 0.001143296, %v3116_v32  ;;  %v3026_v16 = vadd.f32 0.00028619796, %v3025_v40 }
 0x518   : > { %4537 = vrcp.f32 %v6748_v55  ;;  %v2929_v6 = vmul.f32 %v6764_v62, %v2928_v60  ;;  %v6811_v1 = vmin.f32 %v3143_v27, 16.0  ;;  %v2988_v27 = vadd.f32 0.0036580483, %v2987_v58  ;;  %vm6845_vm8 = vmor %vm2931_vm7, %vm2932_vm6 }
 0x519   : > { %4539 = vrcp.f32 %v6804_v3  ;;  %v3080_v57 = vmul.f32 %v3079_v48, %v6745_v25  ;;  %v6837_v17 = vadd.f32 %v1936_v22, %v6768_v4  ;;  %v2952_v58 = vadd.f32 0.18741608, %v2951_v31 }
 0x51a   : > { %v2930_v10 = vadd.f32 %v6764_v62, %v2929_v6  ;;  %v3156_v42 = vmul.f32 3.8918573e-05, %v6811_v1  ;;  %v2915_v32 = vmul.f32 %v2914_v53, %v6667_v33  ;;  %v3040_v40 = vmul.f32 %v3039_v47, %v6750_v61 }
 0x51b   : > { %vm6849_vm9 = vcmp.eq.f32.partialorder %v2935_v59, 8.507059e+37  ;;  %v2938_v48 = vor.u32 1.1754944e-38, %v2937_v5  ;;  %v2989_v31 = vmul.f32 %v2988_v27, %v6702_v39  ;;  %v3118_v33 = vmul.f32 %v3117_v35, %v6783_v14 }
 0x51c   : > { %v2934_v53 = vsel %vm6845_vm8, %v6764_v62, %v2930_v10  ;;  %v3027_v22 = vmul.f32 %v3026_v16, %v6750_v61  ;;  %v3157_v47 = vadd.f32 0.001143296, %v3156_v42  ;;  %v2953_v59 = vmul.f32 %v2952_v58, %v6687_v7 }
 0x51d   : > { %vm2971_vm10 = vweird.f32 %v6748_v55  ;;  %v2975_v5 = vand.u32 2147483647, %v6748_v55  ;;  %v3065_v27 = vmul.f32 2.1237322e-06, %v6745_v25  ;;  %v3041_v62 = vadd.f32 0.112945676, %v3040_v40 }
 0x51e   : > { %v6780_v13 = vpop.eup %4537  ;;  %v6868_v10 = vadd.f32 %v2856_v54, %v6660_v37  ;;  %v2977_v16 = vand.u32 2147483648, %v6748_v55  ;;  %v3119_v42 = vadd.f32 0.014752088, %v3118_v33  ;;  %v6872_v7 = vadd.f32 %v2818_v49, %v6678_v20 }
 0x51f   : > { %v2967_v24 = vmul.f32 %v6780_v13, %v6748_v55  ;;  %v6859_v15 = vpop.eup %4539  ;;  %vm2972_vm11 = vweird.f32 %v6780_v13  ;;  %v3028_v29 = vadd.f32 0.0036580483, %v3027_v22  ;;  %v2939_v40 = vsel %vm6849_vm9, %v2938_v48, %v2934_v53 }
 0x520   : > { %8158 = vst [vmem:[#allocation7_spill] sm:$0xff] %v6868_v10  ;;  %v3007_v58 = vmul.f32 %v6859_v15, %v6804_v3  ;;  %v2954_v37 = vadd.f32 1.1283791, %v2953_v59  ;;  %vm6882_vm12 = vmor %vm2971_vm10, %vm2972_vm11  ;;  %v3066_v49 = vadd.f32 0.00028619796, %v3065_v27  ;;  %vm2976_vm13 = vcmp.eq.f32.partialorder %v2975_v5, 8.507059e+37 }
 0x521   : > { %v2968_v60 = vsub.f32 1.0, %v2967_v24  ;;  %v6834_v24 = vadd.f32 %v1933_v30, %v6722_v23  ;;  %v3105_v33 = vmul.f32 2.1237322e-06, %v6783_v14  ;;  %v3042_v22 = vmul.f32 %v3041_v62, %v6750_v61 }
 0x522   : > { %v6892_v30 = vmul.f32 0.70710677, %v6868_v10  ;;  %v2978_v48 = vor.u32 1.1754944e-38, %v2977_v16  ;;  %v3120_v53 = vmul.f32 %v3119_v42, %v6783_v14  ;;  %v3029_v59 = vmul.f32 %v3028_v29, %v6750_v61 }
 0x523   : > { %v2969_v6 = vmul.f32 %v6780_v13, %v2968_v60  ;;  %v3081_v60 = vadd.f32 0.112945676, %v3080_v57  ;;  %v2990_v57 = vadd.f32 0.05243302, %v2989_v31  ;;  %v3106_v62 = vadd.f32 0.00028619796, %v3105_v33 }
 0x524   : > { %v3043_v50 = vadd.f32 0.4994258, %v3042_v22  ;;  %v3145_v16 = vmul.f32 2.1237322e-06, %v6811_v1  ;;  %v2955_v29 = vmul.f32 %v2954_v37, %v6676_v45  ;;  %vm3011_vm14 = vweird.f32 %v6804_v3 }
 0x525   : > { %v2970_v35 = vadd.f32 %v6780_v13, %v2969_v6  ;;  %v3082_v46 = vmul.f32 %v3081_v60, %v6745_v25  ;;  %v3158_v6 = vmul.f32 %v3157_v47, %v6811_v1  ;;  %v2991_v55 = vmul.f32 %v2990_v57, %v6702_v39 }
 0x526   : > { %v6897_v60 = vmul.f32 0.70710677, %v6872_v7  ;;  %v3008_v47 = vsub.f32 1.0, %v3007_v58  ;;  %v3183_v57 = vmul.f32 %v6892_v30, %v6892_v30  ;;  %v2871_v58 = vmul.f32 0.5, %v6662_v19 }
 0x527   : > { %v2974_v54 = vsel %vm6882_vm12, %v6780_v13, %v2970_v35  ;;  %v3083_v27 = vadd.f32 0.4994258, %v3082_v46  ;;  %v3159_v31 = vadd.f32 0.014752088, %v3158_v6  ;;  %v2940_v13 = vmul.f32 %v2939_v40, %v2915_v32 }
 0x528   : > { %v2979_v5 = vsel %vm2976_vm13, %v2978_v48, %v2974_v54  ;;  %v3067_v35 = vmul.f32 %v3066_v49, %v6745_v25  ;;  %v3223_v42 = vmul.f32 %v6897_v60, %v6897_v60  ;;  %v2992_v46 = vadd.f32 0.18741608, %v2991_v55 }
 0x529   : > { %v3121_v6 = vadd.f32 0.112945676, %v3120_v53  ;;  %v3009_v32 = vmul.f32 %v6859_v15, %v3008_v47  ;;  %v3030_v40 = vadd.f32 0.05243302, %v3029_v59  ;;  %v3084_v49 = vmul.f32 %v3083_v27, %v6745_v25 }
 0x52a   : > { %v3160_v33 = vmul.f32 %v3159_v31, %v6811_v1  ;;  %v4374_v54 = vclamps-f32 %v2940_v13, 1.0  ;;  %v2980_v22 = vmul.f32 %v2979_v5, %v2955_v29  ;;  %v3068_v48 = vadd.f32 0.0036580483, %v3067_v35 }
 0x52b   : > { %v6911_v10 = vmin.f32 %v3223_v42, 16.0  ;;  %v3044_v43 = vmul.f32 %v3043_v50, %v6750_v61  ;;  %v3107_v19 = vmul.f32 %v3106_v62, %v6783_v14  ;;  %v3146_v23 = vadd.f32 0.00028619796, %v3145_v16 }
 0x52c   : > { %v6915_v45 = vmin.f32 %v3183_v57, 16.0  ;;  %v2993_v37 = vmul.f32 %v2992_v46, %v6702_v39  ;;  %vm3012_vm15 = vweird.f32 %v6859_v15  ;;  %v3122_v55 = vmul.f32 %v3121_v6, %v6783_v14 }
 0x52d   : > { %v3010_v53 = vadd.f32 %v6859_v15, %v3009_v32  ;;  %v3031_v47 = vmul.f32 %v3030_v40, %v6750_v61  ;;  %v6923_v59 = vadd.f32 1.0, %v3084_v49  ;;  %v3161_v50 = vadd.f32 0.112945676, %v3160_v33  ;;  %vm6937_vm0 = vmor %vm3011_vm14, %vm3012_vm15  ;;  %v2859_v40 = vpop.f32.mrf.mxu1 }
 0x52e   : > { %v3015_v27 = vand.u32 2147483647, %v6804_v3  ;;  %v3017_v31 = vand.u32 2147483648, %v6804_v3  ;;  %v3069_v13 = vmul.f32 %v3068_v48, %v6745_v25  ;;  %v3236_v39 = vmul.f32 3.8918573e-05, %v6911_v10 }
 0x52f   : > { %v6929_v5 = vadd.f32 1.0, %v3044_v43  ;;  %v3108_v35 = vadd.f32 0.0036580483, %v3107_v19  ;;  %v3147_v62 = vmul.f32 %v3146_v23, %v6811_v1  ;;  %v3196_v16 = vmul.f32 3.8918573e-05, %v6915_v45  ;;  %v2821_v19 = vpop.f32.mrf.mxu0 }
 0x530   : > { %v3543_v57 = vadd.f32 1.0, %v4374_v54  ;;  %v4375_v42 = vclamps-f32 %v2980_v22, 1.0  ;;  %v2994_v29 = vadd.f32 1.1283791, %v2993_v37  ;;  %v3123_v6 = vadd.f32 0.4994258, %v3122_v55 }
 0x531   : > { %v3014_v43 = vsel %vm6937_vm0, %v6859_v15, %v3010_v53  ;;  %v3032_v32 = vadd.f32 0.18741608, %v3031_v47  ;;  %4541 = vrcp.f32 %v6923_v59  ;;  %v3162_v23 = vmul.f32 %v3161_v50, %v6811_v1 }
 0x532   : > { %vm3016_vm2 = vcmp.eq.f32.partialorder %v3015_v27, 8.507059e+37  ;;  %v3018_v49 = vor.u32 1.1754944e-38, %v3017_v31  ;;  %v3070_v33 = vadd.f32 0.05243302, %v3069_v13  ;;  %v3237_v54 = vadd.f32 0.001143296, %v3236_v39 }
 0x533   : > { %4543 = vrcp.f32 %v6929_v5  ;;  %v3109_v3 = vmul.f32 %v3108_v35, %v6783_v14  ;;  %v3148_v22 = vadd.f32 0.0036580483, %v3147_v62  ;;  %v3197_v48 = vadd.f32 0.001143296, %v3196_v16 }
 0x534   : > { %v2872_v37 = vmul.f32 0.5, %v6671_v51  ;;  %v3019_v15 = vsel %vm3016_vm2, %v3018_v49, %v3014_v43  ;;  %v3124_v55 = vmul.f32 %v3123_v6, %v6783_v14  ;;  %v6951_v53 = vadd.f32 %v2859_v40, %v6678_v20 }
 0x535   : > { %v3544_v47 = vadd.f32 1.0, %v4375_v42  ;;  %v2995_v50 = vmul.f32 %v2994_v29, %v6696_v63  ;;  %v3033_v27 = vmul.f32 %v3032_v32, %v6750_v61  ;;  %v3163_v31 = vadd.f32 0.4994258, %v3162_v23 }
 0x536   : > { %8163 = vst [vmem:[#allocation11_spill] sm:$0xff] %v6951_v53  ;;  %v6955_v13 = vmul.f32 %v3543_v57, %v2871_v58  ;;  %v3071_v39 = vmul.f32 %v3070_v33, %v6745_v25  ;;  %v3238_v35 = vmul.f32 %v3237_v54, %v6911_v10  ;;  %v6960_v51 = vadd.f32 %v2821_v19, %v6707_v9 }
 0x537   : > { %v6962_v62 = vpop.eup %4541  ;;  %v3020_v16 = vmul.f32 %v3019_v15, %v2995_v50  ;;  %v3110_v20 = vadd.f32 0.05243302, %v3109_v3  ;;  %v3149_v42 = vmul.f32 %v3148_v22, %v6811_v1  ;;  %v3198_v63 = vmul.f32 %v3197_v48, %v6915_v45 }
 0x538   : > { %v6967_v61 = vmul.f32 0.5, %v6720_v38  ;;  %v6969_v58 = vadd.f32 1.0, %v3124_v55  ;;  %v3185_v57 = vmul.f32 2.1237322e-06, %v6915_v45  ;;  %v6973_v29 = vmul.f32 0.70710677, %v6951_v53 }
 0x539   : > { %v6975_v46 = vpop.eup %4543  ;;  %v6977_v6 = vmul.f32 %v3544_v47, %v2872_v37  ;;  %v6979_v43 = vadd.f32 1.1283791, %v3033_v27  ;;  %v3057_v32 = vand.u32 2147483648, %v6929_v5  ;;  %v3164_v23 = vmul.f32 %v3163_v31, %v6811_v1 }
 0x53a   : > { %8164 = vst [vmem:[#allocation5_spill] sm:$0xff] %v6967_v61  ;;  %v3072_v40 = vadd.f32 0.18741608, %v3071_v39  ;;  %v3087_v38 = vmul.f32 %v6962_v62, %v6923_v59  ;;  %v3239_v49 = vadd.f32 0.014752088, %v3238_v35  ;;  %v4376_v54 = vclamps-f32 %v3020_v16, 1.0 }
 0x53b   : > { %8165 = vst [vmem:[#allocation17_spill] sm:$0xff] %v6975_v46  ;;  %v6986_v33 = vmul.f32 0.70710677, %v6960_v51  ;;  %v3111_v3 = vmul.f32 %v3110_v20, %v6783_v14  ;;  %v3150_v22 = vadd.f32 0.05243302, %v3149_v42  ;;  %v3047_v19 = vmul.f32 %v6975_v46, %v6929_v5  ;;  %v2862_v20 = vpop.f32.mrf.mxu1 }
 0x53c   : > { %8166 = vst [vmem:[#allocation15_spill] sm:$0xff] %v6979_v43  ;;  %v3199_v48 = vadd.f32 0.014752088, %v3198_v63  ;;  %4545 = vrcp.f32 %v6969_v58  ;;  %v3186_v37 = vadd.f32 0.00028619796, %v3185_v57  ;;  %v3263_v15 = vmul.f32 %v6973_v29, %v6973_v29 }
 0x53d   : > { %v6996_v47 = vmul.f32 0.5, %v6762_v2  ;;  %v6998_v50 = vadd.f32 1.0, %v3164_v23  ;;  %v3225_v27 = vmul.f32 2.1237322e-06, %v6911_v10  ;;  %v3073_v31 = vmul.f32 %v3072_v40, %v6745_v25 }
 0x53e   : > { %v3088_v39 = vsub.f32 1.0, %v3087_v38  ;;  %v3240_v35 = vmul.f32 %v3239_v49, %v6911_v10  ;;  %v3303_v16 = vmul.f32 %v6986_v33, %v6986_v33  ;;  %v7005_v42 = vor.u32 1.1754944e-38, %v3057_v32 }
 0x53f   : > { %8167 = vst [vmem:[#allocation26_spill] sm:$0xff] %v6996_v47  ;;  %v3112_v63 = vadd.f32 0.18741608, %v3111_v3  ;;  %v3151_v57 = vmul.f32 %v3150_v22, %v6811_v1  ;;  %v3200_v2 = vmul.f32 %v3199_v48, %v6915_v45  ;;  %v7009_v23 = vadd.f32 1.0, %v4376_v54 }
 0x540   : > { %8168 = vst [vmem:[#allocation27_spill] sm:$0xff] %v7005_v42  ;;  %v3048_v55 = vsub.f32 1.0, %v3047_v19  ;;  %v3187_v53 = vmul.f32 %v3186_v37, %v6915_v45  ;;  %v7012_v25 = vmin.f32 %v3263_v15, 16.0  ;;  %vm3052_vm4 = vweird.f32 %v6975_v46 }
 0x541   : > { %8169 = vst [vmem:[#allocation28_spill] sm:$0xff] %v7009_v23  ;;  %4547 = vrcp.f32 %v6998_v50  ;;  %v3226_v40 = vadd.f32 0.00028619796, %v3225_v27  ;;  %v7017_v32 = vadd.f32 %v2862_v20, %v6707_v9  ;;  %vm3051_vm5 = vweird.f32 %v6929_v5 }
 0x542   : > { %v7019_v38 = vpop.eup %4545  ;;  %v3074_v49 = vadd.f32 1.1283791, %v3073_v31  ;;  %v3089_v54 = vmul.f32 %v6962_v62, %v3088_v39  ;;  %v3241_v3 = vadd.f32 0.112945676, %v3240_v35  ;;  %v7023_v22 = vmin.f32 %v3303_v16, 16.0  ;;  %vm7073_vm9 = vmor %vm3051_vm5, %vm3052_vm4 }
 0x543   : > { %8170 = vst [vmem:[#allocation29_spill] sm:$0xff] %v7017_v32  ;;  %v3095_v48 = vand.u32 2147483647, %v6923_v59  ;;  %v3113_v19 = vmul.f32 %v3112_v63, %v6783_v14  ;;  %v3152_v37 = vadd.f32 0.18741608, %v3151_v57  ;;  %v3049_v27 = vmul.f32 %v6975_v46, %v3048_v55 }
 0x544   : > { %v3201_v15 = vadd.f32 0.112945676, %v3200_v2  ;;  %vm3091_vm1 = vweird.f32 %v6923_v59  ;;  %v3188_v9 = vadd.f32 0.0036580483, %v3187_v53  ;;  %v3276_v20 = vmul.f32 3.8918573e-05, %v7012_v25 }
 0x545   : > { %v3097_v31 = vand.u32 2147483648, %v6923_v59  ;;  %v3127_v39 = vmul.f32 %v7019_v38, %v6969_v58  ;;  %v3227_v35 = vmul.f32 %v3226_v40, %v6911_v10  ;;  %v7035_v16 = vmul.f32 0.70710677, %v7017_v32  ;;  %v2824_v59 = vpop.f32.mrf.mxu0 }
 0x546   : > { %v3090_v14 = vadd.f32 %v6962_v62, %v3089_v54  ;;  %vm3092_vm6 = vweird.f32 %v6962_v62  ;;  %v3242_v55 = vmul.f32 %v3241_v3, %v6911_v10  ;;  %v3316_v53 = vmul.f32 3.8918573e-05, %v7023_v22 }
 0x547   : > { %v7041_v63 = vpop.eup %4547  ;;  %vm7043_vm7 = vcmp.eq.f32.partialorder %v3095_v48, 8.507059e+37  ;;  %v7047_v2 = vadd.f32 1.1283791, %v3113_v19  ;;  %v3153_v40 = vmul.f32 %v3152_v37, %v6811_v1  ;;  %v3202_v11 = vmul.f32 %v3201_v15, %v6915_v45  ;;  %vm7058_vm8 = vmor %vm3091_vm1, %vm3092_vm6 }
 0x548   : > { %v7052_v54 = vadd.f32 %v6975_v46, %v3049_v27  ;;  %v3137_v32 = vand.u32 2147483648, %v6969_v58  ;;  %v3189_v3 = vmul.f32 %v3188_v9, %v6915_v45  ;;  %v3277_v4 = vadd.f32 0.001143296, %v3276_v20 }
 0x549   : > { %8173 = vst [vmem:[#allocation30_spill] sm:$0xff] %v7047_v2  ;;  %v3098_v19 = vor.u32 1.1754944e-38, %v3097_v31  ;;  %v3128_v44 = vsub.f32 1.0, %v3127_v39  ;;  %v3228_v36 = vadd.f32 0.0036580483, %v3227_v35  ;;  %v3343_v1 = vmul.f32 %v7035_v16, %v7035_v16 }
 0x54a   : > { %8174 = vst [vmem:[#allocation31_spill] sm:$0xff] %v7052_v54  ;;  %v3094_v37 = vsel %vm7058_vm8, %v6962_v62, %v3090_v14  ;;  %v3167_v15 = vmul.f32 %v7041_v63, %v6998_v50  ;;  %v3243_v27 = vadd.f32 0.4994258, %v3242_v55  ;;  %v3317_v9 = vadd.f32 0.001143296, %v3316_v53 }
 0x54b   : > { %v3075_v31 = vmul.f32 %v3074_v49, %v6726_v12  ;;  %v3135_v39 = vand.u32 2147483647, %v6969_v58  ;;  %v3154_v35 = vadd.f32 1.1283791, %v3153_v40  ;;  %v3203_v62 = vadd.f32 0.4994258, %v3202_v11  ;;  %v2865_v11 = vpop.f32.mrf.mxu1 }
 0x54c   : > { %v7083_v55 = vor.u32 1.1754944e-38, %v3137_v32  ;;  %v3190_v53 = vadd.f32 0.05243302, %v3189_v3  ;;  %v3278_v48 = vmul.f32 %v3277_v4, %v7012_v25  ;;  %v3099_v23 = vsel %vm7043_vm7, %v3098_v19, %v3094_v37 }
 0x54d   : > { %v3229_v34 = vmul.f32 %v3228_v36, %v6911_v10  ;;  %v7089_v12 = vmin.f32 %v3343_v1, 16.0  ;;  %v7092_v49 = vadd.f32 %v2824_v59, %v6658_v21  ;;  %v3129_v40 = vmul.f32 %v7019_v38, %v3128_v44 }
 0x54e   : > { %vm3131_vm10 = vweird.f32 %v6969_v58  ;;  %v3168_v32 = vsub.f32 1.0, %v3167_v15  ;;  %v3244_v3 = vmul.f32 %v3243_v27, %v6911_v10  ;;  %v3318_v4 = vmul.f32 %v3317_v9, %v7023_v22 }
 0x54f   : > { %v7099_v57 = vmul.f32 %v3154_v35, %v6777_v28  ;;  %v3204_v36 = vmul.f32 %v3203_v62, %v6915_v45  ;;  %v7103_v19 = vmul.f32 0.5, %v6872_v7  ;;  %v3265_v1 = vmul.f32 2.1237322e-06, %v7012_v25 }
 0x550   : > { %v3100_v37 = vmul.f32 %v3099_v23, %v3075_v31  ;;  %v3191_v44 = vmul.f32 %v3190_v53, %v6915_v45  ;;  %v3279_v59 = vadd.f32 0.014752088, %v3278_v48  ;;  %v7108_v15 = vadd.f32 %v2865_v11, %v6658_v21 }
 0x551   : > { %vm3132_vm11 = vweird.f32 %v7019_v38  ;;  %v3230_v27 = vadd.f32 0.05243302, %v3229_v34  ;;  %v3356_v28 = vmul.f32 3.8918573e-05, %v7089_v12  ;;  %v7113_v9 = vmul.f32 0.70710677, %v7092_v49 }
 0x552   : > { %8179 = vst [vmem:[#allocation32_spill] sm:$0xff] %v7108_v15  ;;  %v3130_v7 = vadd.f32 %v7019_v38, %v3129_v40  ;;  %vm7116_vm12 = vcmp.eq.f32.partialorder %v3135_v39, 8.507059e+37  ;;  %v3169_v23 = vmul.f32 %v7041_v63, %v3168_v32  ;;  %v7121_v31 = vadd.f32 1.0, %v3244_v3  ;;  %vm7143_vm15 = vmor %vm3131_vm10, %vm3132_vm11 }
 0x553   : > { %v3319_v21 = vadd.f32 0.014752088, %v3318_v4  ;;  %vm3171_vm13 = vweird.f32 %v6998_v50  ;;  %v3175_v34 = vand.u32 2147483647, %v6998_v50  ;;  %v7125_v62 = vadd.f32 1.0, %v3204_v36 }
 0x554   : > { %v3266_v53 = vadd.f32 0.00028619796, %v3265_v1  ;;  %v4378_v48 = vclamps-f32 %v3100_v37, 1.0  ;;  %v3192_v11 = vadd.f32 0.18741608, %v3191_v44  ;;  %v3280_v40 = vmul.f32 %v3279_v59, %v7012_v25 }
 0x555   : > { %v7129_v39 = vmul.f32 0.70710677, %v7108_v15  ;;  %v3231_v14 = vmul.f32 %v3230_v27, %v6911_v10  ;;  %v3305_v32 = vmul.f32 2.1237322e-06, %v7023_v22  ;;  %v3357_v3 = vadd.f32 0.001143296, %v3356_v28 }
 0x556   : > { %v3383_v4 = vmul.f32 %v7113_v9, %v7113_v9  ;;  %v3170_v61 = vadd.f32 %v7041_v63, %v3169_v23  ;;  %vm3172_vm14 = vweird.f32 %v7041_v63  ;;  %4549 = vrcp.f32 %v7121_v31 }
 0x557   : > { %v3320_v36 = vmul.f32 %v3319_v21, %v7023_v22  ;;  %v3177_v37 = vand.u32 2147483648, %v6998_v50  ;;  %4551 = vrcp.f32 %v7125_v62  ;;  %v3267_v44 = vmul.f32 %v3266_v53, %v7012_v25  ;;  %vm7160_vm0 = vmor %vm3171_vm13, %vm3172_vm14 }
 0x558   : > { %v7150_v59 = vmin.f32 %v3383_v4, 16.0  ;;  %v3134_v27 = vsel %vm7143_vm15, %v7019_v38, %v3130_v7  ;;  %v3193_v28 = vmul.f32 %v3192_v11, %v6915_v45  ;;  %v3281_v23 = vadd.f32 0.112945676, %v3280_v40 }
 0x559   : > { %v3423_v58 = vmul.f32 %v7129_v39, %v7129_v39  ;;  %vm7164_vm2 = vcmp.eq.f32.partialorder %v3175_v34, 8.507059e+37  ;;  %v3232_v4 = vadd.f32 0.18741608, %v3231_v14  ;;  %v3306_v15 = vadd.f32 0.00028619796, %v3305_v32 }
 0x55a   : > { %v3358_v38 = vmul.f32 %v3357_v3, %v7089_v12  ;;  %v7169_v7 = vadd.f32 1.0, %v4378_v48  ;;  %v3174_v45 = vsel %vm7160_vm0, %v7041_v63, %v3170_v61  ;;  %v3321_v11 = vadd.f32 0.112945676, %v3320_v36 }
 0x55b   : > { %v3396_v50 = vmul.f32 3.8918573e-05, %v7150_v59  ;;  %v7178_v34 = vsel %vm7116_vm12, %v7083_v55, %v3134_v27  ;;  %v3178_v40 = vor.u32 1.1754944e-38, %v3177_v37  ;;  %v3217_v14 = vand.u32 2147483648, %v7125_v62  ;;  %v2827_v37 = vpop.f32.mrf.mxu0 }
 0x55c   : > { %8188 = vst [vmem:[#allocation33_spill] sm:$0xff] %v7169_v7  ;;  %v3268_v32 = vadd.f32 0.0036580483, %v3267_v44  ;;  %v7181_v1 = vpop.eup %4549  ;;  %v3194_v48 = vadd.f32 1.1283791, %v3193_v28  ;;  %v3282_v3 = vmul.f32 %v3281_v23, %v7012_v25  ;;  %v7184_v21 = vmin.f32 %v3423_v58, 16.0 }
 0x55d   : > { %8189 = vst [vmem:[#allocation34_spill] sm:$0xff] %v7178_v34  ;;  %v3397_v7 = vadd.f32 0.001143296, %v3396_v50  ;;  %v7186_v61 = vpop.eup %4551  ;;  %v3179_v63 = vsel %vm7164_vm2, %v3178_v40, %v3174_v45  ;;  %v3233_v55 = vmul.f32 %v3232_v4, %v6911_v10  ;;  %v3307_v35 = vmul.f32 %v3306_v15, %v7023_v22 }
 0x55e   : > { %v3359_v36 = vadd.f32 0.014752088, %v3358_v38  ;;  %v7193_v44 = vmul.f32 0.5, %v6960_v51  ;;  %v3322_v27 = vmul.f32 %v3321_v11, %v7023_v22  ;;  %v3436_v23 = vmul.f32 3.8918573e-05, %v7184_v21 }
 0x55f   : > { %v3398_v28 = vmul.f32 %v3397_v7, %v7150_v59  ;;  %v7199_v50 = vor.u32 1.1754944e-38, %v3217_v14  ;;  %v3247_v10 = vmul.f32 %v7181_v1, %v7121_v31  ;;  %v3269_v15 = vmul.f32 %v3268_v32, %v7012_v25 }
 0x560   : > { %v7205_v53 = vmul.f32 %v3179_v63, %v7099_v57  ;;  %v3207_v51 = vmul.f32 %v7186_v61, %v7125_v62  ;;  %v3283_v4 = vadd.f32 0.4994258, %v3282_v3  ;;  %v7210_v38 = vadd.f32 %v2827_v37, %v6664_v8 }
 0x561   : > { %v3234_v7 = vadd.f32 1.1283791, %v3233_v55  ;;  %v3308_v45 = vadd.f32 0.0036580483, %v3307_v35  ;;  %v3360_v11 = vmul.f32 %v3359_v36, %v7089_v12  ;;  %v3399_v40 = vadd.f32 0.014752088, %v3398_v28 }
 0x562   : > { %v7214_v14 = vmul.f32 %v3194_v48, %v6892_v30  ;;  %v3323_v58 = vadd.f32 0.4994258, %v3322_v27  ;;  %v3345_v32 = vmul.f32 2.1237322e-06, %v7089_v12  ;;  %v3437_v57 = vadd.f32 0.001143296, %v3436_v23  ;;  %v7234_v30 = vpop.f32.mrf.mxu3 }
 0x563   : > { %v3248_v63 = vsub.f32 1.0, %v3247_v10  ;;  %v3270_v34 = vadd.f32 0.05243302, %v3269_v15  ;;  %v3385_v43 = vmul.f32 2.1237322e-06, %v7150_v59  ;;  %v3400_v3 = vmul.f32 %v3399_v40, %v7150_v59  ;;  %8191 = vst [vmem:[#allocation36_spill] sm:$0xff] %v7234_v30 }
 0x564   : > { %8190 = vst [vmem:[#allocation35_spill] sm:$0xff] %v7214_v14  ;;  %v3208_v37 = vsub.f32 1.0, %v3207_v51  ;;  %v3284_v55 = vmul.f32 %v3283_v4, %v7012_v25  ;;  %v3438_v35 = vmul.f32 %v3437_v57, %v7184_v21  ;;  %v7222_v36 = vmul.f32 0.70710677, %v7210_v38 }
 0x565   : > { %v3309_v48 = vmul.f32 %v3308_v45, %v7023_v22  ;;  %v3361_v27 = vadd.f32 0.112945676, %v3360_v11  ;;  %v3401_v28 = vadd.f32 0.112945676, %v3400_v3  ;;  %v3324_v23 = vmul.f32 %v3323_v58, %v7023_v22 }
 0x566   : > { %v3346_v10 = vadd.f32 0.00028619796, %v3345_v32  ;;  %v3439_v15 = vadd.f32 0.014752088, %v3438_v35  ;;  %v3463_v51 = vmul.f32 %v7222_v36, %v7222_v36  ;;  %v7230_v4 = vmul.f32 %v3234_v7, %v6897_v60 }
 0x567   : > { %v3249_v40 = vmul.f32 %v7181_v1, %v3248_v63  ;;  %v3271_v57 = vmul.f32 %v3270_v34, %v7012_v25  ;;  %v3386_v52 = vadd.f32 0.00028619796, %v3385_v43  ;;  %v3209_v45 = vmul.f32 %v7186_v61, %v3208_v37 }
 0x568   : > { %v7237_v11 = vadd.f32 1.0, %v3284_v55  ;;  %v3402_v58 = vmul.f32 %v3401_v28, %v7150_v59  ;;  %v3440_v32 = vmul.f32 %v3439_v15, %v7184_v21  ;;  %vm3251_vm4 = vweird.f32 %v7121_v31 }
 0x569   : > { %v3310_v3 = vadd.f32 0.05243302, %v3309_v48  ;;  %v3362_v60 = vmul.f32 %v3361_v27, %v7089_v12  ;;  %v7243_v7 = vmin.f32 %v3463_v51, 16.0  ;;  %v7245_v63 = vadd.f32 1.0, %v3324_v23 }
 0x56a   : > { %v3347_v43 = vmul.f32 %v3346_v10, %v7089_v12  ;;  %v3403_v34 = vadd.f32 0.4994258, %v3402_v58  ;;  %v3441_v35 = vadd.f32 0.112945676, %v3440_v32  ;;  %v3250_v37 = vadd.f32 %v7181_v1, %v3249_v40  ;;  %v2868_v58 = vpop.f32.mrf.mxu1 }
 0x56b   : > { %vm3252_vm5 = vweird.f32 %v7181_v1  ;;  %v3272_v55 = vadd.f32 0.18741608, %v3271_v57  ;;  %v3387_v28 = vmul.f32 %v3386_v52, %v7150_v59  ;;  %4553 = vrcp.f32 %v7237_v11 }
 0x56c   : > { %v3404_v48 = vmul.f32 %v3403_v34, %v7150_v59  ;;  %v3442_v27 = vmul.f32 %v3441_v35, %v7184_v21  ;;  %v3465_v23 = vmul.f32 2.1237322e-06, %v7243_v7  ;;  %v3255_v15 = vand.u32 2147483647, %v7121_v31  ;;  %vm7261_vm6 = vmor %vm3251_vm4, %vm3252_vm5 }
 0x56d   : > { %v3257_v10 = vand.u32 2147483648, %v7121_v31  ;;  %v3311_v51 = vmul.f32 %v3310_v3, %v7023_v22  ;;  %v3363_v40 = vadd.f32 0.4994258, %v3362_v60  ;;  %vm3212_vm1 = vweird.f32 %v7186_v61 }
 0x56e   : > { %4555 = vrcp.f32 %v7245_v63  ;;  %v3348_v57 = vadd.f32 0.0036580483, %v3347_v43  ;;  %v7266_v32 = vadd.f32 1.0, %v3404_v48  ;;  %v3476_v34 = vmul.f32 3.8918573e-05, %v7243_v7 }
 0x56f   : > { %v3254_v3 = vsel %vm7261_vm6, %v7181_v1, %v3250_v37  ;;  %v3273_v60 = vmul.f32 %v3272_v55, %v7012_v25  ;;  %v3388_v35 = vadd.f32 0.0036580483, %v3387_v28  ;;  %v3425_v31 = vmul.f32 2.1237322e-06, %v7184_v21  ;;  %v7286_v55 = vpop.f32.mrf.mxu3 }
 0x570   : > { %vm3211_vm7 = vweird.f32 %v7125_v62  ;;  %4557 = vrcp.f32 %v7266_v32  ;;  %v3443_v30 = vadd.f32 0.4994258, %v3442_v27  ;;  %v3466_v41 = vadd.f32 0.00028619796, %v3465_v23  ;;  %8195 = vst [vmem:[#allocation38_spill] sm:$0xff] %v7286_v55 }
 0x571   : > { %v7277_v43 = vadd.f32 %v2868_v58, %v6664_v8  ;;  %v7280_v48 = vadd.f32 %v7186_v61, %v3209_v45  ;;  %v3258_v0 = vor.u32 1.1754944e-38, %v3257_v10  ;;  %v3297_v1 = vand.u32 2147483648, %v7237_v11  ;;  %v7284_v37 = vpop.eup %4553  ;;  %vm7329_vm10 = vmor %vm3211_vm7, %vm3212_vm1 }
 0x572   : > { %v3364_v25 = vmul.f32 %v3363_v40, %v7089_v12  ;;  %vm3256_vm8 = vcmp.eq.f32.partialorder %v3255_v15, 8.507059e+37  ;;  %v3312_v28 = vadd.f32 0.18741608, %v3311_v51  ;;  %v3349_v27 = vmul.f32 %v3348_v57, %v7089_v12 }
 0x573   : > { %8194 = vst [vmem:[#allocation37_spill] sm:$0xff] %v7277_v43  ;;  %v3477_v23 = vadd.f32 0.001143296, %v3476_v34  ;;  %v3259_v52 = vsel %vm3256_vm8, %v3258_v0, %v3254_v3  ;;  %v7289_v8 = vadd.f32 1.1283791, %v3273_v60  ;;  %v3389_v45 = vmul.f32 %v3388_v35, %v7150_v59 }
 0x574   : > { %v3426_v58 = vadd.f32 0.00028619796, %v3425_v31  ;;  %v7292_v10 = vpop.eup %4555  ;;  %v3444_v47 = vmul.f32 %v3443_v30, %v7184_v21  ;;  %v3467_v40 = vmul.f32 %v3466_v41, %v7243_v7  ;;  %v7298_v15 = vmul.f32 0.70710677, %v7277_v43 }
 0x575   : > { %v3478_v14 = vmul.f32 %v3477_v23, %v7243_v7  ;;  %v3287_v51 = vmul.f32 %v7284_v37, %v7237_v11  ;;  %v7303_v57 = vor.u32 1.1754944e-38, %v3297_v1  ;;  %v7305_v34 = vadd.f32 1.0, %v3364_v25 }
 0x576   : > { %v7307_v3 = vpop.eup %4557  ;;  %v3313_v30 = vmul.f32 %v3312_v28, %v7023_v22  ;;  %v3350_v60 = vadd.f32 0.05243302, %v3349_v27  ;;  %v7311_v41 = vmul.f32 0.5, %v7092_v49  ;;  %v3503_v35 = vmul.f32 %v7298_v15, %v7298_v15 }
 0x577   : > { %v7316_v31 = vmul.f32 %v3259_v52, %v7230_v4  ;;  %v3327_v1 = vmul.f32 %v7292_v10, %v7245_v63  ;;  %v3427_v25 = vmul.f32 %v3426_v58, %v7184_v21  ;;  %v3479_v23 = vadd.f32 0.014752088, %v3478_v14  ;;  %v7344_v2 = vpop.f32.mrf.mxu3 }
 0x578   : > { %v3390_v0 = vadd.f32 0.05243302, %v3389_v45  ;;  %v7321_v55 = vadd.f32 1.0, %v3444_v47  ;;  %v3468_v22 = vadd.f32 0.0036580483, %v3467_v40  ;;  %v7323_v28 = vmin.f32 %v3503_v35, 16.0 }
 0x579   : > { %v3288_v4 = vsub.f32 1.0, %v3287_v51  ;;  %4559 = vrcp.f32 %v7305_v34  ;;  %v3407_v14 = vmul.f32 %v7307_v3, %v7266_v32  ;;  %v3480_v47 = vmul.f32 %v3479_v23, %v7243_v7 }
 0x57a   : > { %v3314_v52 = vadd.f32 1.1283791, %v3313_v30  ;;  %v3505_v45 = vmul.f32 2.1237322e-06, %v7323_v28  ;;  %v3516_v58 = vmul.f32 3.8918573e-05, %v7323_v28  ;;  %v3351_v51 = vmul.f32 %v3350_v60, %v7089_v12 }
 0x57b   : > { %v3328_v40 = vsub.f32 1.0, %v3327_v1  ;;  %v3428_v35 = vadd.f32 0.0036580483, %v3427_v25  ;;  %v3481_v43 = vadd.f32 0.112945676, %v3480_v47  ;;  %v3391_v26 = vmul.f32 %v3390_v0, %v7150_v59 }
 0x57c   : > { %4561 = vrcp.f32 %v7321_v55  ;;  %v3469_v23 = vmul.f32 %v3468_v22, %v7243_v7  ;;  %v3506_v42 = vadd.f32 0.00028619796, %v3505_v45  ;;  %v3408_v27 = vsub.f32 1.0, %v3407_v14 }
 0x57d   : > { %v3482_v54 = vmul.f32 %v3481_v43, %v7243_v7  ;;  %v3517_v46 = vadd.f32 0.001143296, %v3516_v58  ;;  %v3289_v1 = vmul.f32 %v7284_v37, %v3288_v4  ;;  %vm3292_vm11 = vweird.f32 %v7284_v37 }
 0x57e   : > { %v7354_v60 = vmul.f32 %v3314_v52, %v6986_v33  ;;  %vm3331_vm12 = vweird.f32 %v7245_v63  ;;  %v7359_v0 = vadd.f32 %v6955_v13, %v6792_v18  ;;  %v3507_v14 = vmul.f32 %v3506_v42, %v7323_v28 }
 0x57f   : > { %v7361_v25 = vpop.eup %4559  ;;  %v3483_v22 = vadd.f32 0.4994258, %v3482_v54  ;;  %v3518_v43 = vmul.f32 %v3517_v46, %v7323_v28  ;;  %v7367_v4 = vadd.f32 %v6977_v6, %v6794_v56  ;;  %vm3291_vm13 = vweird.f32 %v7237_v11 }
 0x580   : > { %v3329_v33 = vmul.f32 %v7292_v10, %v3328_v40  ;;  %v3392_v47 = vadd.f32 0.18741608, %v3391_v26  ;;  %v3429_v52 = vmul.f32 %v3428_v35, %v7184_v21  ;;  %v3470_v18 = vadd.f32 0.05243302, %v3469_v23  ;;  %vm7428_vm1 = vmor %vm3291_vm13, %vm3292_vm11 }
 0x581   : > { %8198 = vst [vmem:[#allocation39_spill] sm:$0xff] %v7367_v4  ;;  %v3335_v13 = vand.u32 2147483647, %v7245_v63  ;;  %v3409_v54 = vmul.f32 %v7307_v3, %v3408_v27  ;;  %v3484_v42 = vmul.f32 %v3483_v22, %v7243_v7  ;;  %v3519_v45 = vadd.f32 0.014752088, %v3518_v43 }
 0x582   : > { %v7375_v46 = vpop.eup %4561  ;;  %v7378_v56 = vadd.f32 %v7284_v37, %v3289_v1  ;;  %v3337_v6 = vand.u32 2147483648, %v7245_v63  ;;  %v3352_v58 = vadd.f32 0.18741608, %v3351_v51  ;;  %v3367_v26 = vmul.f32 %v7361_v25, %v7305_v34 }
 0x583   : > { %vm3332_vm14 = vweird.f32 %v7292_v10  ;;  %v7384_v40 = vadd.f32 1.0, %v3484_v42  ;;  %v3508_v35 = vadd.f32 0.0036580483, %v3507_v14  ;;  %v3520_v27 = vmul.f32 %v3519_v45, %v7323_v28  ;;  %v7395_v42 = vpop.f32.mrf.mxu3 }
 0x584   : > { %v3330_v23 = vadd.f32 %v7292_v10, %v3329_v33  ;;  %v3393_v22 = vmul.f32 %v3392_v47, %v7150_v59  ;;  %v3430_v43 = vadd.f32 0.05243302, %v3429_v52  ;;  %v3471_v1 = vmul.f32 %v3470_v18, %v7243_v7  ;;  %vm7407_vm2 = vmor %vm3331_vm12, %vm3332_vm14 }
 0x585   : > { %v3410_v30 = vadd.f32 %v7307_v3, %v3409_v54  ;;  %vm3412_vm15 = vweird.f32 %v7307_v3  ;;  %v3447_v51 = vmul.f32 %v7375_v46, %v7321_v55  ;;  %4563 = vrcp.f32 %v7384_v40 }
 0x586   : > { %vm7397_vm0 = vcmp.eq.f32.partialorder %v3335_v13, 8.507059e+37  ;;  %v3353_v59 = vmul.f32 %v3352_v58, %v7089_v12  ;;  %v3368_v33 = vsub.f32 1.0, %v3367_v26  ;;  %v3417_v47 = vand.u32 2147483648, %v7266_v32 }
 0x587   : > { %vm3411_vm4 = vweird.f32 %v7266_v32  ;;  %v3415_v18 = vand.u32 2147483647, %v7266_v32  ;;  %v3509_v13 = vmul.f32 %v3508_v35, %v7323_v28  ;;  %v3521_v54 = vadd.f32 0.112945676, %v3520_v27 }
 0x588   : > { %v3334_v12 = vsel %vm7407_vm2, %v7292_v10, %v3330_v23  ;;  %v3338_v45 = vor.u32 1.1754944e-38, %v3337_v6  ;;  %vm7419_vm5 = vmor %vm3411_vm4, %vm3412_vm15  ;;  %v3431_v58 = vmul.f32 %v3430_v43, %v7184_v21  ;;  %v3472_v26 = vadd.f32 0.18741608, %v3471_v1 }
 0x589   : > { %v3394_v35 = vadd.f32 1.1283791, %v3393_v22  ;;  %v3414_v10 = vsel %vm7419_vm5, %v7307_v3, %v3410_v30  ;;  %v3448_v6 = vsub.f32 1.0, %v3447_v51  ;;  %v3522_v27 = vmul.f32 %v3521_v54, %v7323_v28 }
 0x58a   : > { %v3294_v23 = vsel %vm7428_vm1, %v7284_v37, %v7378_v56  ;;  %v7440_v43 = vadd.f32 1.1283791, %v3353_v59  ;;  %v3369_v1 = vmul.f32 %v7361_v25, %v3368_v33  ;;  %v3418_v52 = vor.u32 1.1754944e-38, %v3417_v47 }
 0x58b   : > { %v4564_v4 = vpop.eup %4563  ;;  %v3339_v22 = vsel %vm7397_vm0, %v3338_v45, %v3334_v12  ;;  %vm3416_vm6 = vcmp.eq.f32.partialorder %v3415_v18, 8.507059e+37  ;;  %v3510_v63 = vadd.f32 0.05243302, %v3509_v13  ;;  %v3523_v3 = vadd.f32 0.4994258, %v3522_v27 }
 0x58c   : > { %v3375_v30 = vand.u32 2147483647, %v7305_v34  ;;  %v3419_v51 = vsel %vm3416_vm6, %v3418_v52, %v3414_v10  ;;  %v3473_v54 = vmul.f32 %v3472_v26, %v7243_v7  ;;  %v3487_v32 = vmul.f32 %v4564_v4, %v7384_v40 }
 0x58d   : > { %v8207_v37 = vand.u32 2147483647, %v7237_v11  ;;  %vm3371_vm8 = vweird.f32 %v7305_v34  ;;  %v3395_v14 = vmul.f32 %v3394_v35, %v7113_v9  ;;  %v3432_v59 = vadd.f32 0.18741608, %v3431_v58  ;;  %v7465_v9 = vpop.f32.mrf.mxu3 }
 0x58e   : > { %v3449_v33 = vmul.f32 %v7375_v46, %v3448_v6  ;;  %v3524_v47 = vmul.f32 %v3523_v3, %v7323_v28  ;;  %v3340_v18 = vmul.f32 %v3339_v22, %v7354_v60  ;;  %v3370_v7 = vadd.f32 %v7361_v25, %v3369_v1 }
 0x58f   : > { %vm7450_vm7 = vcmp.eq.f32.partialorder %v8207_v37, 8.507059e+37  ;;  %vm3372_vm11 = vweird.f32 %v7361_v25  ;;  %v3488_v11 = vsub.f32 1.0, %v3487_v32  ;;  %v3420_v13 = vmul.f32 %v3419_v51, %v3395_v14  ;;  %v8226_v51 = vld [vmem:[#allocation27_spill] sm:$0xff] }
 0x590   : > { %v3497_v12 = vand.u32 2147483648, %v7384_v40  ;;  %v3511_v45 = vmul.f32 %v3510_v63, %v7323_v28  ;;  %v7463_v26 = vadd.f32 1.0, %v3524_v47  ;;  %v3474_v58 = vadd.f32 1.1283791, %v3473_v54  ;;  %vm7500_vm1 = vmor %vm3371_vm8, %vm3372_vm11 }
 0x591   : > { %v3489_v35 = vmul.f32 %v4564_v4, %v3488_v11  ;;  %vm3492_vm12 = vweird.f32 %v4564_v4  ;;  %v3495_v10 = vand.u32 2147483647, %v7384_v40  ;;  %v3433_v60 = vmul.f32 %v3432_v59, %v7184_v21 }
 0x592   : > { %v3450_v6 = vadd.f32 %v7375_v46, %v3449_v33  ;;  %vm3452_vm13 = vweird.f32 %v7375_v46  ;;  %4565 = vrcp.f32 %v7463_v26  ;;  %vm3451_vm14 = vweird.f32 %v7321_v55 }
 0x593   : > { %v3457_v27 = vand.u32 2147483648, %v7321_v55  ;;  %v3490_v1 = vadd.f32 %v4564_v4, %v3489_v35  ;;  %vm3491_vm15 = vweird.f32 %v7384_v40  ;;  %v4386_v52 = vclamps-f32 %v3420_v13, 1.0  ;;  %vm7483_vm4 = vmor %vm3451_vm14, %vm3452_vm13 }
 0x594   : > { %v3455_v22 = vand.u32 2147483647, %v7321_v55  ;;  %vm3493_vm0 = vmor %vm3491_vm15, %vm3492_vm12  ;;  %v3498_v63 = vor.u32 1.1754944e-38, %v3497_v12  ;;  %v3512_v3 = vadd.f32 0.18741608, %v3511_v45  ;;  %v3377_v54 = vand.u32 2147483648, %v7305_v34 }
 0x595   : > { %v8210_v21 = vand.u32 2147483647, %v7125_v62  ;;  %v3475_v40 = vmul.f32 %v3474_v58, %v7222_v36  ;;  %v3494_v37 = vsel %vm3493_vm0, %v4564_v4, %v3490_v1  ;;  %vm3496_vm5 = vcmp.eq.f32.partialorder %v3495_v10, 8.507059e+37 }
 0x596   : > { %v4384_v55 = vclamps-f32 %v3340_v18, 1.0  ;;  %v3434_v14 = vadd.f32 1.1283791, %v3433_v60  ;;  %v3454_v62 = vsel %vm7483_vm4, %v7375_v46, %v3450_v6  ;;  %v3499_v59 = vsel %vm3496_vm5, %v3498_v63, %v3494_v37 }
 0x597   : > { %vm7478_vm2 = vcmp.eq.f32.partialorder %v8210_v21, 8.507059e+37  ;;  %v8215_v33 = vclamps-f32 %v7316_v31, 1.0  ;;  %v3299_v11 = vsel %vm7450_vm7, %v7303_v57, %v3294_v23  ;;  %v3458_v4 = vor.u32 1.1754944e-38, %v3457_v27 }
 0x598   : > { %v3500_v18 = vmul.f32 %v3499_v59, %v3475_v40  ;;  %v4566_v13 = vpop.eup %4565  ;;  %v3374_v31 = vsel %vm7500_vm1, %v7361_v25, %v3370_v7  ;;  %v3555_v46 = vadd.f32 1.0, %v4386_v52  ;;  %vm3456_vm6 = vcmp.eq.f32.partialorder %v3455_v22, 8.507059e+37  ;;  %v7520_v25 = vpop.f32.mrf.mxu3 }
 0x599   : > { %v3551_v47 = vadd.f32 1.0, %v8215_v33  ;;  %v3513_v56 = vmul.f32 %v3512_v3, %v7323_v28  ;;  %v8218_v57 = vand.u32 2147483647, %v6929_v5  ;;  %v3378_v12 = vor.u32 1.1754944e-38, %v3377_v54  ;;  %v8230_v33 = vld [vmem:[#allocation26_spill] sm:$0xff] }
 0x59a   : > { %v3459_v45 = vsel %vm3456_vm6, %v3458_v4, %v3454_v62  ;;  %v4388_v58 = vclamps-f32 %v3500_v18, 1.0  ;;  %v3527_v35 = vmul.f32 %v4566_v13, %v7463_v26  ;;  %v3553_v10 = vadd.f32 1.0, %v4384_v55  ;;  %v8228_v55 = vld [vmem:[#allocation30_spill] sm:$0xff]  ;;  %v8229_v62 = vld [vmem:[#allocation35_spill] sm:$0xff]  ;;  %v8232_v4 = vld [vmem:[#allocation20_spill] sm:$0xff] }
 0x59b   : > { %vm7510_vm7 = vcmp.eq.f32.partialorder %v8218_v57, 8.507059e+37  ;;  %v3355_v60 = vmul.f32 %v7440_v43, %v7035_v16  ;;  %vm3376_vm8 = vcmp.eq.f32.partialorder %v3375_v30, 8.507059e+37  ;;  %v3435_v28 = vmul.f32 %v3434_v14, %v7129_v39  ;;  %v8236_v57 = vld [vmem:[#allocation33_spill] sm:$0xff] }
 0x59c   : > { %v3379_v5 = vsel %vm3376_vm8, %v3378_v12, %v3374_v31  ;;  %v2885_v7 = vmul.f32 0.5, %v7210_v38  ;;  %v3557_v6 = vadd.f32 1.0, %v4388_v58  ;;  %v3528_v27 = vsub.f32 1.0, %v3527_v35  ;;  %v8234_v31 = vld [vmem:[#allocation15_spill] sm:$0xff]  ;;  %v8237_v12 = vld [vmem:[#allocation34_spill] sm:$0xff] }
 0x59d   : > { %v3571_v1 = vmul.f32 %v3555_v46, %v7311_v41  ;;  %v3460_v52 = vmul.f32 %v3459_v45, %v3435_v28  ;;  %v3514_v22 = vadd.f32 1.1283791, %v3513_v56  ;;  %v3537_v63 = vand.u32 2147483648, %v7463_v26  ;;  %v8235_v56 = vld [vmem:[#allocation5_spill] sm:$0xff]  ;;  %v8238_v28 = vld [vmem:[#allocation6_spill] sm:$0xff] }
 0x59e   : > { %v3573_v3 = vmul.f32 %v3557_v6, %v2885_v7  ;;  %v3529_v16 = vmul.f32 %v4566_v13, %v3528_v27  ;;  %vm3532_vm11 = vweird.f32 %v4566_v13  ;;  %v3535_v34 = vand.u32 2147483647, %v7463_v26  ;;  %v8239_v7 = vld [vmem:[#allocation28_spill] sm:$0xff] }
 0x59f   : > { %v8221_v39 = vclamps-f32 %v7205_v53, 1.0  ;;  %v8222_v38 = vsel %vm7329_vm10, %v7186_v61, %v7280_v48  ;;  %v3275_v30 = vmul.f32 %v7289_v8, %v6973_v29  ;;  %v3569_v21 = vmul.f32 %v3553_v10, %v7193_v44  ;;  %v8223_v44 = vld [vmem:[#allocation17_spill] sm:$0xff] }
 0x5a0   : > { %v3219_v41 = vsel %vm7478_vm2, %v7199_v50, %v8222_v38  ;;  %v3380_v54 = vmul.f32 %v3379_v5, %v3355_v60  ;;  %v3589_v32 = vadd.f32 %v3573_v3, %v6837_v17  ;;  %v3530_v40 = vadd.f32 %v4566_v13, %v3529_v16  ;;  %v8224_v17 = vld [vmem:[#allocation31_spill] sm:$0xff]  ;;  %v2001_v58 = vpop.f32.mrf.mxu3  ;;  %v8241_v16 = vld [vmem:[#allocation37_spill] sm:$0xff] }
 0x5a1   : > { %v3549_v43 = vadd.f32 1.0, %v8221_v39  ;;  %vm3531_vm12 = vweird.f32 %v7463_v26  ;;  %v3567_v53 = vmul.f32 %v3551_v47, %v7103_v19  ;;  %v3300_v49 = vmul.f32 %v3299_v11, %v3275_v30  ;;  %v8227_v26 = vld [vmem:[#allocation8_spill] sm:$0xff] }
 0x5a2   : > { %v4387_v37 = vclamps-f32 %v3460_v52, 1.0  ;;  %vm3533_vm10 = vmor %vm3531_vm12, %vm3532_vm11  ;;  %v3538_v61 = vor.u32 1.1754944e-38, %v3537_v63  ;;  %v3515_v48 = vmul.f32 %v3514_v22, %v7298_v15  ;;  %vm3536_vm13 = vcmp.eq.f32.partialorder %v3535_v34, 8.507059e+37  ;;  %3639 = vmatpush.msra.mxu0 %v3589_v32  ;;  %v8240_v52 = vld [vmem:[#allocation32_spill] sm:$0xff]  ;;  %v1794_v63 = vpop.permute.xlu1 %1793 }
 0x5a3   : > { %v3534_v50 = vsel %vm3533_vm10, %v4566_v13, %v3530_v40  ;;  %v3587_v29 = vadd.f32 %v3571_v1, %v6834_v24  ;;  %v8225_v8 = vsel %vm7073_vm9, %v8223_v44, %v8224_v17  ;;  %v3115_v14 = vmul.f32 %v8228_v55, %v8227_v26  ;;  %v8231_v24 = vld [vmem:[#allocation14_spill] sm:$0xff]  ;;  %v8233_v13 = vld [vmem:[#allocation25_spill] sm:$0xff] }
 0x5a4   : > { %v3059_v19 = vsel %vm7510_vm7, %v8226_v51, %v8225_v8  ;;  %v3220_v59 = vmul.f32 %v3219_v41, %v8229_v62  ;;  %v3539_v15 = vsel %vm3536_vm13, %v3538_v61, %v3534_v50  ;;  %v3565_v47 = vmul.f32 %v3549_v43, %v8230_v33  ;;  %v8242_v43 = vld [vmem:[#allocation9_spill] sm:$0xff]  ;;  %v8243_v41 = vld [vmem:[#allocation18_spill] sm:$0xff]  ;;  %v8248_v8 = vld [vmem:[#allocation11_spill] sm:$0xff] }
 0x5a5   : > { %v4385_v11 = vclamps-f32 %v3380_v54, 1.0  ;;  %v3540_v36 = vmul.f32 %v3539_v15, %v3515_v48  ;;  %3640 = vmatpush.msra.mxu0 %v3587_v29  ;;  %v3585_v20 = vadd.f32 %v3569_v21, %v8231_v24  ;;  %v2873_v18 = vmul.f32 0.5, %v8232_v4  ;;  %v8244_v21 = vld [vmem:[#allocation10_spill] sm:$0xff]  ;;  %v8245_v40 = vld [vmem:[#allocation29_spill] sm:$0xff]  ;;  %v8246_v48 = vld [vmem:[#allocation19_spill] sm:$0xff] }
 0x5a6   : > { %v3035_v46 = vmul.f32 %v8234_v31, %v8233_v13  ;;  %v3563_v23 = vmul.f32 %v8236_v57, %v8235_v56  ;;  %v3140_v45 = vmul.f32 %v8237_v12, %v3115_v14  ;;  %v4383_v35 = vclamps-f32 %v3300_v49, 1.0  ;;  %v8247_v29 = vld [vmem:[#allocation24_spill] sm:$0xff]  ;;  %v8250_v33 = vld [vmem:[#allocation7_spill] sm:$0xff] }
 0x5a7   : > { %v3556_v10 = vadd.f32 1.0, %v4387_v37  ;;  %v4389_v60 = vclamps-f32 %v3540_v36, 1.0  ;;  %3641 = vmatpush.msra.mxu0 %v3585_v20  ;;  %v3583_v5 = vadd.f32 %v3567_v53, %v8238_v28  ;;  %v3561_v6 = vmul.f32 %v8239_v7, %v2873_v18  ;;  %v8249_v62 = vld [vmem:[#allocation16_spill] sm:$0xff]  ;;  %v8252_v18 = vld [vmem:[#allocation21_spill] sm:$0xff]  ;;  %v8254_v57 = vld [vmem:[#allocation23_spill] sm:$0xff] }
 0x5a8   : > { %v3060_v27 = vmul.f32 %v3059_v19, %v3035_v46  ;;  %v4381_v1 = vclamps-f32 %v3220_v59, 1.0  ;;  %v2884_v22 = vmul.f32 0.5, %v8240_v52  ;;  %v3554_v3 = vadd.f32 1.0, %v4385_v11  ;;  %v8251_v24 = vld [vmem:[#allocation12_spill] sm:$0xff]  ;;  %v8253_v46 = vld [vmem:[#allocation22_spill] sm:$0xff]  ;;  %v3602_v52 = vpop.permute.xlu0 %3601 }
 0x5a9   : > { %v2886_v34 = vmul.f32 0.5, %v8241_v16  ;;  %v3558_v39 = vadd.f32 1.0, %v4389_v60  ;;  %3642 = vmatpush.msra.mxu0 %v3583_v5  ;;  %v3581_v38 = vadd.f32 %v3565_v47, %v8242_v43  ;;  %v1919_v30 = vadd.f32 %v8243_v41, %v1794_v63  ;;  %v8257_v28 = vld [vmem:[#allocation36_spill] sm:$0xff]  ;;  %v3592_v7 = vld [vmem:[%s8011_s3 + $0x48] sm:$0xff] }
 0x5aa   : > { %v2002_v54 = vadd.f32 %v2001_v58, %v8244_v21  ;;  %v4379_v32 = vclamps-f32 %v3140_v45, 1.0  ;;  %v2882_v53 = vmul.f32 0.5, %v8245_v40  ;;  %v3552_v49 = vadd.f32 1.0, %v4383_v35  ;;  %v8255_v58 = vld [vmem:[#allocation13_spill] sm:$0xff] }
 0x5ab   : > { %v3572_v37 = vmul.f32 %v3556_v10, %v2884_v22  ;;  %v3574_v61 = vmul.f32 %v3558_v39, %v2886_v34  ;;  %3643 = vmatpush.msra.mxu0 %v3581_v38  ;;  %v3579_v50 = vadd.f32 %v3563_v23, %v8246_v48  ;;  %v1999_v44 = vadd.f32 %v7520_v25, %v8247_v29  ;;  %v3591_v25 = vld [vmem:[%s8011_s3 + $0x40] sm:$0xff]  ;;  %v3607_v39 = vpop.permute.xlu1 %3606 }
 0x5ac   : > { %v4377_v17 = vclamps-f32 %v3060_v27, 1.0  ;;  %v2880_v51 = vmul.f32 0.5, %v8248_v8  ;;  %v3550_v19 = vadd.f32 1.0, %v4381_v1  ;;  %v3570_v26 = vmul.f32 %v3554_v3, %v2882_v53  ;;  %v3593_v27 = vld [vmem:[%s8011_s3 + $0x50] sm:$0xff]  ;;  %v3594_v1 = vld [vmem:[%s8011_s3 + $0x58] sm:$0xff] }
 0x5ad   : > { %v3590_v55 = vadd.f32 %v3574_v61, %v2002_v54  ;;  %3644 = vmatpush.msra.mxu0 %v3579_v50  ;;  %v3577_v14 = vadd.f32 %v3561_v6, %v1919_v30  ;;  %v1996_v59 = vadd.f32 %v7465_v9, %v8249_v62  ;;  %v3548_v15 = vadd.f32 1.0, %v4379_v32  ;;  %v8258_v6 = vld [vmem:[#allocation39_spill] sm:$0xff] }
 0x5ae   : > { %v2878_v47 = vmul.f32 0.5, %v8250_v33  ;;  %v3568_v11 = vmul.f32 %v3552_v49, %v2880_v51  ;;  %v3588_v36 = vadd.f32 %v3572_v37, %v1999_v44  ;;  %v1993_v20 = vadd.f32 %v7395_v42, %v8251_v24  ;;  %v8256_v42 = vld [vmem:[#allocation38_spill] sm:$0xff] }
 0x5af   : > { %3668 = vmatpush.msra.mxu1 %v3590_v55  ;;  %3645 = vmatpush.msra.mxu0 %v3577_v14  ;;  %v3546_v4 = vadd.f32 1.0, %v4377_v17  ;;  %v2876_v13 = vmul.f32 0.5, %v8252_v18  ;;  %v3586_v9 = vadd.f32 %v3570_v26, %v1996_v59  ;;  %v1990_v56 = vadd.f32 %v7344_v2, %v8253_v46  ;;  %v3612_v59 = vpop.permute.xlu2 %3611 }
 0x5b0   : > { %v3566_v31 = vmul.f32 %v3550_v19, %v2878_v47  ;;  %v2874_v23 = vmul.f32 0.5, %v8254_v57  ;;  %v3584_v45 = vadd.f32 %v3568_v11, %v1993_v20  ;;  %v1987_v35 = vadd.f32 %v8256_v42, %v8255_v58 }
 0x5b1   : > { %3669 = vmatpush.msra.mxu1 %v3588_v36  ;;  %3646 = vmatpush.msra.mxu0 %v7359_v0  ;;  %v3564_v12 = vmul.f32 %v3548_v15, %v2876_v13  ;;  %v1984_v5 = vadd.f32 %v8257_v28, %v1794_v63 }
 0x5b2   : > { %4390 = vmatmul.msk.f32.vlgmr.msra.gmra.mxu0 %vm2764_vm3, %v3591_v25  ;;  %v3562_v10 = vmul.f32 %v3546_v4, %v2874_v23  ;;  %v3582_v60 = vadd.f32 %v3566_v31, %v1990_v56 }
 0x5b3   : > { %3670 = vmatpush.msra.mxu1 %v3586_v9  ;;  %v3580_v0 = vadd.f32 %v3564_v12, %v1987_v35 }
 0x5b4   : > { %v3578_v2 = vadd.f32 %v3562_v10, %v1984_v5 }
 0x5b5   : > { %3671 = vmatpush.msra.mxu1 %v3584_v45 }
 0x5b7   : > { %3672 = vmatpush.msra.mxu1 %v3582_v60 }
 0x5b9   : > { %3673 = vmatpush.msra.mxu1 %v3580_v0 }
 0x5ba   : > { %4391 = vmatmul.msk.f32.gmra.mxu0 %vm2764_vm3, %v3592_v7 }
 0x5bb   : > { %3674 = vmatpush.msra.mxu1 %v3578_v2 }
 0x5bd   : > { %3675 = vmatpush.msra.mxu1 %v8258_v6 }
 0x5be   : > { %4394 = vmatmul.msk.f32.vlgmr.msra.gmra.mxu1 %vm2764_vm3, %v3591_v25 }
 0x5c2   : > { %4392 = vmatmul.msk.f32.gmra.mxu0 %vm2764_vm3, %v3593_v27 }
 0x5c6   : > { %4395 = vmatmul.msk.f32.gmra.mxu1 %vm2764_vm3, %v3592_v7 }
 0x5ca   : > { %4393 = vmatmul.msk.f32.gmra.mxu0 %vm2764_vm3, %v3594_v1 }
 0x5ce   : > { %4396 = vmatmul.msk.f32.gmra.mxu1 %vm2764_vm3, %v3593_v27 }
 0x5d6   : > { %4397 = vmatmul.msk.f32.gmra.mxu1 %vm2764_vm3, %v3594_v1 }
 0x62f   : > { %v3648_v22 = vpop.f32.mrf.mxu0 }
 0x630   : > { %v7609_v63 = vadd.f32 %v3648_v22, %v3602_v52 }
 0x632   : > { %v7612_v3 = vmul.f32 0.70710677, %v7609_v63 }
 0x634   : > { %v3705_v16 = vmul.f32 %v7612_v3, %v7612_v3 }
 0x636   : > { %v7616_v34 = vmin.f32 %v3705_v16, 16.0 }
 0x637   : > { %v3651_v43 = vpop.f32.mrf.mxu0 }
 0x638   : > { %v3718_v38 = vmul.f32 3.8918573e-05, %v7616_v34  ;;  %v7619_v41 = vadd.f32 %v3651_v43, %v3607_v39  ;;  %v3707_v44 = vmul.f32 2.1237322e-06, %v7616_v34 }
 0x63a   : > { %v3719_v30 = vadd.f32 0.001143296, %v3718_v38  ;;  %v7622_v54 = vmul.f32 0.70710677, %v7619_v41  ;;  %v3708_v14 = vadd.f32 0.00028619796, %v3707_v44 }
 0x63b   : > { %v3677_v21 = vpop.f32.mrf.mxu1 }
 0x63c   : > { %v3720_v32 = vmul.f32 %v3719_v30, %v7616_v34  ;;  %v7625_v40 = vadd.f32 %v3677_v21, %v3602_v52  ;;  %v3785_v53 = vmul.f32 %v7622_v54, %v7622_v54  ;;  %v3709_v36 = vmul.f32 %v3708_v14, %v7616_v34 }
 0x63e   : > { %v3721_v49 = vadd.f32 0.014752088, %v3720_v32  ;;  %v7630_v37 = vmul.f32 0.70710677, %v7625_v40  ;;  %v7632_v61 = vmin.f32 %v3785_v53, 16.0 }
 0x63f   : > { %v3654_v55 = vpop.f32.mrf.mxu0  ;;  %v3710_v31 = vadd.f32 0.0036580483, %v3709_v36 }
 0x640   : > { %v3722_v48 = vmul.f32 %v3721_v49, %v7616_v34  ;;  %v3745_v50 = vmul.f32 %v7630_v37, %v7630_v37  ;;  %v3798_v29 = vmul.f32 3.8918573e-05, %v7632_v61  ;;  %v7647_v33 = vadd.f32 %v3654_v55, %v3612_v59 }
 0x641   : > { %v3787_v13 = vmul.f32 2.1237322e-06, %v7632_v61  ;;  %v3711_v42 = vmul.f32 %v3710_v31, %v7616_v34 }
 0x642   : > { %v3799_v17 = vadd.f32 0.001143296, %v3798_v29  ;;  %v3723_v19 = vadd.f32 0.112945676, %v3722_v48  ;;  %v7641_v26 = vmin.f32 %v3745_v50, 16.0 }
 0x643   : > { %v3680_v8 = vpop.f32.mrf.mxu1  ;;  %v7655_v20 = vmul.f32 0.70710677, %v7647_v33  ;;  %v3788_v58 = vadd.f32 0.00028619796, %v3787_v13  ;;  %v3712_v6 = vadd.f32 0.05243302, %v3711_v42  ;;  %v3617_v42 = vpop.permute.xlu0 %3616 }
 0x644   : > { %v7639_v51 = vadd.f32 %v3680_v8, %v3607_v39  ;;  %v3800_v62 = vmul.f32 %v3799_v17, %v7632_v61  ;;  %v3724_v47 = vmul.f32 %v3723_v19, %v7616_v34  ;;  %v3758_v11 = vmul.f32 3.8918573e-05, %v7641_v26 }
 0x645   : > { %v3747_v56 = vmul.f32 2.1237322e-06, %v7641_v26  ;;  %v3865_v23 = vmul.f32 %v7655_v20, %v7655_v20  ;;  %v3789_v2 = vmul.f32 %v3788_v58, %v7632_v61  ;;  %v3713_v38 = vmul.f32 %v3712_v6, %v7616_v34 }
 0x646   : > { %v7645_v15 = vmul.f32 0.70710677, %v7639_v51  ;;  %v3801_v25 = vadd.f32 0.014752088, %v3800_v62  ;;  %v3725_v4 = vadd.f32 0.4994258, %v3724_v47 }
 0x647   : > { %v3759_v18 = vadd.f32 0.001143296, %v3758_v11  ;;  %v3748_v60 = vadd.f32 0.00028619796, %v3747_v56  ;;  %v7669_v5 = vmin.f32 %v3865_v23, 16.0 }
 0x648   : > { %v3825_v24 = vmul.f32 %v7645_v15, %v7645_v15  ;;  %v3802_v9 = vmul.f32 %v3801_v25, %v7632_v61  ;;  %v3726_v12 = vmul.f32 %v3725_v4, %v7616_v34  ;;  %v3790_v43 = vadd.f32 0.0036580483, %v3789_v2 }
 0x649   : > { %v3760_v45 = vmul.f32 %v3759_v18, %v7641_v26  ;;  %v3749_v1 = vmul.f32 %v3748_v60, %v7641_v26  ;;  %v3878_v16 = vmul.f32 3.8918573e-05, %v7669_v5  ;;  %v3714_v29 = vadd.f32 0.18741608, %v3713_v38 }
 0x64a   : > { %v7659_v46 = vmin.f32 %v3825_v24, 16.0  ;;  %v3803_v35 = vadd.f32 0.112945676, %v3802_v9  ;;  %v7671_v0 = vadd.f32 1.0, %v3726_v12  ;;  %v3791_v50 = vmul.f32 %v3790_v43, %v7632_v61  ;;  %v3657_v12 = vpop.f32.mrf.mxu0 }
 0x64b   : > { %v3761_v7 = vadd.f32 0.014752088, %v3760_v45  ;;  %v3683_v52 = vpop.f32.mrf.mxu1  ;;  %v3750_v32 = vadd.f32 0.0036580483, %v3749_v1  ;;  %v3879_v49 = vadd.f32 0.001143296, %v3878_v16  ;;  %v3715_v11 = vmul.f32 %v3714_v29, %v7616_v34 }
 0x64c   : > { %v3838_v57 = vmul.f32 3.8918573e-05, %v7659_v46  ;;  %v3804_v27 = vmul.f32 %v3803_v35, %v7632_v61  ;;  %4567 = vrcp.f32 %v7671_v0  ;;  %v7680_v21 = vadd.f32 %v3683_v52, %v3612_v59 }
 0x64d   : > { %v3762_v39 = vmul.f32 %v3761_v7, %v7641_v26  ;;  %v3880_v17 = vmul.f32 %v3879_v49, %v7669_v5  ;;  %v3751_v55 = vmul.f32 %v3750_v32, %v7641_v26  ;;  %v3792_v59 = vadd.f32 0.05243302, %v3791_v50 }
 0x64e   : > { %v3839_v10 = vadd.f32 0.001143296, %v3838_v57  ;;  %v3805_v30 = vadd.f32 0.4994258, %v3804_v27  ;;  %v7687_v8 = vmul.f32 0.70710677, %v7680_v21  ;;  %v7714_v6 = vadd.f32 %v3657_v12, %v3617_v42 }
 0x64f   : > { %v3763_v48 = vadd.f32 0.112945676, %v3762_v39  ;;  %v3881_v47 = vadd.f32 0.014752088, %v3880_v17  ;;  %v3752_v4 = vadd.f32 0.05243302, %v3751_v55  ;;  %v3793_v34 = vmul.f32 %v3792_v59, %v7632_v61 }
 0x650   : > { %v3840_v28 = vmul.f32 %v3839_v10, %v7659_v46  ;;  %v3806_v44 = vmul.f32 %v3805_v30, %v7632_v61  ;;  %v3905_v24 = vmul.f32 %v7687_v8, %v7687_v8  ;;  %v3867_v18 = vmul.f32 2.1237322e-06, %v7669_v5 }
 0x651   : > { %v3764_v62 = vmul.f32 %v3763_v48, %v7641_v26  ;;  %v3882_v13 = vmul.f32 %v3881_v47, %v7669_v5  ;;  %v3827_v57 = vmul.f32 2.1237322e-06, %v7659_v46  ;;  %v3716_v45 = vadd.f32 1.1283791, %v3715_v11 }
 0x652   : > { %v3841_v22 = vadd.f32 0.014752088, %v3840_v28  ;;  %v7689_v19 = vpop.eup %4567  ;;  %v7696_v25 = vadd.f32 1.0, %v3806_v44  ;;  %v7703_v9 = vmin.f32 %v3905_v24, 16.0  ;;  %v3753_v35 = vmul.f32 %v3752_v4, %v7641_v26 }
 0x653   : > { %v3729_v36 = vmul.f32 %v7689_v19, %v7671_v0  ;;  %v3765_v56 = vadd.f32 0.4994258, %v3764_v62  ;;  %v3883_v23 = vadd.f32 0.112945676, %v3882_v13  ;;  %v3868_v10 = vadd.f32 0.00028619796, %v3867_v18  ;;  %v3686_v59 = vpop.f32.mrf.mxu1 }
 0x654   : > { %v3842_v53 = vmul.f32 %v3841_v22, %v7659_v46  ;;  %4569 = vrcp.f32 %v7696_v25  ;;  %v3918_v28 = vmul.f32 3.8918573e-05, %v7703_v9  ;;  %v7712_v7 = vmul.f32 0.5, %v7609_v63 }
 0x655   : > { %v3730_v58 = vsub.f32 1.0, %v3729_v36  ;;  %v3884_v60 = vmul.f32 %v3883_v23, %v7669_v5  ;;  %v3766_v27 = vmul.f32 %v3765_v56, %v7641_v26  ;;  %v7718_v1 = vmul.f32 0.5, %v7619_v41 }
 0x656   : > { %v3843_v14 = vadd.f32 0.112945676, %v3842_v53  ;;  %v3794_v52 = vadd.f32 0.18741608, %v3793_v34  ;;  %v3828_v22 = vadd.f32 0.00028619796, %v3827_v57  ;;  %v7721_v16 = vmul.f32 %v3716_v45, %v7612_v3 }
 0x657   : > { %v3731_v39 = vmul.f32 %v7689_v19, %v3730_v58  ;;  %v7725_v43 = vmul.f32 0.5, %v7647_v33  ;;  %v3885_v63 = vadd.f32 0.4994258, %v3884_v60  ;;  %v3737_v38 = vand.u32 2147483647, %v7671_v0 }
 0x658   : > { %v3844_v31 = vmul.f32 %v3843_v14, %v7659_v46  ;;  %v3754_v30 = vadd.f32 0.18741608, %v3753_v35  ;;  %v3869_v32 = vmul.f32 %v3868_v10, %v7669_v5  ;;  %v3919_v53 = vadd.f32 0.001143296, %v3918_v28 }
 0x659   : > { %v3739_v41 = vand.u32 2147483648, %v7671_v0  ;;  %v3886_v3 = vmul.f32 %v3885_v63, %v7669_v5  ;;  %v7735_v50 = vmul.f32 0.70710677, %v7714_v6  ;;  %v7737_v33 = vadd.f32 1.0, %v3766_v27 }
 0x65a   : > { %v3845_v2 = vadd.f32 0.4994258, %v3844_v31  ;;  %v7729_v49 = vpop.eup %4569  ;;  %v3795_v29 = vmul.f32 %v3794_v52, %v7632_v61  ;;  %v3829_v44 = vmul.f32 %v3828_v22, %v7659_v46  ;;  %v3920_v17 = vmul.f32 %v3919_v53, %v7703_v9 }
 0x65b   : > { %v3732_v55 = vadd.f32 %v7689_v19, %v3731_v39  ;;  %vm3734_vm3 = vweird.f32 %v7689_v19  ;;  %v7744_v14 = vadd.f32 1.0, %v3886_v3  ;;  %v3945_v62 = vmul.f32 %v7735_v50, %v7735_v50 }
 0x65c   : > { %v3846_v48 = vmul.f32 %v3845_v2, %v7659_v46  ;;  %v3755_v47 = vmul.f32 %v3754_v30, %v7641_v26  ;;  %v3809_v11 = vmul.f32 %v7729_v49, %v7696_v25  ;;  %v3870_v61 = vadd.f32 0.0036580483, %v3869_v32 }
 0x65d   : > { %v3921_v36 = vadd.f32 0.014752088, %v3920_v17  ;;  %vm3733_vm9 = vweird.f32 %v7671_v0  ;;  %vm7752_vm14 = vcmp.eq.f32.partialorder %v3737_v38, 8.507059e+37  ;;  %4571 = vrcp.f32 %v7744_v14 }
 0x65e   : > { %v7756_v4 = vadd.f32 1.0, %v3846_v48  ;;  %vm7759_vm15 = vmor %vm3733_vm9, %vm3734_vm3  ;;  %4573 = vrcp.f32 %v7737_v33  ;;  %v3796_v26 = vadd.f32 1.1283791, %v3795_v29  ;;  %v3830_v13 = vadd.f32 0.0036580483, %v3829_v44 }
 0x65f   : > { %v7764_v31 = vadd.f32 %v3686_v59, %v3617_v42  ;;  %v3736_v0 = vsel %vm7759_vm15, %v7689_v19, %v3732_v55  ;;  %v3907_v56 = vmul.f32 2.1237322e-06, %v7703_v9  ;;  %v3922_v34 = vmul.f32 %v3921_v36, %v7703_v9 }
 0x660   : > { %v7771_v57 = vmin.f32 %v3945_v62, 16.0  ;;  %v3740_v23 = vor.u32 1.1754944e-38, %v3739_v41  ;;  %v3756_v12 = vadd.f32 1.1283791, %v3755_v47  ;;  %v3810_v45 = vsub.f32 1.0, %v3809_v11 }
 0x661   : > { %v3871_v58 = vmul.f32 %v3870_v61, %v7669_v5  ;;  %4575 = vrcp.f32 %v7756_v4  ;;  %v3923_v35 = vadd.f32 0.112945676, %v3922_v34  ;;  %v7780_v60 = vmul.f32 %v3796_v26, %v7622_v54 }
 0x662   : > { %v3947_v42 = vmul.f32 2.1237322e-06, %v7771_v57  ;;  %v3958_v10 = vmul.f32 3.8918573e-05, %v7771_v57  ;;  %v3741_v19 = vsel %vm7752_vm14, %v3740_v23, %v3736_v0  ;;  %v3831_v28 = vmul.f32 %v3830_v13, %v7659_v46 }
 0x663   : > { %v7784_v2 = vmul.f32 0.70710677, %v7764_v31  ;;  %v7786_v27 = vpop.eup %4571  ;;  %vm3813_vm0 = vweird.f32 %v7696_v25  ;;  %v3908_v52 = vadd.f32 0.00028619796, %v3907_v56  ;;  %v3924_v22 = vmul.f32 %v3923_v35, %v7703_v9 }
 0x664   : > { %v3948_v39 = vadd.f32 0.00028619796, %v3947_v42  ;;  %v3959_v63 = vadd.f32 0.001143296, %v3958_v10  ;;  %v7790_v38 = vpop.eup %4573  ;;  %v7793_v30 = vmul.f32 %v3756_v12, %v7630_v37  ;;  %v3817_v54 = vand.u32 2147483647, %v7696_v25 }
 0x665   : > { %v3819_v32 = vand.u32 2147483648, %v7696_v25  ;;  %v3872_v53 = vadd.f32 0.05243302, %v3871_v58  ;;  %v3811_v41 = vmul.f32 %v7729_v49, %v3810_v45  ;;  %v3889_v48 = vmul.f32 %v7786_v27, %v7744_v14 }
 0x666   : > { %v3925_v3 = vadd.f32 0.4994258, %v3924_v22  ;;  %v3960_v29 = vmul.f32 %v3959_v63, %v7771_v57  ;;  %v3742_v44 = vmul.f32 %v3741_v19, %v7721_v16  ;;  %v3779_v17 = vand.u32 2147483648, %v7737_v33 }
 0x667   : > { %v3949_v37 = vmul.f32 %v3948_v39, %v7771_v57  ;;  %v3985_v55 = vmul.f32 %v7784_v2, %v7784_v2  ;;  %v7806_v62 = vpop.eup %4575  ;;  %v3832_v59 = vadd.f32 0.05243302, %v3831_v28  ;;  %v3909_v47 = vmul.f32 %v3908_v52, %v7703_v9 }
 0x668   : > { %v3926_v11 = vmul.f32 %v3925_v3, %v7703_v9  ;;  %v3961_v61 = vadd.f32 0.014752088, %v3960_v29  ;;  %v3769_v36 = vmul.f32 %v7790_v38, %v7737_v33  ;;  %vm3814_vm2 = vweird.f32 %v7729_v49 }
 0x669   : > { %v3873_v16 = vmul.f32 %v3872_v53, %v7669_v5  ;;  %v7814_v24 = vmin.f32 %v3985_v55, 16.0  ;;  %v3812_v18 = vadd.f32 %v7729_v49, %v3811_v41  ;;  %v3890_v26 = vsub.f32 1.0, %v3889_v48  ;;  %vm7830_vm4 = vmor %vm3813_vm0, %vm3814_vm2 }
 0x66a   : > { %v7817_v13 = vadd.f32 1.0, %v3926_v11  ;;  %v3962_v0 = vmul.f32 %v3961_v61, %v7771_v57  ;;  %v4398_v56 = vclamps-f32 %v3742_v44, 1.0  ;;  %v3777_v34 = vand.u32 2147483647, %v7737_v33 }
 0x66b   : > { %v3849_v23 = vmul.f32 %v7806_v62, %v7756_v4  ;;  %v3950_v12 = vadd.f32 0.0036580483, %v3949_v37  ;;  %v3833_v45 = vmul.f32 %v3832_v59, %v7659_v46  ;;  %v3910_v58 = vadd.f32 0.0036580483, %v3909_v47 }
 0x66c   : > { %4577 = vrcp.f32 %v7817_v13  ;;  %v3987_v35 = vmul.f32 2.1237322e-06, %v7814_v24  ;;  %v3770_v42 = vsub.f32 1.0, %v3769_v36  ;;  %vm7834_vm5 = vcmp.eq.f32.partialorder %v3817_v54, 8.507059e+37 }
 0x66d   : > { %v3874_v28 = vadd.f32 0.18741608, %v3873_v16  ;;  %v3963_v52 = vadd.f32 0.112945676, %v3962_v0  ;;  %v7838_v22 = vor.u32 1.1754944e-38, %v3779_v17  ;;  %v3816_v39 = vsel %vm7830_vm4, %v7729_v49, %v3812_v18 }
 0x66e   : > { %v3820_v63 = vor.u32 1.1754944e-38, %v3819_v32  ;;  %v3891_v53 = vmul.f32 %v7786_v27, %v3890_v26  ;;  %v7844_v25 = vadd.f32 1.0, %v4398_v56  ;;  %vm3774_vm1 = vweird.f32 %v7790_v38 }
 0x66f   : > { %v3850_v41 = vsub.f32 1.0, %v3849_v23  ;;  %v3951_v54 = vmul.f32 %v3950_v12, %v7771_v57  ;;  %v3964_v48 = vmul.f32 %v3963_v52, %v7771_v57  ;;  %v3834_v3 = vadd.f32 0.18741608, %v3833_v45 }
 0x670   : > { %v3911_v29 = vmul.f32 %v3910_v58, %v7703_v9  ;;  %v3988_v44 = vadd.f32 0.00028619796, %v3987_v35  ;;  %v3998_v17 = vmul.f32 3.8918573e-05, %v7814_v24  ;;  %v3771_v49 = vmul.f32 %v7790_v38, %v3770_v42 }
 0x671   : > { %vm3773_vm6 = vweird.f32 %v7737_v33  ;;  %v3821_v32 = vsel %vm7834_vm5, %v3820_v63, %v3816_v39  ;;  %v3875_v37 = vmul.f32 %v3874_v28, %v7669_v5  ;;  %v3965_v55 = vadd.f32 0.4994258, %v3964_v48 }
 0x672   : > { %v7856_v59 = vpop.eup %4577  ;;  %v3892_v47 = vadd.f32 %v7786_v27, %v3891_v53  ;;  %vm3893_vm7 = vweird.f32 %v7744_v14  ;;  %vm3894_vm8 = vweird.f32 %v7786_v27  ;;  %v3999_v11 = vadd.f32 0.001143296, %v3998_v17  ;;  %vm7892_vm13 = vmor %vm3773_vm6, %vm3774_vm1 }
 0x673   : > { %v3851_v61 = vmul.f32 %v7806_v62, %v3850_v41  ;;  %v3897_v36 = vand.u32 2147483647, %v7744_v14  ;;  %v3899_v16 = vand.u32 2147483648, %v7744_v14  ;;  %v3952_v18 = vadd.f32 0.05243302, %v3951_v54  ;;  %vm7869_vm11 = vmor %vm3893_vm7, %vm3894_vm8 }
 0x674   : > { %v3912_v26 = vadd.f32 0.05243302, %v3911_v29  ;;  %v3966_v5 = vmul.f32 %v3965_v55, %v7771_v57  ;;  %v3989_v0 = vmul.f32 %v3988_v44, %v7814_v24  ;;  %v4000_v56 = vmul.f32 %v3999_v11, %v7814_v24 }
 0x675   : > { %v3772_v23 = vadd.f32 %v7790_v38, %v3771_v49  ;;  %v3835_v12 = vmul.f32 %v3834_v3, %v7659_v46  ;;  %v3876_v45 = vadd.f32 1.1283791, %v3875_v37  ;;  %v3929_v14 = vmul.f32 %v7856_v59, %v7817_v13 }
 0x676   : > { %v3822_v35 = vmul.f32 %v3821_v32, %v7780_v60  ;;  %v3896_v42 = vsel %vm7869_vm11, %v7786_v27, %v3892_v47  ;;  %v7879_v10 = vadd.f32 1.0, %v3966_v5  ;;  %v4001_v19 = vadd.f32 0.014752088, %v4000_v56 }
 0x677   : > { %vm3854_vm12 = vweird.f32 %v7806_v62  ;;  %vm3898_vm10 = vcmp.eq.f32.partialorder %v3897_v36, 8.507059e+37  ;;  %v3900_v46 = vor.u32 1.1754944e-38, %v3899_v16  ;;  %v3953_v28 = vmul.f32 %v3952_v18, %v7771_v57 }
 0x678   : > { %v3852_v52 = vadd.f32 %v7806_v62, %v3851_v61  ;;  %v3913_v39 = vmul.f32 %v3912_v26, %v7703_v9  ;;  %4579 = vrcp.f32 %v7879_v10  ;;  %v3990_v60 = vadd.f32 0.0036580483, %v3989_v0 }
 0x679   : > { %v3859_v63 = vand.u32 2147483648, %v7756_v4  ;;  %v3901_v53 = vsel %vm3898_vm10, %v3900_v46, %v3896_v42  ;;  %v3930_v27 = vsub.f32 1.0, %v3929_v14  ;;  %v4002_v41 = vmul.f32 %v4001_v19, %v7814_v24 }
 0x67a   : > { %v3836_v48 = vadd.f32 1.1283791, %v3835_v12  ;;  %vm3853_vm3 = vweird.f32 %v7756_v4  ;;  %v3857_v3 = vand.u32 2147483647, %v7756_v4  ;;  %v3877_v29 = vmul.f32 %v3876_v45, %v7655_v20 }
 0x67b   : > { %v3776_v44 = vsel %vm7892_vm13, %v7790_v38, %v3772_v23  ;;  %v4400_v17 = vclamps-f32 %v3822_v35, 1.0  ;;  %vm7904_vm9 = vmor %vm3853_vm3, %vm3854_vm12  ;;  %v3954_v32 = vadd.f32 0.18741608, %v3953_v28  ;;  %v4003_v37 = vadd.f32 0.112945676, %v4002_v41 }
 0x67c   : > { %v3856_v55 = vsel %vm7904_vm9, %v7806_v62, %v3852_v52  ;;  %v3902_v4 = vmul.f32 %v3901_v53, %v3877_v29  ;;  %v3914_v47 = vadd.f32 0.18741608, %v3913_v39  ;;  %v3991_v20 = vmul.f32 %v3990_v60, %v7814_v24  ;;  %v7943_v60 = vpop.permute.xlu1 %4047  ;;  %v4053_v29 = vpop.permute.xlu2 %4052 }
 0x67d   : > { %vm3778_vm14 = vcmp.eq.f32.partialorder %v3777_v34, 8.507059e+37  ;;  %v3860_v38 = vor.u32 1.1754944e-38, %v3859_v63  ;;  %v3931_v11 = vmul.f32 %v7856_v59, %v3930_v27  ;;  %v4004_v61 = vmul.f32 %v4003_v37, %v7814_v24 }
 0x67e   : > { %v4580_v36 = vpop.eup %4579  ;;  %v4033_v16 = vmul.f32 %v7844_v25, %v7712_v7  ;;  %v3781_v18 = vsel %vm3778_vm14, %v7838_v22, %v3776_v44  ;;  %v3837_v62 = vmul.f32 %v3836_v48, %v7645_v15  ;;  %vm3858_vm15 = vcmp.eq.f32.partialorder %v3857_v3, 8.507059e+37 }
 0x67f   : > { %v4027_v26 = vadd.f32 1.0, %v4400_v17  ;;  %v3861_v5 = vsel %vm3858_vm15, %v3860_v38, %v3856_v55  ;;  %v3955_v0 = vmul.f32 %v3954_v32, %v7771_v57  ;;  %v3969_v33 = vmul.f32 %v4580_v36, %v7879_v10  ;;  %v4058_v32 = vpop.permute.xlu0 %4057 }
 0x680   : > { %v4402_v34 = vclamps-f32 %v3902_v4, 1.0  ;;  %v3915_v56 = vmul.f32 %v3914_v47, %v7703_v9  ;;  %v3992_v23 = vadd.f32 0.05243302, %v3991_v20  ;;  %v4005_v12 = vadd.f32 0.4994258, %v4004_v61 }
 0x681   : > { %v3932_v45 = vadd.f32 %v7856_v59, %v3931_v11  ;;  %vm3933_vm0 = vweird.f32 %v7817_v13  ;;  %vm3934_vm2 = vweird.f32 %v7856_v59  ;;  %v3970_v7 = vsub.f32 1.0, %v3969_v33 }
 0x682   : > { %v3937_v15 = vand.u32 2147483647, %v7817_v13  ;;  %v3939_v22 = vand.u32 2147483648, %v7817_v13  ;;  %v3979_v57 = vand.u32 2147483648, %v7879_v10  ;;  %v4006_v25 = vmul.f32 %v4005_v12, %v7814_v24  ;;  %vm7932_vm5 = vmor %vm3933_vm0, %vm3934_vm2 }
 0x683   : > { %v3956_v58 = vadd.f32 1.1283791, %v3955_v0  ;;  %v3971_v14 = vmul.f32 %v4580_v36, %v3970_v7  ;;  %vm3974_vm4 = vweird.f32 %v4580_v36  ;;  %v3977_v9 = vand.u32 2147483647, %v7879_v10 }
 0x684   : > { %v4035_v35 = vmul.f32 %v4027_v26, %v7718_v1  ;;  %v4029_v42 = vadd.f32 1.0, %v4402_v34  ;;  %v3993_v46 = vmul.f32 %v3992_v23, %v7814_v24  ;;  %v7937_v28 = vadd.f32 1.0, %v4006_v25  ;;  %v4063_v26 = vpop.permute.xlu1 %4062 }
 0x685   : > { %v3916_v13 = vadd.f32 1.1283791, %v3915_v56  ;;  %v3936_v52 = vsel %vm7932_vm5, %v7856_v59, %v3932_v45  ;;  %v3972_v39 = vadd.f32 %v4580_v36, %v3971_v14  ;;  %vm3973_vm1 = vweird.f32 %v7879_v10 }
 0x686   : > { %v3862_v1 = vmul.f32 %v3861_v5, %v3837_v62  ;;  %v3940_v63 = vor.u32 1.1754944e-38, %v3939_v22  ;;  %vm3975_vm6 = vmor %vm3973_vm1, %vm3974_vm4  ;;  %v3980_v53 = vor.u32 1.1754944e-38, %v3979_v57  ;;  %4581 = vrcp.f32 %v7937_v28 }
 0x687   : > { %vm3938_vm7 = vcmp.eq.f32.partialorder %v3937_v15, 8.507059e+37  ;;  %v3957_v27 = vmul.f32 %v3956_v58, %v7735_v50  ;;  %v3976_v41 = vsel %vm3975_vm6, %v4580_v36, %v3972_v39  ;;  %vm3978_vm8 = vcmp.eq.f32.partialorder %v3977_v9, 8.507059e+37 }
 0x688   : > { %v4037_v54 = vmul.f32 %v4029_v42, %v7725_v43  ;;  %v3941_v48 = vsel %vm3938_vm7, %v3940_v63, %v3936_v52  ;;  %v3981_v59 = vsel %vm3978_vm8, %v3980_v53, %v3976_v41  ;;  %v3994_v3 = vadd.f32 0.18741608, %v3993_v46 }
 0x689   : > { %v3917_v10 = vmul.f32 %v3916_v13, %v7687_v8  ;;  %v3982_v44 = vmul.f32 %v3981_v59, %v3957_v27  ;;  %v3782_v17 = vmul.f32 %v3781_v18, %v7793_v30  ;;  %v4067_v49 = vmul.f32 %v4053_v29, %v4035_v35  ;;  %v4095_v59 = vpop.permute.xlu2 %4094 }
 0x68a   : > { %v4065_v50 = vmul.f32 %v7943_v60, %v4033_v16  ;;  %v4401_v47 = vclamps-f32 %v3862_v1, 1.0  ;;  %v4069_v20 = vmul.f32 %v4058_v32, %v4037_v54  ;;  %v3995_v43 = vmul.f32 %v3994_v3, %v7814_v24 }
 0x68b   : > { %v3942_v37 = vmul.f32 %v3941_v48, %v3917_v10  ;;  %v4404_v55 = vclamps-f32 %v3982_v44, 1.0  ;;  %v3695_v38 = vmul.f32 0.5, %v7714_v6  ;;  %v4399_v8 = vclamps-f32 %v3782_v17, 1.0 }
 0x68c   : > { %v4582_v4 = vpop.eup %4581  ;;  %v4073_v36 = vadd.f32 %v4067_v49, %v4065_v50  ;;  %v4028_v5 = vadd.f32 1.0, %v4401_v47  ;;  %v3996_v33 = vadd.f32 1.1283791, %v3995_v43  ;;  %v4019_v16 = vand.u32 2147483648, %v7937_v28 }
 0x68d   : > { %v4031_v11 = vadd.f32 1.0, %v4404_v55  ;;  %v4009_v61 = vmul.f32 %v4582_v4, %v7937_v28  ;;  %v4403_v62 = vclamps-f32 %v3942_v37, 1.0  ;;  %vm4014_vm11 = vweird.f32 %v4582_v4 }
 0x68e   : > { %v4074_v0 = vadd.f32 %v4073_v36, %v4069_v20  ;;  %v4017_v24 = vand.u32 2147483647, %v7937_v28  ;;  %v4026_v6 = vadd.f32 1.0, %v4399_v8  ;;  %v3692_v23 = vmul.f32 0.5, %v7639_v51 }
 0x68f   : > { %v4039_v30 = vmul.f32 %v4031_v11, %v3695_v38  ;;  %v4010_v18 = vsub.f32 1.0, %v4009_v61  ;;  %v4030_v12 = vadd.f32 1.0, %v4403_v62  ;;  %vm4013_vm12 = vweird.f32 %v7937_v28 }
 0x690   : > { %v3690_v15 = vmul.f32 0.5, %v7625_v40  ;;  %v4036_v22 = vmul.f32 %v4028_v5, %v3692_v23  ;;  %v3694_v57 = vmul.f32 0.5, %v7680_v21  ;;  %vm4015_vm10 = vmor %vm4013_vm12, %vm4014_vm11  ;;  %v4020_v25 = vor.u32 1.1754944e-38, %v4019_v16 }
 0x691   : > { %v4071_v34 = vmul.f32 %v4063_v26, %v4039_v30  ;;  %v4011_v56 = vmul.f32 %v4582_v4, %v4010_v18  ;;  %v3997_v14 = vmul.f32 %v3996_v33, %v7784_v2  ;;  %vm4018_vm13 = vcmp.eq.f32.partialorder %v4017_v24, 8.507059e+37 }
 0x692   : > { %v4034_v35 = vmul.f32 %v4026_v6, %v3690_v15  ;;  %v4038_v51 = vmul.f32 %v4030_v12, %v3694_v57  ;;  %v4068_v13 = vmul.f32 %v4053_v29, %v4036_v22  ;;  %v3696_v21 = vmul.f32 0.5, %v7764_v31 }
 0x693   : > { %v4075_v45 = vadd.f32 %v4074_v0, %v4071_v34  ;;  %v4012_v7 = vadd.f32 %v4582_v4, %v4011_v56  ;;  %v4143_v56 = vlaneseq  ;;  %vm4140_vm5 = vcmask 1040384  }
 0x694   : > { %v4066_v40 = vmul.f32 %v7943_v60, %v4034_v35  ;;  %v4070_v39 = vmul.f32 %v4058_v32, %v4038_v51 }
 0x695   : > { %v4076_v58 = vrot.slane %v4075_v45, 4  ;;  %v4016_v9 = vsel %vm4015_vm10, %v4582_v4, %v4012_v7  ;;  %vm4145_vm6 = vcmp.lt.s32.totalorder %v4143_v56, 256 }
 0x696   : > { %v4021_v42 = vsel %vm4018_vm13, %v4020_v25, %v4016_v9  ;;  %v4082_v53 = vadd.f32 %v4068_v13, %v4066_v40 }
 0x697   : > { %v4077_v19 = vadd.f32 %v4076_v58, %v4075_v45  ;;  %v4022_v46 = vmul.f32 %v4021_v42, %v3997_v14 }
 0x698   : > { %v4083_v41 = vadd.f32 %v4082_v53, %v4070_v39 }
 0x699   : > { %v4078_v52 = vrot.slane %v4077_v19, 2  ;;  %v4405_v28 = vclamps-f32 %v4022_v46, 1.0 }
 0x69b   : > { %v4079_v1 = vadd.f32 %v4078_v52, %v4077_v19  ;;  %v4032_v63 = vadd.f32 1.0, %v4405_v28 }
 0x69d   : > { %v4080_v27 = vrot.slane %v4079_v1, 1  ;;  %v4040_v2 = vmul.f32 %v4032_v63, %v3696_v21 }
 0x69f   : > { %v4081_v54 = vadd.f32 %v4080_v27, %v4079_v1  ;;  %v4072_v48 = vmul.f32 %v4063_v26, %v4040_v2 }
 0x6a1   : > { %v4097_v3 = vadd.f32 %v4095_v59, %v4081_v54  ;;  %v4084_v10 = vadd.f32 %v4083_v41, %v4072_v48 }
 0x6a3   : > { %v4406_v44 = vmul.f32 -1.442695, %v4097_v3  ;;  %v4085_v29 = vrot.slane %v4084_v10, 4 }
 0x6a5   : > { %4583 = vpow2.f32 %v4406_v44  ;;  %v4086_v17 = vadd.f32 %v4085_v29, %v4084_v10 }
 0x6a7   : > { %v4087_v49 = vrot.slane %v4086_v17, 2 }
 0x6a9   : > { %v4088_v60 = vadd.f32 %v4087_v49, %v4086_v17 }
 0x6ab   : > { %v4584_v32 = vpop.eup %4583  ;;  %v4089_v37 = vrot.slane %v4088_v60, 1 }
 0x6ac   : > { %v4105_v55 = vadd.f32 1.0, %v4584_v32 }
 0x6ad   : > { %v4090_v31 = vadd.f32 %v4089_v37, %v4088_v60 }
 0x6ae   : > { %4585 = vrcp.f32 %v4105_v55  ;;  %vm4112_vm14 = vweird.f32 %v4105_v55  ;;  %v4118_v0 = vand.u32 2147483648, %v4105_v55  ;;  %v4116_v16 = vand.u32 2147483647, %v4105_v55 }
 0x6af   : > { %v4098_v4 = vadd.f32 %v4095_v59, %v4090_v31 }
 0x6b0   : > { %v4119_v12 = vor.u32 1.1754944e-38, %v4118_v0  ;;  %vm4117_vm1 = vcmp.eq.f32.partialorder %v4116_v16, 8.507059e+37 }
 0x6b1   : > { %v4407_v50 = vmul.f32 -1.442695, %v4098_v4 }
 0x6b3   : > { %4587 = vpow2.f32 %v4407_v50 }
 0x6b4   : > { %v4586_v47 = vpop.eup %4585 }
 0x6b5   : > { %v4108_v38 = vmul.f32 %v4586_v47, %v4105_v55  ;;  %vm4113_vm3 = vweird.f32 %v4586_v47 }
 0x6b6   : > { %vm7972_vm15 = vmor %vm4112_vm14, %vm4113_vm3 }
 0x6b7   : > { %v4109_v11 = vsub.f32 1.0, %v4108_v38 }
 0x6b9   : > { %v4588_v20 = vpop.eup %4587  ;;  %v4110_v8 = vmul.f32 %v4586_v47, %v4109_v11 }
 0x6ba   : > { %v4106_v43 = vadd.f32 1.0, %v4588_v20 }
 0x6bb   : > { %v4111_v18 = vadd.f32 %v4586_v47, %v4110_v8 }
 0x6bc   : > { %4589 = vrcp.f32 %v4106_v43  ;;  %v4133_v30 = vand.u32 2147483648, %v4106_v43  ;;  %v4131_v5 = vand.u32 2147483647, %v4106_v43  ;;  %vm4127_vm0 = vweird.f32 %v4106_v43 }
 0x6bd   : > { %v4115_v6 = vsel %vm7972_vm15, %v4586_v47, %v4111_v18 }
 0x6be   : > { %v4134_v24 = vor.u32 1.1754944e-38, %v4133_v30  ;;  %vm4132_vm4 = vcmp.eq.f32.partialorder %v4131_v5, 8.507059e+37  ;;  %v4120_v15 = vsel %vm4117_vm1, %v4119_v12, %v4115_v6 }
 0x6c2   : > { %v4590_v61 = vpop.eup %4589 }
 0x6c3   : > { %v4123_v36 = vmul.f32 %v4590_v61, %v4106_v43  ;;  %vm4128_vm9 = vweird.f32 %v4590_v61 }
 0x6c4   : > { %vm4129_vm2 = vmor %vm4127_vm0, %vm4128_vm9 }
 0x6c5   : > { %v4124_v62 = vsub.f32 1.0, %v4123_v36 }
 0x6c7   : > { %v4125_v26 = vmul.f32 %v4590_v61, %v4124_v62 }
 0x6c9   : > { %v4126_v34 = vadd.f32 %v4590_v61, %v4125_v26 }
 0x6cb   : > { %v4130_v23 = vsel %vm4129_vm2, %v4590_v61, %v4126_v34 }
 0x6cc   : > { %v4135_v45 = vsel %vm4132_vm4, %v4134_v24, %v4130_v23 }
 0x6cd   : > { %v4139_v7 = vrot.slane %v4135_v45, 7 }
 0x6cf   : > { %v4141_v22 = vsel %vm4140_vm5, %v4120_v15, %v4139_v7 }
 0x6d0   : > { %4147 = vst.msk [vmem:[%s218_s22] sm:$0x3] %vm4145_vm6, %v4141_v22 }
 0x6d1   : > { %4618 = shalt.err (!%p4615_p3)
}
 0x6d2   : > { %4412 = dma.vmem_to_hbm [thread:$0]  (%p4724_p5), %s4162_s11, 32, %s4164_s12, %s4149_s14  }
 0x6d3 PF: > { %p4418_p4 = scmp.ge.s32.totalorder %s4653_s21, 2  ;;  %s4175_s30 = sand.u32 1, %s4641_s18  }
 0x6d4   : > { %s4176_s6 = scalar_lea.sflag [#allocation3], %s4175_s30 }
 0x6d5   : > { %p4415_p7 = pnand %p4418_p4, %p4728_p6 }
 0x6d7   : > { %p4416_p8 = pneg %p4415_p7 }
 0x6d9   : > { %4636 = dma.done.wait (%p4416_p8), %s4176_s6, 32  }
 0x6da   : > { %4638 = vsyncadd (%p4416_p8), %s4176_s6, 4294967264  ;;  %p15_p9 = scmp.ge.s32.totalorder %s4711_s24, 4   ;;  %s8277_s18 = smov %s4645_s19 }
 0x6db   : > { %s8278_s19 = smov %s4649_s20  ;;  %s8279_s20 = smov %s4722_s27 }
 0x6dc   : > { %s8280_s21 = smov %s4711_s24  ;;  %17 = sbr.rel (!%p15_p9) target bundleno = 3 (0x3), region = 75 }
 0x6e1   :  { %4182 = vsyncpa [#allocation3], 1 }
 0x6e2   :  { %4184 = vsyncpa [#allocation3 + $0x1], 1 }

</bundles_post_ra>
